<compile_context>
chip_gen: v6e
topology: v6e:2x2x1
jax: 0.10.0
libtpu: 0.0.40
codegen_flags: <defaults>
</compile_context>

<pallas_src>
import functools

import jax
import jax.numpy as jnp
from jax.experimental import pallas as pl
from jax.experimental.pallas import tpu as pltpu


def _round_up(x, m):
    return (x + m - 1) // m * m


# ---------------------------------------------------------------------------
# Fused kernel factory: n_layers LSTM + final Linear, single invocation.
# ---------------------------------------------------------------------------
def _make_lstm_net_kernel(n_layers, T, B, H, O, Bp, Hp):
    n_in = 3 + 3 * n_layers + 2  # x, h0, c0, (w_ih, w_hh, b) per layer, fc_w, fc_b

    def kernel(*refs):
        x_ref, h0_ref, c0_ref = refs[0], refs[1], refs[2]
        w_refs = refs[3:3 + 3 * n_layers]
        fc_w_ref = refs[3 + 3 * n_layers]
        fc_b_ref = refs[3 + 3 * n_layers + 1]
        logits_ref = refs[n_in]
        hN_ref = refs[n_in + 1]
        cN_ref = refs[n_in + 2]
        gx_buf = refs[n_in + 3]      # (T, Bp, 4*Hp) f32 : gate pre-activations
        y_buf = refs[n_in + 4]       # (T, Bp, Hp)  f32 : inter-layer activations

        f32 = jnp.float32

        for l in range(n_layers):
            w_ih = w_refs[3 * l][...]        # (Dp or Hp, 4*Hp), resident in VMEM
            w_hh = w_refs[3 * l + 1][...]    # (Hp, 4*Hp)
            bias = w_refs[3 * l + 2][...]    # (1, 4*Hp)

            inp = x_ref[...] if l == 0 else y_buf[...]   # (T, Bp, d_in)
            d_in = inp.shape[-1]

            # Input projection for every timestep in one big MXU matmul
            # (independent of the recurrence); bias folded in here.
            gx = jnp.dot(inp.reshape(T * Bp, d_in), w_ih,
                         preferred_element_type=f32) + bias
            gx_buf[...] = gx.reshape(T, Bp, 4 * Hp)

            h_l = h0_ref[l].astype(f32)      # (Bp, Hp)
            c_l = c0_ref[l].astype(f32)
            last_layer = (l == n_layers - 1)

            def step(t, carry, w_hh=w_hh, last_layer=last_layer):
                h, c = carry
                gates = gx_buf[t] + jnp.dot(h, w_hh,
                                            preferred_element_type=f32)
                # Hp is a multiple of 128 -> each gate slice is lane-aligned.
                i_g = jax.nn.sigmoid(gates[:, 0 * Hp:1 * Hp])
                f_g = jax.nn.sigmoid(gates[:, 1 * Hp:2 * Hp])
                g_g = jnp.tanh(gates[:, 2 * Hp:3 * Hp])
                o_g = jax.nn.sigmoid(gates[:, 3 * Hp:4 * Hp])
                c_new = f_g * c + i_g * g_g
                h_new = o_g * jnp.tanh(c_new)
                if not last_layer:
                    y_buf[t] = h_new         # stays in VMEM; never hits HBM
                return (h_new, c_new)

            # T is small and static here -> fully unroll for LLO scheduling.
            h_l, c_l = jax.lax.fori_loop(0, T, step, (h_l, c_l), unroll=True)

            hN_ref[l] = h_l[:B, :H].astype(hN_ref.dtype)
            cN_ref[l] = c_l[:B, :H].astype(cN_ref.dtype)

            if last_layer:
                # Fused final Linear (dropout is identity in eval mode).
                logits = jnp.dot(h_l, fc_w_ref[...],
                                 preferred_element_type=f32) + fc_b_ref[...]
                logits_ref[...] = logits[:B, :O].astype(logits_ref.dtype)

    return kernel


# ---------------------------------------------------------------------------
# Padding helpers (zero-padded regions are exact no-ops for the recurrence).
# ---------------------------------------------------------------------------
def _pad_gate_matrix(w, rows_p, H, Hp):
    """(rows, 4H) -> (rows_p, 4Hp) with each gate block padded to Hp lanes."""
    rows = w.shape[0]
    w4 = w.reshape(rows, 4, H)
    out = jnp.zeros((rows_p, 4, Hp), w.dtype).at[:rows, :, :H].set(w4)
    return out.reshape(rows_p, 4 * Hp)


def _pad_gate_bias(b, H, Hp):
    """(4H,) -> (1, 4Hp) with per-gate padding."""
    b4 = b.reshape(4, H)
    out = jnp.zeros((4, Hp), b.dtype).at[:, :H].set(b4)
    return out.reshape(1, 4 * Hp)


# ---------------------------------------------------------------------------
# Forward: one pallas_call for the whole network.
# ---------------------------------------------------------------------------
def lstm_net_forward(params, x, h):
    """Mirrors LstmNet.forward: returns (logits, (h_n, c_n))."""
    h0_all, c0_all = h
    lstm_params = params["lstm"]
    L = len(lstm_params)
    B, T, Din = x.shape
    H = h0_all.shape[-1]
    O = params["fc_w"].shape[-1]
    dt = x.dtype

    # Pad to TPU-friendly tiles: sublane (8 rows, f32) and lane (128).
    Bp = _round_up(max(B, 8), 8)
    Hp = _round_up(H, 128)
    Dp = _round_up(Din, 128)
    Op = _round_up(O, 128)

    # Time-major, padded inputs (padding is constant-folded under jit since
    # params are closed over).
    x_tbd = jnp.swapaxes(x, 0, 1)                                   # (T, B, Din)
    x_pad = jnp.zeros((T, Bp, Dp), dt).at[:, :B, :Din].set(x_tbd)
    h0_pad = jnp.zeros((L, Bp, Hp), dt).at[:, :B, :H].set(h0_all)
    c0_pad = jnp.zeros((L, Bp, Hp), dt).at[:, :B, :H].set(c0_all)

    flat_w = []
    for l, (w_ih, w_hh, b) in enumerate(lstm_params):
        rows_p = Dp if l == 0 else Hp
        flat_w.append(_pad_gate_matrix(w_ih, rows_p, H, Hp))
        flat_w.append(_pad_gate_matrix(w_hh, Hp, H, Hp))
        flat_w.append(_pad_gate_bias(b, H, Hp))

    fc_w_pad = jnp.zeros((Hp, Op), params["fc_w"].dtype).at[:H, :O].set(
        params["fc_w"])
    fc_b_pad = jnp.zeros((1, Op), params["fc_b"].dtype).at[0, :O].set(
        params["fc_b"])

    kernel = _make_lstm_net_kernel(L, T, B, H, O, Bp, Hp)
    n_in = 3 + 3 * L + 2
    vmem_spec = functools.partial(pl.BlockSpec,
                                  memory_space=pltpu.MemorySpace.VMEM)

    logits, h_n, c_n = pl.pallas_call(
        kernel,
        out_shape=(
            jax.ShapeDtypeStruct((B, O), dt),
            jax.ShapeDtypeStruct((L, B, H), dt),
            jax.ShapeDtypeStruct((L, B, H), dt),
        ),
        in_specs=[vmem_spec() for _ in range(n_in)],
        out_specs=(vmem_spec(), vmem_spec(), vmem_spec()),
        scratch_shapes=[
            pltpu.VMEM((T, Bp, 4 * Hp), jnp.float32),   # gate pre-activations
            pltpu.VMEM((T, Bp, Hp), jnp.float32),       # inter-layer activations
        ],
        compiler_params=pltpu.CompilerParams(
            vmem_limit_bytes=32 * 1024 * 1024,
        ),
    )(x_pad, h0_pad, c0_pad, *flat_w, fc_w_pad, fc_b_pad)

    return logits, (h_n, c_n)


# ---------------------------------------------------------------------------
# Pure-JAX reference (PyTorch LSTM semantics) for a numerical check.
# ---------------------------------------------------------------------------
def lstm_net_reference(params, x, h):
    h0_all, c0_all = h
    y = x
    hs, cs = [], []
    for l, (w_ih, w_hh, b) in enumerate(params["lstm"]):
        H = w_hh.shape[0]

        def step(carry, x_t, w_ih=w_ih, w_hh=w_hh, b=b, H=H):
            hh, cc = carry
            gates = x_t @ w_ih + hh @ w_hh + b
            i = jax.nn.sigmoid(gates[:, 0 * H:1 * H])
            f = jax.nn.sigmoid(gates[:, 1 * H:2 * H])
            g = jnp.tanh(gates[:, 2 * H:3 * H])
            o = jax.nn.sigmoid(gates[:, 3 * H:4 * H])
            cc = f * cc + i * g
            hh = o * jnp.tanh(cc)
            return (hh, cc), hh

        (hT, cT), ys = jax.lax.scan(step, (h0_all[l], c0_all[l]),
                                    jnp.swapaxes(y, 0, 1))
        y = jnp.swapaxes(ys, 0, 1)
        hs.append(hT)
        cs.append(cT)
    logits = y[:, -1, :] @ params["fc_w"] + params["fc_b"]
    return logits, (jnp.stack(hs, 0), jnp.stack(cs, 0))


# ---------------------------------------------------------------------------
# Deterministic PyTorch-style init.  Weights stored pre-transposed:
# W_ih (Din, 4H), W_hh (H, 4H); b = b_ih + b_hh (4H,); fc_w (H, O); fc_b (O,).
# (For large shapes, cast W_ih/W_hh/fc_w to bf16 here; MXU accumulates in f32.)
# ---------------------------------------------------------------------------
def init_params(key, input_size, hidden_size, output_size, n_layers,
                dtype=jnp.float32):
    k = 1.0 / jnp.sqrt(hidden_size)
    params = {"lstm": []}
    for l in range(n_layers):
        din = input_size if l == 0 else hidden_size
        key, k1, k2, k3, k4 = jax.random.split(key, 5)
        w_ih = jax.random.uniform(k1, (din, 4 * hidden_size), dtype, -k, k)
        w_hh = jax.random.uniform(k2, (hidden_size, 4 * hidden_size), dtype, -k, k)
        b_ih = jax.random.uniform(k3, (4 * hidden_size,), dtype, -k, k)
        b_hh = jax.random.uniform(k4, (4 * hidden_size,), dtype, -k, k)
        params["lstm"].append((w_ih, w_hh, b_ih + b_hh))
    key, k1, k2 = jax.random.split(key, 3)
    params["fc_w"] = jax.random.uniform(k1, (hidden_size, output_size), dtype, -k, k)
    params["fc_b"] = jax.random.uniform(k2, (output_size,), dtype, -k, k)
    return params


if __name__ == "__main__":
    B, T = 2, 8
    input_size, hidden_size, output_size, n_layers = 16, 32, 8, 2

    key = jax.random.PRNGKey(0)
    key, kx, kh, kc, kp = jax.random.split(key, 5)

    x = jax.random.normal(kx, (B, T, input_size), jnp.float32)
    h0 = jax.random.normal(kh, (n_layers, B, hidden_size), jnp.float32)
    c0 = jax.random.normal(kc, (n_layers, B, hidden_size), jnp.float32)
    params = init_params(kp, input_size, hidden_size, output_size, n_layers)

    fwd = jax.jit(functools.partial(lstm_net_forward, params))
    logits, (h_n, c_n) = fwd(x, (h0, c0))
    jax.block_until_ready((logits, h_n, c_n))

    assert logits.shape == (B, output_size)
    assert h_n.shape == (n_layers, B, hidden_size)
    assert c_n.shape == (n_layers, B, hidden_size)

    # Numerical check against a pure-JAX reference of the same math.
    ref_logits, (ref_h, ref_c) = lstm_net_reference(params, x, (h0, c0))
    assert jnp.allclose(logits, ref_logits, rtol=2e-3, atol=2e-3)
    assert jnp.allclose(h_n, ref_h, rtol=2e-3, atol=2e-3)
    assert jnp.allclose(c_n, ref_c, rtol=2e-3, atol=2e-3)

    print("KERNEL_OK")
</pallas_src>

<mosaic_0001>
module attributes {stable_mosaic.version = 11 : i64} {
  func.func @kernel(%arg0: memref<8x8x128xf32, #tpu.memory_space<vmem>>, %arg1: memref<2x8x128xf32, #tpu.memory_space<vmem>>, %arg2: memref<2x8x128xf32, #tpu.memory_space<vmem>>, %arg3: memref<128x512xf32, #tpu.memory_space<vmem>>, %arg4: memref<128x512xf32, #tpu.memory_space<vmem>>, %arg5: memref<1x512xf32, #tpu.memory_space<vmem>>, %arg6: memref<128x512xf32, #tpu.memory_space<vmem>>, %arg7: memref<128x512xf32, #tpu.memory_space<vmem>>, %arg8: memref<1x512xf32, #tpu.memory_space<vmem>>, %arg9: memref<128x128xf32, #tpu.memory_space<vmem>>, %arg10: memref<1x128xf32, #tpu.memory_space<vmem>>, %arg11: memref<2x8xf32, #tpu.memory_space<vmem>>, %arg12: memref<2x2x32xf32, #tpu.memory_space<vmem>>, %arg13: memref<2x2x32xf32, #tpu.memory_space<vmem>>, %arg14: memref<8x8x512xf32, #tpu.memory_space<vmem>>, %arg15: memref<8x8x128xf32, #tpu.memory_space<vmem>>) attributes {dimension_semantics = [], scalar_prefetch = 0 : i64, scratch_operands = 2 : i64, tpu.core_type = #tpu.core_type<tc>} {
    %c0 = arith.constant 0 : index
    %c0_0 = arith.constant 0 : index
    %0 = vector.load %arg3[%c0, %c0_0] : memref<128x512xf32, #tpu.memory_space<vmem>>, vector<128x512xf32>
    %c0_1 = arith.constant 0 : index
    %c0_2 = arith.constant 0 : index
    %1 = vector.load %arg4[%c0_1, %c0_2] : memref<128x512xf32, #tpu.memory_space<vmem>>, vector<128x512xf32>
    %c0_3 = arith.constant 0 : index
    %c0_4 = arith.constant 0 : index
    %2 = vector.load %arg5[%c0_3, %c0_4] : memref<1x512xf32, #tpu.memory_space<vmem>>, vector<1x512xf32>
    %c0_5 = arith.constant 0 : index
    %c0_6 = arith.constant 0 : index
    %c0_7 = arith.constant 0 : index
    %3 = vector.load %arg0[%c0_5, %c0_6, %c0_7] : memref<8x8x128xf32, #tpu.memory_space<vmem>>, vector<8x8x128xf32>
    %4 = vector.shape_cast %3 : vector<8x8x128xf32> to vector<64x128xf32>
    %cst = arith.constant dense<0.000000e+00> : vector<64x512xf32>
    %5 = tpu.matmul %4, %0, %cst {dimension_numbers = #tpu.dot_dimension_numbers<[1], [0], [0], [1], [0, 0, 1, 1], [], []>} : vector<64x128xf32>, vector<128x512xf32>, vector<64x512xf32> -> vector<64x512xf32>
    %6 = vector.broadcast %2 : vector<1x512xf32> to vector<64x512xf32>
    %7 = arith.addf %5, %6 : vector<64x512xf32>
    %8 = vector.shape_cast %7 : vector<64x512xf32> to vector<8x8x512xf32>
    %c0_8 = arith.constant 0 : index
    %c0_9 = arith.constant 0 : index
    %c0_10 = arith.constant 0 : index
    %9 = vector.load %arg14[%c0_8, %c0_9, %c0_10] : memref<8x8x512xf32, #tpu.memory_space<vmem>>, vector<8x8x512xf32>
    tpu.vector_store %arg14[%c0_8, %c0_9, %c0_10], %8 {strides = array<i32>} : memref<8x8x512xf32, #tpu.memory_space<vmem>>, vector<8x8x512xf32>,
    %c0_11 = arith.constant 0 : index
    %c0_12 = arith.constant 0 : index
    %c0_13 = arith.constant 0 : index
    %10 = vector.load %arg1[%c0_11, %c0_12, %c0_13] : memref<2x8x128xf32, #tpu.memory_space<vmem>>, vector<1x8x128xf32>
    %11 = vector.shape_cast %10 : vector<1x8x128xf32> to vector<8x128xf32>
    %c0_14 = arith.constant 0 : index
    %c0_15 = arith.constant 0 : index
    %c0_16 = arith.constant 0 : index
    %12 = vector.load %arg2[%c0_14, %c0_15, %c0_16] : memref<2x8x128xf32, #tpu.memory_space<vmem>>, vector<1x8x128xf32>
    %13 = vector.shape_cast %12 : vector<1x8x128xf32> to vector<8x128xf32>
    %c0_i32 = arith.constant 0 : i32
    %14 = arith.index_cast %c0_i32 : i32 to index
    %c0_17 = arith.constant 0 : index
    %c0_18 = arith.constant 0 : index
    %15 = vector.load %arg14[%14, %c0_17, %c0_18] : memref<8x8x512xf32, #tpu.memory_space<vmem>>, vector<1x8x512xf32>
    %16 = vector.shape_cast %15 : vector<1x8x512xf32> to vector<8x512xf32>
    %cst_19 = arith.constant dense<0.000000e+00> : vector<8x512xf32>
    %17 = tpu.matmul %11, %1, %cst_19 {dimension_numbers = #tpu.dot_dimension_numbers<[1], [0], [0], [1], [0, 0, 1, 1], [], []>} : vector<8x128xf32>, vector<128x512xf32>, vector<8x512xf32> -> vector<8x512xf32>
    %18 = arith.addf %16, %17 : vector<8x512xf32>
    %19 = vector.extract_strided_slice %18 {offsets = [0, 0], sizes = [8, 128], strides = [1, 1]} : vector<8x512xf32> to vector<8x128xf32>
    %20 = arith.negf %19 : vector<8x128xf32>
    %21 = math.exp %20 : vector<8x128xf32>
    %cst_20 = arith.constant 1.000000e+00 : f32
    %22 = vector.broadcast %cst_20 : f32 to vector<8x128xf32>
    %23 = arith.addf %22, %21 : vector<8x128xf32>
    %24 = arith.divf %22, %23 : vector<8x128xf32>
    %25 = vector.extract_strided_slice %18 {offsets = [0, 128], sizes = [8, 128], strides = [1, 1]} : vector<8x512xf32> to vector<8x128xf32>
    %26 = arith.negf %25 : vector<8x128xf32>
    %27 = math.exp %26 : vector<8x128xf32>
    %cst_21 = arith.constant 1.000000e+00 : f32
    %28 = vector.broadcast %cst_21 : f32 to vector<8x128xf32>
    %29 = arith.addf %28, %27 : vector<8x128xf32>
    %30 = arith.divf %28, %29 : vector<8x128xf32>
    %31 = vector.extract_strided_slice %18 {offsets = [0, 256], sizes = [8, 128], strides = [1, 1]} : vector<8x512xf32> to vector<8x128xf32>
    %32 = math.tanh %31 : vector<8x128xf32>
    %33 = vector.extract_strided_slice %18 {offsets = [0, 384], sizes = [8, 128], strides = [1, 1]} : vector<8x512xf32> to vector<8x128xf32>
    %34 = arith.negf %33 : vector<8x128xf32>
    %35 = math.exp %34 : vector<8x128xf32>
    %cst_22 = arith.constant 1.000000e+00 : f32
    %36 = vector.broadcast %cst_22 : f32 to vector<8x128xf32>
    %37 = arith.addf %36, %35 : vector<8x128xf32>
    %38 = arith.divf %36, %37 : vector<8x128xf32>
    %39 = arith.mulf %30, %13 : vector<8x128xf32>
    %40 = arith.mulf %24, %32 : vector<8x128xf32>
    %41 = arith.addf %39, %40 : vector<8x128xf32>
    %42 = math.tanh %41 : vector<8x128xf32>
    %43 = arith.mulf %38, %42 : vector<8x128xf32>
    %44 = arith.index_cast %c0_i32 : i32 to index
    %c0_23 = arith.constant 0 : index
    %c0_24 = arith.constant 0 : index
    %45 = vector.load %arg15[%44, %c0_23, %c0_24] : memref<8x8x128xf32, #tpu.memory_space<vmem>>, vector<1x8x128xf32>
    %46 = vector.shape_cast %45 : vector<1x8x128xf32> to vector<8x128xf32>
    %47 = vector.shape_cast %43 : vector<8x128xf32> to vector<1x8x128xf32>
    tpu.vector_store %arg15[%44, %c0_23, %c0_24], %47 {strides = array<i32>} : memref<8x8x128xf32, #tpu.memory_space<vmem>>, vector<1x8x128xf32>,
    %c1_i32 = arith.constant 1 : i32
    %48 = arith.index_cast %c1_i32 : i32 to index
    %c0_25 = arith.constant 0 : index
    %c0_26 = arith.constant 0 : index
    %49 = vector.load %arg14[%48, %c0_25, %c0_26] : memref<8x8x512xf32, #tpu.memory_space<vmem>>, vector<1x8x512xf32>
    %50 = vector.shape_cast %49 : vector<1x8x512xf32> to vector<8x512xf32>
    %cst_27 = arith.constant dense<0.000000e+00> : vector<8x512xf32>
    %51 = tpu.matmul %43, %1, %cst_27 {dimension_numbers = #tpu.dot_dimension_numbers<[1], [0], [0], [1], [0, 0, 1, 1], [], []>} : vector<8x128xf32>, vector<128x512xf32>, vector<8x512xf32> -> vector<8x512xf32>
    %52 = arith.addf %50, %51 : vector<8x512xf32>
    %53 = vector.extract_strided_slice %52 {offsets = [0, 0], sizes = [8, 128], strides = [1, 1]} : vector<8x512xf32> to vector<8x128xf32>
    %54 = arith.negf %53 : vector<8x128xf32>
    %55 = math.exp %54 : vector<8x128xf32>
    %cst_28 = arith.constant 1.000000e+00 : f32
    %56 = vector.broadcast %cst_28 : f32 to vector<8x128xf32>
    %57 = arith.addf %56, %55 : vector<8x128xf32>
    %58 = arith.divf %56, %57 : vector<8x128xf32>
    %59 = vector.extract_strided_slice %52 {offsets = [0, 128], sizes = [8, 128], strides = [1, 1]} : vector<8x512xf32> to vector<8x128xf32>
    %60 = arith.negf %59 : vector<8x128xf32>
    %61 = math.exp %60 : vector<8x128xf32>
    %cst_29 = arith.constant 1.000000e+00 : f32
    %62 = vector.broadcast %cst_29 : f32 to vector<8x128xf32>
    %63 = arith.addf %62, %61 : vector<8x128xf32>
    %64 = arith.divf %62, %63 : vector<8x128xf32>
    %65 = vector.extract_strided_slice %52 {offsets = [0, 256], sizes = [8, 128], strides = [1, 1]} : vector<8x512xf32> to vector<8x128xf32>
    %66 = math.tanh %65 : vector<8x128xf32>
    %67 = vector.extract_strided_slice %52 {offsets = [0, 384], sizes = [8, 128], strides = [1, 1]} : vector<8x512xf32> to vector<8x128xf32>
    %68 = arith.negf %67 : vector<8x128xf32>
    %69 = math.exp %68 : vector<8x128xf32>
    %cst_30 = arith.constant 1.000000e+00 : f32
    %70 = vector.broadcast %cst_30 : f32 to vector<8x128xf32>
    %71 = arith.addf %70, %69 : vector<8x128xf32>
    %72 = arith.divf %70, %71 : vector<8x128xf32>
    %73 = arith.mulf %64, %41 : vector<8x128xf32>
    %74 = arith.mulf %58, %66 : vector<8x128xf32>
    %75 = arith.addf %73, %74 : vector<8x128xf32>
    %76 = math.tanh %75 : vector<8x128xf32>
    %77 = arith.mulf %72, %76 : vector<8x128xf32>
    %78 = arith.index_cast %c1_i32 : i32 to index
    %c0_31 = arith.constant 0 : index
    %c0_32 = arith.constant 0 : index
    %79 = vector.load %arg15[%78, %c0_31, %c0_32] : memref<8x8x128xf32, #tpu.memory_space<vmem>>, vector<1x8x128xf32>
    %80 = vector.shape_cast %79 : vector<1x8x128xf32> to vector<8x128xf32>
    %81 = vector.shape_cast %77 : vector<8x128xf32> to vector<1x8x128xf32>
    tpu.vector_store %arg15[%78, %c0_31, %c0_32], %81 {strides = array<i32>} : memref<8x8x128xf32, #tpu.memory_space<vmem>>, vector<1x8x128xf32>,
    %c2_i32 = arith.constant 2 : i32
    %82 = arith.index_cast %c2_i32 : i32 to index
    %c0_33 = arith.constant 0 : index
    %c0_34 = arith.constant 0 : index
    %83 = vector.load %arg14[%82, %c0_33, %c0_34] : memref<8x8x512xf32, #tpu.memory_space<vmem>>, vector<1x8x512xf32>
    %84 = vector.shape_cast %83 : vector<1x8x512xf32> to vector<8x512xf32>
    %cst_35 = arith.constant dense<0.000000e+00> : vector<8x512xf32>
    %85 = tpu.matmul %77, %1, %cst_35 {dimension_numbers = #tpu.dot_dimension_numbers<[1], [0], [0], [1], [0, 0, 1, 1], [], []>} : vector<8x128xf32>, vector<128x512xf32>, vector<8x512xf32> -> vector<8x512xf32>
    %86 = arith.addf %84, %85 : vector<8x512xf32>
    %87 = vector.extract_strided_slice %86 {offsets = [0, 0], sizes = [8, 128], strides = [1, 1]} : vector<8x512xf32> to vector<8x128xf32>
    %88 = arith.negf %87 : vector<8x128xf32>
    %89 = math.exp %88 : vector<8x128xf32>
    %cst_36 = arith.constant 1.000000e+00 : f32
    %90 = vector.broadcast %cst_36 : f32 to vector<8x128xf32>
    %91 = arith.addf %90, %89 : vector<8x128xf32>
    %92 = arith.divf %90, %91 : vector<8x128xf32>
    %93 = vector.extract_strided_slice %86 {offsets = [0, 128], sizes = [8, 128], strides = [1, 1]} : vector<8x512xf32> to vector<8x128xf32>
    %94 = arith.negf %93 : vector<8x128xf32>
    %95 = math.exp %94 : vector<8x128xf32>
    %cst_37 = arith.constant 1.000000e+00 : f32
    %96 = vector.broadcast %cst_37 : f32 to vector<8x128xf32>
    %97 = arith.addf %96, %95 : vector<8x128xf32>
    %98 = arith.divf %96, %97 : vector<8x128xf32>
    %99 = vector.extract_strided_slice %86 {offsets = [0, 256], sizes = [8, 128], strides = [1, 1]} : vector<8x512xf32> to vector<8x128xf32>
    %100 = math.tanh %99 : vector<8x128xf32>
    %101 = vector.extract_strided_slice %86 {offsets = [0, 384], sizes = [8, 128], strides = [1, 1]} : vector<8x512xf32> to vector<8x128xf32>
    %102 = arith.negf %101 : vector<8x128xf32>
    %103 = math.exp %102 : vector<8x128xf32>
    %cst_38 = arith.constant 1.000000e+00 : f32
    %104 = vector.broadcast %cst_38 : f32 to vector<8x128xf32>
    %105 = arith.addf %104, %103 : vector<8x128xf32>
    %106 = arith.divf %104, %105 : vector<8x128xf32>
    %107 = arith.mulf %98, %75 : vector<8x128xf32>
    %108 = arith.mulf %92, %100 : vector<8x128xf32>
    %109 = arith.addf %107, %108 : vector<8x128xf32>
    %110 = math.tanh %109 : vector<8x128xf32>
    %111 = arith.mulf %106, %110 : vector<8x128xf32>
    %112 = arith.index_cast %c2_i32 : i32 to index
    %c0_39 = arith.constant 0 : index
    %c0_40 = arith.constant 0 : index
    %113 = vector.load %arg15[%112, %c0_39, %c0_40] : memref<8x8x128xf32, #tpu.memory_space<vmem>>, vector<1x8x128xf32>
    %114 = vector.shape_cast %113 : vector<1x8x128xf32> to vector<8x128xf32>
    %115 = vector.shape_cast %111 : vector<8x128xf32> to vector<1x8x128xf32>
    tpu.vector_store %arg15[%112, %c0_39, %c0_40], %115 {strides = array<i32>} : memref<8x8x128xf32, #tpu.memory_space<vmem>>, vector<1x8x128xf32>,
    %c3_i32 = arith.constant 3 : i32
    %116 = arith.index_cast %c3_i32 : i32 to index
    %c0_41 = arith.constant 0 : index
    %c0_42 = arith.constant 0 : index
    %117 = vector.load %arg14[%116, %c0_41, %c0_42] : memref<8x8x512xf32, #tpu.memory_space<vmem>>, vector<1x8x512xf32>
    %118 = vector.shape_cast %117 : vector<1x8x512xf32> to vector<8x512xf32>
    %cst_43 = arith.constant dense<0.000000e+00> : vector<8x512xf32>
    %119 = tpu.matmul %111, %1, %cst_43 {dimension_numbers = #tpu.dot_dimension_numbers<[1], [0], [0], [1], [0, 0, 1, 1], [], []>} : vector<8x128xf32>, vector<128x512xf32>, vector<8x512xf32> -> vector<8x512xf32>
    %120 = arith.addf %118, %119 : vector<8x512xf32>
    %121 = vector.extract_strided_slice %120 {offsets = [0, 0], sizes = [8, 128], strides = [1, 1]} : vector<8x512xf32> to vector<8x128xf32>
    %122 = arith.negf %121 : vector<8x128xf32>
    %123 = math.exp %122 : vector<8x128xf32>
    %cst_44 = arith.constant 1.000000e+00 : f32
    %124 = vector.broadcast %cst_44 : f32 to vector<8x128xf32>
    %125 = arith.addf %124, %123 : vector<8x128xf32>
    %126 = arith.divf %124, %125 : vector<8x128xf32>
    %127 = vector.extract_strided_slice %120 {offsets = [0, 128], sizes = [8, 128], strides = [1, 1]} : vector<8x512xf32> to vector<8x128xf32>
    %128 = arith.negf %127 : vector<8x128xf32>
    %129 = math.exp %128 : vector<8x128xf32>
    %cst_45 = arith.constant 1.000000e+00 : f32
    %130 = vector.broadcast %cst_45 : f32 to vector<8x128xf32>
    %131 = arith.addf %130, %129 : vector<8x128xf32>
    %132 = arith.divf %130, %131 : vector<8x128xf32>
    %133 = vector.extract_strided_slice %120 {offsets = [0, 256], sizes = [8, 128], strides = [1, 1]} : vector<8x512xf32> to vector<8x128xf32>
    %134 = math.tanh %133 : vector<8x128xf32>
    %135 = vector.extract_strided_slice %120 {offsets = [0, 384], sizes = [8, 128], strides = [1, 1]} : vector<8x512xf32> to vector<8x128xf32>
    %136 = arith.negf %135 : vector<8x128xf32>
    %137 = math.exp %136 : vector<8x128xf32>
    %cst_46 = arith.constant 1.000000e+00 : f32
    %138 = vector.broadcast %cst_46 : f32 to vector<8x128xf32>
    %139 = arith.addf %138, %137 : vector<8x128xf32>
    %140 = arith.divf %138, %139 : vector<8x128xf32>
    %141 = arith.mulf %132, %109 : vector<8x128xf32>
    %142 = arith.mulf %126, %134 : vector<8x128xf32>
    %143 = arith.addf %141, %142 : vector<8x128xf32>
    %144 = math.tanh %143 : vector<8x128xf32>
    %145 = arith.mulf %140, %144 : vector<8x128xf32>
    %146 = arith.index_cast %c3_i32 : i32 to index
    %c0_47 = arith.constant 0 : index
    %c0_48 = arith.constant 0 : index
    %147 = vector.load %arg15[%146, %c0_47, %c0_48] : memref<8x8x128xf32, #tpu.memory_space<vmem>>, vector<1x8x128xf32>
    %148 = vector.shape_cast %147 : vector<1x8x128xf32> to vector<8x128xf32>
    %149 = vector.shape_cast %145 : vector<8x128xf32> to vector<1x8x128xf32>
    tpu.vector_store %arg15[%146, %c0_47, %c0_48], %149 {strides = array<i32>} : memref<8x8x128xf32, #tpu.memory_space<vmem>>, vector<1x8x128xf32>,
    %c4_i32 = arith.constant 4 : i32
    %150 = arith.index_cast %c4_i32 : i32 to index
    %c0_49 = arith.constant 0 : index
    %c0_50 = arith.constant 0 : index
    %151 = vector.load %arg14[%150, %c0_49, %c0_50] : memref<8x8x512xf32, #tpu.memory_space<vmem>>, vector<1x8x512xf32>
    %152 = vector.shape_cast %151 : vector<1x8x512xf32> to vector<8x512xf32>
    %cst_51 = arith.constant dense<0.000000e+00> : vector<8x512xf32>
    %153 = tpu.matmul %145, %1, %cst_51 {dimension_numbers = #tpu.dot_dimension_numbers<[1], [0], [0], [1], [0, 0, 1, 1], [], []>} : vector<8x128xf32>, vector<128x512xf32>, vector<8x512xf32> -> vector<8x512xf32>
    %154 = arith.addf %152, %153 : vector<8x512xf32>
    %155 = vector.extract_strided_slice %154 {offsets = [0, 0], sizes = [8, 128], strides = [1, 1]} : vector<8x512xf32> to vector<8x128xf32>
    %156 = arith.negf %155 : vector<8x128xf32>
    %157 = math.exp %156 : vector<8x128xf32>
    %cst_52 = arith.constant 1.000000e+00 : f32
    %158 = vector.broadcast %cst_52 : f32 to vector<8x128xf32>
    %159 = arith.addf %158, %157 : vector<8x128xf32>
    %160 = arith.divf %158, %159 : vector<8x128xf32>
    %161 = vector.extract_strided_slice %154 {offsets = [0, 128], sizes = [8, 128], strides = [1, 1]} : vector<8x512xf32> to vector<8x128xf32>
    %162 = arith.negf %161 : vector<8x128xf32>
    %163 = math.exp %162 : vector<8x128xf32>
    %cst_53 = arith.constant 1.000000e+00 : f32
    %164 = vector.broadcast %cst_53 : f32 to vector<8x128xf32>
    %165 = arith.addf %164, %163 : vector<8x128xf32>
    %166 = arith.divf %164, %165 : vector<8x128xf32>
    %167 = vector.extract_strided_slice %154 {offsets = [0, 256], sizes = [8, 128], strides = [1, 1]} : vector<8x512xf32> to vector<8x128xf32>
    %168 = math.tanh %167 : vector<8x128xf32>
    %169 = vector.extract_strided_slice %154 {offsets = [0, 384], sizes = [8, 128], strides = [1, 1]} : vector<8x512xf32> to vector<8x128xf32>
    %170 = arith.negf %169 : vector<8x128xf32>
    %171 = math.exp %170 : vector<8x128xf32>
    %cst_54 = arith.constant 1.000000e+00 : f32
    %172 = vector.broadcast %cst_54 : f32 to vector<8x128xf32>
    %173 = arith.addf %172, %171 : vector<8x128xf32>
    %174 = arith.divf %172, %173 : vector<8x128xf32>
    %175 = arith.mulf %166, %143 : vector<8x128xf32>
    %176 = arith.mulf %160, %168 : vector<8x128xf32>
    %177 = arith.addf %175, %176 : vector<8x128xf32>
    %178 = math.tanh %177 : vector<8x128xf32>
    %179 = arith.mulf %174, %178 : vector<8x128xf32>
    %180 = arith.index_cast %c4_i32 : i32 to index
    %c0_55 = arith.constant 0 : index
    %c0_56 = arith.constant 0 : index
    %181 = vector.load %arg15[%180, %c0_55, %c0_56] : memref<8x8x128xf32, #tpu.memory_space<vmem>>, vector<1x8x128xf32>
    %182 = vector.shape_cast %181 : vector<1x8x128xf32> to vector<8x128xf32>
    %183 = vector.shape_cast %179 : vector<8x128xf32> to vector<1x8x128xf32>
    tpu.vector_store %arg15[%180, %c0_55, %c0_56], %183 {strides = array<i32>} : memref<8x8x128xf32, #tpu.memory_space<vmem>>, vector<1x8x128xf32>,
    %c5_i32 = arith.constant 5 : i32
    %184 = arith.index_cast %c5_i32 : i32 to index
    %c0_57 = arith.constant 0 : index
    %c0_58 = arith.constant 0 : index
    %185 = vector.load %arg14[%184, %c0_57, %c0_58] : memref<8x8x512xf32, #tpu.memory_space<vmem>>, vector<1x8x512xf32>
    %186 = vector.shape_cast %185 : vector<1x8x512xf32> to vector<8x512xf32>
    %cst_59 = arith.constant dense<0.000000e+00> : vector<8x512xf32>
    %187 = tpu.matmul %179, %1, %cst_59 {dimension_numbers = #tpu.dot_dimension_numbers<[1], [0], [0], [1], [0, 0, 1, 1], [], []>} : vector<8x128xf32>, vector<128x512xf32>, vector<8x512xf32> -> vector<8x512xf32>
    %188 = arith.addf %186, %187 : vector<8x512xf32>
    %189 = vector.extract_strided_slice %188 {offsets = [0, 0], sizes = [8, 128], strides = [1, 1]} : vector<8x512xf32> to vector<8x128xf32>
    %190 = arith.negf %189 : vector<8x128xf32>
    %191 = math.exp %190 : vector<8x128xf32>
    %cst_60 = arith.constant 1.000000e+00 : f32
    %192 = vector.broadcast %cst_60 : f32 to vector<8x128xf32>
    %193 = arith.addf %192, %191 : vector<8x128xf32>
    %194 = arith.divf %192, %193 : vector<8x128xf32>
    %195 = vector.extract_strided_slice %188 {offsets = [0, 128], sizes = [8, 128], strides = [1, 1]} : vector<8x512xf32> to vector<8x128xf32>
    %196 = arith.negf %195 : vector<8x128xf32>
    %197 = math.exp %196 : vector<8x128xf32>
    %cst_61 = arith.constant 1.000000e+00 : f32
    %198 = vector.broadcast %cst_61 : f32 to vector<8x128xf32>
    %199 = arith.addf %198, %197 : vector<8x128xf32>
    %200 = arith.divf %198, %199 : vector<8x128xf32>
    %201 = vector.extract_strided_slice %188 {offsets = [0, 256], sizes = [8, 128], strides = [1, 1]} : vector<8x512xf32> to vector<8x128xf32>
    %202 = math.tanh %201 : vector<8x128xf32>
    %203 = vector.extract_strided_slice %188 {offsets = [0, 384], sizes = [8, 128], strides = [1, 1]} : vector<8x512xf32> to vector<8x128xf32>
    %204 = arith.negf %203 : vector<8x128xf32>
    %205 = math.exp %204 : vector<8x128xf32>
    %cst_62 = arith.constant 1.000000e+00 : f32
    %206 = vector.broadcast %cst_62 : f32 to vector<8x128xf32>
    %207 = arith.addf %206, %205 : vector<8x128xf32>
    %208 = arith.divf %206, %207 : vector<8x128xf32>
    %209 = arith.mulf %200, %177 : vector<8x128xf32>
    %210 = arith.mulf %194, %202 : vector<8x128xf32>
    %211 = arith.addf %209, %210 : vector<8x128xf32>
    %212 = math.tanh %211 : vector<8x128xf32>
    %213 = arith.mulf %208, %212 : vector<8x128xf32>
    %214 = arith.index_cast %c5_i32 : i32 to index
    %c0_63 = arith.constant 0 : index
    %c0_64 = arith.constant 0 : index
    %215 = vector.load %arg15[%214, %c0_63, %c0_64] : memref<8x8x128xf32, #tpu.memory_space<vmem>>, vector<1x8x128xf32>
    %216 = vector.shape_cast %215 : vector<1x8x128xf32> to vector<8x128xf32>
    %217 = vector.shape_cast %213 : vector<8x128xf32> to vector<1x8x128xf32>
    tpu.vector_store %arg15[%214, %c0_63, %c0_64], %217 {strides = array<i32>} : memref<8x8x128xf32, #tpu.memory_space<vmem>>, vector<1x8x128xf32>,
    %c6_i32 = arith.constant 6 : i32
    %218 = arith.index_cast %c6_i32 : i32 to index
    %c0_65 = arith.constant 0 : index
    %c0_66 = arith.constant 0 : index
    %219 = vector.load %arg14[%218, %c0_65, %c0_66] : memref<8x8x512xf32, #tpu.memory_space<vmem>>, vector<1x8x512xf32>
    %220 = vector.shape_cast %219 : vector<1x8x512xf32> to vector<8x512xf32>
    %cst_67 = arith.constant dense<0.000000e+00> : vector<8x512xf32>
    %221 = tpu.matmul %213, %1, %cst_67 {dimension_numbers = #tpu.dot_dimension_numbers<[1], [0], [0], [1], [0, 0, 1, 1], [], []>} : vector<8x128xf32>, vector<128x512xf32>, vector<8x512xf32> -> vector<8x512xf32>
    %222 = arith.addf %220, %221 : vector<8x512xf32>
    %223 = vector.extract_strided_slice %222 {offsets = [0, 0], sizes = [8, 128], strides = [1, 1]} : vector<8x512xf32> to vector<8x128xf32>
    %224 = arith.negf %223 : vector<8x128xf32>
    %225 = math.exp %224 : vector<8x128xf32>
    %cst_68 = arith.constant 1.000000e+00 : f32
    %226 = vector.broadcast %cst_68 : f32 to vector<8x128xf32>
    %227 = arith.addf %226, %225 : vector<8x128xf32>
    %228 = arith.divf %226, %227 : vector<8x128xf32>
    %229 = vector.extract_strided_slice %222 {offsets = [0, 128], sizes = [8, 128], strides = [1, 1]} : vector<8x512xf32> to vector<8x128xf32>
    %230 = arith.negf %229 : vector<8x128xf32>
    %231 = math.exp %230 : vector<8x128xf32>
    %cst_69 = arith.constant 1.000000e+00 : f32
    %232 = vector.broadcast %cst_69 : f32 to vector<8x128xf32>
    %233 = arith.addf %232, %231 : vector<8x128xf32>
    %234 = arith.divf %232, %233 : vector<8x128xf32>
    %235 = vector.extract_strided_slice %222 {offsets = [0, 256], sizes = [8, 128], strides = [1, 1]} : vector<8x512xf32> to vector<8x128xf32>
    %236 = math.tanh %235 : vector<8x128xf32>
    %237 = vector.extract_strided_slice %222 {offsets = [0, 384], sizes = [8, 128], strides = [1, 1]} : vector<8x512xf32> to vector<8x128xf32>
    %238 = arith.negf %237 : vector<8x128xf32>
    %239 = math.exp %238 : vector<8x128xf32>
    %cst_70 = arith.constant 1.000000e+00 : f32
    %240 = vector.broadcast %cst_70 : f32 to vector<8x128xf32>
    %241 = arith.addf %240, %239 : vector<8x128xf32>
    %242 = arith.divf %240, %241 : vector<8x128xf32>
    %243 = arith.mulf %234, %211 : vector<8x128xf32>
    %244 = arith.mulf %228, %236 : vector<8x128xf32>
    %245 = arith.addf %243, %244 : vector<8x128xf32>
    %246 = math.tanh %245 : vector<8x128xf32>
    %247 = arith.mulf %242, %246 : vector<8x128xf32>
    %248 = arith.index_cast %c6_i32 : i32 to index
    %c0_71 = arith.constant 0 : index
    %c0_72 = arith.constant 0 : index
    %249 = vector.load %arg15[%248, %c0_71, %c0_72] : memref<8x8x128xf32, #tpu.memory_space<vmem>>, vector<1x8x128xf32>
    %250 = vector.shape_cast %249 : vector<1x8x128xf32> to vector<8x128xf32>
    %251 = vector.shape_cast %247 : vector<8x128xf32> to vector<1x8x128xf32>
    tpu.vector_store %arg15[%248, %c0_71, %c0_72], %251 {strides = array<i32>} : memref<8x8x128xf32, #tpu.memory_space<vmem>>, vector<1x8x128xf32>,
    %c7_i32 = arith.constant 7 : i32
    %252 = arith.index_cast %c7_i32 : i32 to index
    %c0_73 = arith.constant 0 : index
    %c0_74 = arith.constant 0 : index
    %253 = vector.load %arg14[%252, %c0_73, %c0_74] : memref<8x8x512xf32, #tpu.memory_space<vmem>>, vector<1x8x512xf32>
    %254 = vector.shape_cast %253 : vector<1x8x512xf32> to vector<8x512xf32>
    %cst_75 = arith.constant dense<0.000000e+00> : vector<8x512xf32>
    %255 = tpu.matmul %247, %1, %cst_75 {dimension_numbers = #tpu.dot_dimension_numbers<[1], [0], [0], [1], [0, 0, 1, 1], [], []>} : vector<8x128xf32>, vector<128x512xf32>, vector<8x512xf32> -> vector<8x512xf32>
    %256 = arith.addf %254, %255 : vector<8x512xf32>
    %257 = vector.extract_strided_slice %256 {offsets = [0, 0], sizes = [8, 128], strides = [1, 1]} : vector<8x512xf32> to vector<8x128xf32>
    %258 = arith.negf %257 : vector<8x128xf32>
    %259 = math.exp %258 : vector<8x128xf32>
    %cst_76 = arith.constant 1.000000e+00 : f32
    %260 = vector.broadcast %cst_76 : f32 to vector<8x128xf32>
    %261 = arith.addf %260, %259 : vector<8x128xf32>
    %262 = arith.divf %260, %261 : vector<8x128xf32>
    %263 = vector.extract_strided_slice %256 {offsets = [0, 128], sizes = [8, 128], strides = [1, 1]} : vector<8x512xf32> to vector<8x128xf32>
    %264 = arith.negf %263 : vector<8x128xf32>
    %265 = math.exp %264 : vector<8x128xf32>
    %cst_77 = arith.constant 1.000000e+00 : f32
    %266 = vector.broadcast %cst_77 : f32 to vector<8x128xf32>
    %267 = arith.addf %266, %265 : vector<8x128xf32>
    %268 = arith.divf %266, %267 : vector<8x128xf32>
    %269 = vector.extract_strided_slice %256 {offsets = [0, 256], sizes = [8, 128], strides = [1, 1]} : vector<8x512xf32> to vector<8x128xf32>
    %270 = math.tanh %269 : vector<8x128xf32>
    %271 = vector.extract_strided_slice %256 {offsets = [0, 384], sizes = [8, 128], strides = [1, 1]} : vector<8x512xf32> to vector<8x128xf32>
    %272 = arith.negf %271 : vector<8x128xf32>
    %273 = math.exp %272 : vector<8x128xf32>
    %cst_78 = arith.constant 1.000000e+00 : f32
    %274 = vector.broadcast %cst_78 : f32 to vector<8x128xf32>
    %275 = arith.addf %274, %273 : vector<8x128xf32>
    %276 = arith.divf %274, %275 : vector<8x128xf32>
    %277 = arith.mulf %268, %245 : vector<8x128xf32>
    %278 = arith.mulf %262, %270 : vector<8x128xf32>
    %279 = arith.addf %277, %278 : vector<8x128xf32>
    %280 = math.tanh %279 : vector<8x128xf32>
    %281 = arith.mulf %276, %280 : vector<8x128xf32>
    %282 = arith.index_cast %c7_i32 : i32 to index
    %c0_79 = arith.constant 0 : index
    %c0_80 = arith.constant 0 : index
    %283 = vector.load %arg15[%282, %c0_79, %c0_80] : memref<8x8x128xf32, #tpu.memory_space<vmem>>, vector<1x8x128xf32>
    %284 = vector.shape_cast %283 : vector<1x8x128xf32> to vector<8x128xf32>
    %285 = vector.shape_cast %281 : vector<8x128xf32> to vector<1x8x128xf32>
    tpu.vector_store %arg15[%282, %c0_79, %c0_80], %285 {strides = array<i32>} : memref<8x8x128xf32, #tpu.memory_space<vmem>>, vector<1x8x128xf32>,
    %c8_i32 = arith.constant 8 : i32
    %286 = vector.extract_strided_slice %281 {offsets = [0, 0], sizes = [2, 32], strides = [1, 1]} : vector<8x128xf32> to vector<2x32xf32>
    %c0_81 = arith.constant 0 : index
    %c0_82 = arith.constant 0 : index
    %c0_83 = arith.constant 0 : index
    %287 = vector.load %arg12[%c0_81, %c0_82, %c0_83] : memref<2x2x32xf32, #tpu.memory_space<vmem>>, vector<1x2x32xf32>
    %288 = vector.shape_cast %287 : vector<1x2x32xf32> to vector<2x32xf32>
    %289 = vector.shape_cast %286 : vector<2x32xf32> to vector<1x2x32xf32>
    tpu.vector_store %arg12[%c0_81, %c0_82, %c0_83], %289 {strides = array<i32>} : memref<2x2x32xf32, #tpu.memory_space<vmem>>, vector<1x2x32xf32>,
    %290 = vector.extract_strided_slice %279 {offsets = [0, 0], sizes = [2, 32], strides = [1, 1]} : vector<8x128xf32> to vector<2x32xf32>
    %c0_84 = arith.constant 0 : index
    %c0_85 = arith.constant 0 : index
    %c0_86 = arith.constant 0 : index
    %291 = vector.load %arg13[%c0_84, %c0_85, %c0_86] : memref<2x2x32xf32, #tpu.memory_space<vmem>>, vector<1x2x32xf32>
    %292 = vector.shape_cast %291 : vector<1x2x32xf32> to vector<2x32xf32>
    %293 = vector.shape_cast %290 : vector<2x32xf32> to vector<1x2x32xf32>
    tpu.vector_store %arg13[%c0_84, %c0_85, %c0_86], %293 {strides = array<i32>} : memref<2x2x32xf32, #tpu.memory_space<vmem>>, vector<1x2x32xf32>,
    %c0_87 = arith.constant 0 : index
    %c0_88 = arith.constant 0 : index
    %294 = vector.load %arg6[%c0_87, %c0_88] : memref<128x512xf32, #tpu.memory_space<vmem>>, vector<128x512xf32>
    %c0_89 = arith.constant 0 : index
    %c0_90 = arith.constant 0 : index
    %295 = vector.load %arg7[%c0_89, %c0_90] : memref<128x512xf32, #tpu.memory_space<vmem>>, vector<128x512xf32>
    %c0_91 = arith.constant 0 : index
    %c0_92 = arith.constant 0 : index
    %296 = vector.load %arg8[%c0_91, %c0_92] : memref<1x512xf32, #tpu.memory_space<vmem>>, vector<1x512xf32>
    %c0_93 = arith.constant 0 : index
    %c0_94 = arith.constant 0 : index
    %c0_95 = arith.constant 0 : index
    %297 = vector.load %arg15[%c0_93, %c0_94, %c0_95] : memref<8x8x128xf32, #tpu.memory_space<vmem>>, vector<8x8x128xf32>
    %298 = vector.shape_cast %297 : vector<8x8x128xf32> to vector<64x128xf32>
    %cst_96 = arith.constant dense<0.000000e+00> : vector<64x512xf32>
    %299 = tpu.matmul %298, %294, %cst_96 {dimension_numbers = #tpu.dot_dimension_numbers<[1], [0], [0], [1], [0, 0, 1, 1], [], []>} : vector<64x128xf32>, vector<128x512xf32>, vector<64x512xf32> -> vector<64x512xf32>
    %300 = vector.broadcast %296 : vector<1x512xf32> to vector<64x512xf32>
    %301 = arith.addf %299, %300 : vector<64x512xf32>
    %302 = vector.shape_cast %301 : vector<64x512xf32> to vector<8x8x512xf32>
    %c0_97 = arith.constant 0 : index
    %c0_98 = arith.constant 0 : index
    %c0_99 = arith.constant 0 : index
    %303 = vector.load %arg14[%c0_97, %c0_98, %c0_99] : memref<8x8x512xf32, #tpu.memory_space<vmem>>, vector<8x8x512xf32>
    tpu.vector_store %arg14[%c0_97, %c0_98, %c0_99], %302 {strides = array<i32>} : memref<8x8x512xf32, #tpu.memory_space<vmem>>, vector<8x8x512xf32>,
    %c1 = arith.constant 1 : index
    %c0_100 = arith.constant 0 : index
    %c0_101 = arith.constant 0 : index
    %304 = vector.load %arg1[%c1, %c0_100, %c0_101] : memref<2x8x128xf32, #tpu.memory_space<vmem>>, vector<1x8x128xf32>
    %305 = vector.shape_cast %304 : vector<1x8x128xf32> to vector<8x128xf32>
    %c1_102 = arith.constant 1 : index
    %c0_103 = arith.constant 0 : index
    %c0_104 = arith.constant 0 : index
    %306 = vector.load %arg2[%c1_102, %c0_103, %c0_104] : memref<2x8x128xf32, #tpu.memory_space<vmem>>, vector<1x8x128xf32>
    %307 = vector.shape_cast %306 : vector<1x8x128xf32> to vector<8x128xf32>
    %c0_i32_105 = arith.constant 0 : i32
    %308 = arith.index_cast %c0_i32_105 : i32 to index
    %c0_106 = arith.constant 0 : index
    %c0_107 = arith.constant 0 : index
    %309 = vector.load %arg14[%308, %c0_106, %c0_107] : memref<8x8x512xf32, #tpu.memory_space<vmem>>, vector<1x8x512xf32>
    %310 = vector.shape_cast %309 : vector<1x8x512xf32> to vector<8x512xf32>
    %cst_108 = arith.constant dense<0.000000e+00> : vector<8x512xf32>
    %311 = tpu.matmul %305, %295, %cst_108 {dimension_numbers = #tpu.dot_dimension_numbers<[1], [0], [0], [1], [0, 0, 1, 1], [], []>} : vector<8x128xf32>, vector<128x512xf32>, vector<8x512xf32> -> vector<8x512xf32>
    %312 = arith.addf %310, %311 : vector<8x512xf32>
    %313 = vector.extract_strided_slice %312 {offsets = [0, 0], sizes = [8, 128], strides = [1, 1]} : vector<8x512xf32> to vector<8x128xf32>
    %314 = arith.negf %313 : vector<8x128xf32>
    %315 = math.exp %314 : vector<8x128xf32>
    %cst_109 = arith.constant 1.000000e+00 : f32
    %316 = vector.broadcast %cst_109 : f32 to vector<8x128xf32>
    %317 = arith.addf %316, %315 : vector<8x128xf32>
    %318 = arith.divf %316, %317 : vector<8x128xf32>
    %319 = vector.extract_strided_slice %312 {offsets = [0, 128], sizes = [8, 128], strides = [1, 1]} : vector<8x512xf32> to vector<8x128xf32>
    %320 = arith.negf %319 : vector<8x128xf32>
    %321 = math.exp %320 : vector<8x128xf32>
    %cst_110 = arith.constant 1.000000e+00 : f32
    %322 = vector.broadcast %cst_110 : f32 to vector<8x128xf32>
    %323 = arith.addf %322, %321 : vector<8x128xf32>
    %324 = arith.divf %322, %323 : vector<8x128xf32>
    %325 = vector.extract_strided_slice %312 {offsets = [0, 256], sizes = [8, 128], strides = [1, 1]} : vector<8x512xf32> to vector<8x128xf32>
    %326 = math.tanh %325 : vector<8x128xf32>
    %327 = vector.extract_strided_slice %312 {offsets = [0, 384], sizes = [8, 128], strides = [1, 1]} : vector<8x512xf32> to vector<8x128xf32>
    %328 = arith.negf %327 : vector<8x128xf32>
    %329 = math.exp %328 : vector<8x128xf32>
    %cst_111 = arith.constant 1.000000e+00 : f32
    %330 = vector.broadcast %cst_111 : f32 to vector<8x128xf32>
    %331 = arith.addf %330, %329 : vector<8x128xf32>
    %332 = arith.divf %330, %331 : vector<8x128xf32>
    %333 = arith.mulf %324, %307 : vector<8x128xf32>
    %334 = arith.mulf %318, %326 : vector<8x128xf32>
    %335 = arith.addf %333, %334 : vector<8x128xf32>
    %336 = math.tanh %335 : vector<8x128xf32>
    %337 = arith.mulf %332, %336 : vector<8x128xf32>
    %c1_i32_112 = arith.constant 1 : i32
    %338 = arith.index_cast %c1_i32_112 : i32 to index
    %c0_113 = arith.constant 0 : index
    %c0_114 = arith.constant 0 : index
    %339 = vector.load %arg14[%338, %c0_113, %c0_114] : memref<8x8x512xf32, #tpu.memory_space<vmem>>, vector<1x8x512xf32>
    %340 = vector.shape_cast %339 : vector<1x8x512xf32> to vector<8x512xf32>
    %cst_115 = arith.constant dense<0.000000e+00> : vector<8x512xf32>
    %341 = tpu.matmul %337, %295, %cst_115 {dimension_numbers = #tpu.dot_dimension_numbers<[1], [0], [0], [1], [0, 0, 1, 1], [], []>} : vector<8x128xf32>, vector<128x512xf32>, vector<8x512xf32> -> vector<8x512xf32>
    %342 = arith.addf %340, %341 : vector<8x512xf32>
    %343 = vector.extract_strided_slice %342 {offsets = [0, 0], sizes = [8, 128], strides = [1, 1]} : vector<8x512xf32> to vector<8x128xf32>
    %344 = arith.negf %343 : vector<8x128xf32>
    %345 = math.exp %344 : vector<8x128xf32>
    %cst_116 = arith.constant 1.000000e+00 : f32
    %346 = vector.broadcast %cst_116 : f32 to vector<8x128xf32>
    %347 = arith.addf %346, %345 : vector<8x128xf32>
    %348 = arith.divf %346, %347 : vector<8x128xf32>
    %349 = vector.extract_strided_slice %342 {offsets = [0, 128], sizes = [8, 128], strides = [1, 1]} : vector<8x512xf32> to vector<8x128xf32>
    %350 = arith.negf %349 : vector<8x128xf32>
    %351 = math.exp %350 : vector<8x128xf32>
    %cst_117 = arith.constant 1.000000e+00 : f32
    %352 = vector.broadcast %cst_117 : f32 to vector<8x128xf32>
    %353 = arith.addf %352, %351 : vector<8x128xf32>
    %354 = arith.divf %352, %353 : vector<8x128xf32>
    %355 = vector.extract_strided_slice %342 {offsets = [0, 256], sizes = [8, 128], strides = [1, 1]} : vector<8x512xf32> to vector<8x128xf32>
    %356 = math.tanh %355 : vector<8x128xf32>
    %357 = vector.extract_strided_slice %342 {offsets = [0, 384], sizes = [8, 128], strides = [1, 1]} : vector<8x512xf32> to vector<8x128xf32>
    %358 = arith.negf %357 : vector<8x128xf32>
    %359 = math.exp %358 : vector<8x128xf32>
    %cst_118 = arith.constant 1.000000e+00 : f32
    %360 = vector.broadcast %cst_118 : f32 to vector<8x128xf32>
    %361 = arith.addf %360, %359 : vector<8x128xf32>
    %362 = arith.divf %360, %361 : vector<8x128xf32>
    %363 = arith.mulf %354, %335 : vector<8x128xf32>
    %364 = arith.mulf %348, %356 : vector<8x128xf32>
    %365 = arith.addf %363, %364 : vector<8x128xf32>
    %366 = math.tanh %365 : vector<8x128xf32>
    %367 = arith.mulf %362, %366 : vector<8x128xf32>
    %c2_i32_119 = arith.constant 2 : i32
    %368 = arith.index_cast %c2_i32_119 : i32 to index
    %c0_120 = arith.constant 0 : index
    %c0_121 = arith.constant 0 : index
    %369 = vector.load %arg14[%368, %c0_120, %c0_121] : memref<8x8x512xf32, #tpu.memory_space<vmem>>, vector<1x8x512xf32>
    %370 = vector.shape_cast %369 : vector<1x8x512xf32> to vector<8x512xf32>
    %cst_122 = arith.constant dense<0.000000e+00> : vector<8x512xf32>
    %371 = tpu.matmul %367, %295, %cst_122 {dimension_numbers = #tpu.dot_dimension_numbers<[1], [0], [0], [1], [0, 0, 1, 1], [], []>} : vector<8x128xf32>, vector<128x512xf32>, vector<8x512xf32> -> vector<8x512xf32>
    %372 = arith.addf %370, %371 : vector<8x512xf32>
    %373 = vector.extract_strided_slice %372 {offsets = [0, 0], sizes = [8, 128], strides = [1, 1]} : vector<8x512xf32> to vector<8x128xf32>
    %374 = arith.negf %373 : vector<8x128xf32>
    %375 = math.exp %374 : vector<8x128xf32>
    %cst_123 = arith.constant 1.000000e+00 : f32
    %376 = vector.broadcast %cst_123 : f32 to vector<8x128xf32>
    %377 = arith.addf %376, %375 : vector<8x128xf32>
    %378 = arith.divf %376, %377 : vector<8x128xf32>
    %379 = vector.extract_strided_slice %372 {offsets = [0, 128], sizes = [8, 128], strides = [1, 1]} : vector<8x512xf32> to vector<8x128xf32>
    %380 = arith.negf %379 : vector<8x128xf32>
    %381 = math.exp %380 : vector<8x128xf32>
    %cst_124 = arith.constant 1.000000e+00 : f32
    %382 = vector.broadcast %cst_124 : f32 to vector<8x128xf32>
    %383 = arith.addf %382, %381 : vector<8x128xf32>
    %384 = arith.divf %382, %383 : vector<8x128xf32>
    %385 = vector.extract_strided_slice %372 {offsets = [0, 256], sizes = [8, 128], strides = [1, 1]} : vector<8x512xf32> to vector<8x128xf32>
    %386 = math.tanh %385 : vector<8x128xf32>
    %387 = vector.extract_strided_slice %372 {offsets = [0, 384], sizes = [8, 128], strides = [1, 1]} : vector<8x512xf32> to vector<8x128xf32>
    %388 = arith.negf %387 : vector<8x128xf32>
    %389 = math.exp %388 : vector<8x128xf32>
    %cst_125 = arith.constant 1.000000e+00 : f32
    %390 = vector.broadcast %cst_125 : f32 to vector<8x128xf32>
    %391 = arith.addf %390, %389 : vector<8x128xf32>
    %392 = arith.divf %390, %391 : vector<8x128xf32>
    %393 = arith.mulf %384, %365 : vector<8x128xf32>
    %394 = arith.mulf %378, %386 : vector<8x128xf32>
    %395 = arith.addf %393, %394 : vector<8x128xf32>
    %396 = math.tanh %395 : vector<8x128xf32>
    %397 = arith.mulf %392, %396 : vector<8x128xf32>
    %c3_i32_126 = arith.constant 3 : i32
    %398 = arith.index_cast %c3_i32_126 : i32 to index
    %c0_127 = arith.constant 0 : index
    %c0_128 = arith.constant 0 : index
    %399 = vector.load %arg14[%398, %c0_127, %c0_128] : memref<8x8x512xf32, #tpu.memory_space<vmem>>, vector<1x8x512xf32>
    %400 = vector.shape_cast %399 : vector<1x8x512xf32> to vector<8x512xf32>
    %cst_129 = arith.constant dense<0.000000e+00> : vector<8x512xf32>
    %401 = tpu.matmul %397, %295, %cst_129 {dimension_numbers = #tpu.dot_dimension_numbers<[1], [0], [0], [1], [0, 0, 1, 1], [], []>} : vector<8x128xf32>, vector<128x512xf32>, vector<8x512xf32> -> vector<8x512xf32>
    %402 = arith.addf %400, %401 : vector<8x512xf32>
    %403 = vector.extract_strided_slice %402 {offsets = [0, 0], sizes = [8, 128], strides = [1, 1]} : vector<8x512xf32> to vector<8x128xf32>
    %404 = arith.negf %403 : vector<8x128xf32>
    %405 = math.exp %404 : vector<8x128xf32>
    %cst_130 = arith.constant 1.000000e+00 : f32
    %406 = vector.broadcast %cst_130 : f32 to vector<8x128xf32>
    %407 = arith.addf %406, %405 : vector<8x128xf32>
    %408 = arith.divf %406, %407 : vector<8x128xf32>
    %409 = vector.extract_strided_slice %402 {offsets = [0, 128], sizes = [8, 128], strides = [1, 1]} : vector<8x512xf32> to vector<8x128xf32>
    %410 = arith.negf %409 : vector<8x128xf32>
    %411 = math.exp %410 : vector<8x128xf32>
    %cst_131 = arith.constant 1.000000e+00 : f32
    %412 = vector.broadcast %cst_131 : f32 to vector<8x128xf32>
    %413 = arith.addf %412, %411 : vector<8x128xf32>
    %414 = arith.divf %412, %413 : vector<8x128xf32>
    %415 = vector.extract_strided_slice %402 {offsets = [0, 256], sizes = [8, 128], strides = [1, 1]} : vector<8x512xf32> to vector<8x128xf32>
    %416 = math.tanh %415 : vector<8x128xf32>
    %417 = vector.extract_strided_slice %402 {offsets = [0, 384], sizes = [8, 128], strides = [1, 1]} : vector<8x512xf32> to vector<8x128xf32>
    %418 = arith.negf %417 : vector<8x128xf32>
    %419 = math.exp %418 : vector<8x128xf32>
    %cst_132 = arith.constant 1.000000e+00 : f32
    %420 = vector.broadcast %cst_132 : f32 to vector<8x128xf32>
    %421 = arith.addf %420, %419 : vector<8x128xf32>
    %422 = arith.divf %420, %421 : vector<8x128xf32>
    %423 = arith.mulf %414, %395 : vector<8x128xf32>
    %424 = arith.mulf %408, %416 : vector<8x128xf32>
    %425 = arith.addf %423, %424 : vector<8x128xf32>
    %426 = math.tanh %425 : vector<8x128xf32>
    %427 = arith.mulf %422, %426 : vector<8x128xf32>
    %c4_i32_133 = arith.constant 4 : i32
    %428 = arith.index_cast %c4_i32_133 : i32 to index
    %c0_134 = arith.constant 0 : index
    %c0_135 = arith.constant 0 : index
    %429 = vector.load %arg14[%428, %c0_134, %c0_135] : memref<8x8x512xf32, #tpu.memory_space<vmem>>, vector<1x8x512xf32>
    %430 = vector.shape_cast %429 : vector<1x8x512xf32> to vector<8x512xf32>
    %cst_136 = arith.constant dense<0.000000e+00> : vector<8x512xf32>
    %431 = tpu.matmul %427, %295, %cst_136 {dimension_numbers = #tpu.dot_dimension_numbers<[1], [0], [0], [1], [0, 0, 1, 1], [], []>} : vector<8x128xf32>, vector<128x512xf32>, vector<8x512xf32> -> vector<8x512xf32>
    %432 = arith.addf %430, %431 : vector<8x512xf32>
    %433 = vector.extract_strided_slice %432 {offsets = [0, 0], sizes = [8, 128], strides = [1, 1]} : vector<8x512xf32> to vector<8x128xf32>
    %434 = arith.negf %433 : vector<8x128xf32>
    %435 = math.exp %434 : vector<8x128xf32>
    %cst_137 = arith.constant 1.000000e+00 : f32
    %436 = vector.broadcast %cst_137 : f32 to vector<8x128xf32>
    %437 = arith.addf %436, %435 : vector<8x128xf32>
    %438 = arith.divf %436, %437 : vector<8x128xf32>
    %439 = vector.extract_strided_slice %432 {offsets = [0, 128], sizes = [8, 128], strides = [1, 1]} : vector<8x512xf32> to vector<8x128xf32>
    %440 = arith.negf %439 : vector<8x128xf32>
    %441 = math.exp %440 : vector<8x128xf32>
    %cst_138 = arith.constant 1.000000e+00 : f32
    %442 = vector.broadcast %cst_138 : f32 to vector<8x128xf32>
    %443 = arith.addf %442, %441 : vector<8x128xf32>
    %444 = arith.divf %442, %443 : vector<8x128xf32>
    %445 = vector.extract_strided_slice %432 {offsets = [0, 256], sizes = [8, 128], strides = [1, 1]} : vector<8x512xf32> to vector<8x128xf32>
    %446 = math.tanh %445 : vector<8x128xf32>
    %447 = vector.extract_strided_slice %432 {offsets = [0, 384], sizes = [8, 128], strides = [1, 1]} : vector<8x512xf32> to vector<8x128xf32>
    %448 = arith.negf %447 : vector<8x128xf32>
    %449 = math.exp %448 : vector<8x128xf32>
    %cst_139 = arith.constant 1.000000e+00 : f32
    %450 = vector.broadcast %cst_139 : f32 to vector<8x128xf32>
    %451 = arith.addf %450, %449 : vector<8x128xf32>
    %452 = arith.divf %450, %451 : vector<8x128xf32>
    %453 = arith.mulf %444, %425 : vector<8x128xf32>
    %454 = arith.mulf %438, %446 : vector<8x128xf32>
    %455 = arith.addf %453, %454 : vector<8x128xf32>
    %456 = math.tanh %455 : vector<8x128xf32>
    %457 = arith.mulf %452, %456 : vector<8x128xf32>
    %c5_i32_140 = arith.constant 5 : i32
    %458 = arith.index_cast %c5_i32_140 : i32 to index
    %c0_141 = arith.constant 0 : index
    %c0_142 = arith.constant 0 : index
    %459 = vector.load %arg14[%458, %c0_141, %c0_142] : memref<8x8x512xf32, #tpu.memory_space<vmem>>, vector<1x8x512xf32>
    %460 = vector.shape_cast %459 : vector<1x8x512xf32> to vector<8x512xf32>
    %cst_143 = arith.constant dense<0.000000e+00> : vector<8x512xf32>
    %461 = tpu.matmul %457, %295, %cst_143 {dimension_numbers = #tpu.dot_dimension_numbers<[1], [0], [0], [1], [0, 0, 1, 1], [], []>} : vector<8x128xf32>, vector<128x512xf32>, vector<8x512xf32> -> vector<8x512xf32>
    %462 = arith.addf %460, %461 : vector<8x512xf32>
    %463 = vector.extract_strided_slice %462 {offsets = [0, 0], sizes = [8, 128], strides = [1, 1]} : vector<8x512xf32> to vector<8x128xf32>
    %464 = arith.negf %463 : vector<8x128xf32>
    %465 = math.exp %464 : vector<8x128xf32>
    %cst_144 = arith.constant 1.000000e+00 : f32
    %466 = vector.broadcast %cst_144 : f32 to vector<8x128xf32>
    %467 = arith.addf %466, %465 : vector<8x128xf32>
    %468 = arith.divf %466, %467 : vector<8x128xf32>
    %469 = vector.extract_strided_slice %462 {offsets = [0, 128], sizes = [8, 128], strides = [1, 1]} : vector<8x512xf32> to vector<8x128xf32>
    %470 = arith.negf %469 : vector<8x128xf32>
    %471 = math.exp %470 : vector<8x128xf32>
    %cst_145 = arith.constant 1.000000e+00 : f32
    %472 = vector.broadcast %cst_145 : f32 to vector<8x128xf32>
    %473 = arith.addf %472, %471 : vector<8x128xf32>
    %474 = arith.divf %472, %473 : vector<8x128xf32>
    %475 = vector.extract_strided_slice %462 {offsets = [0, 256], sizes = [8, 128], strides = [1, 1]} : vector<8x512xf32> to vector<8x128xf32>
    %476 = math.tanh %475 : vector<8x128xf32>
    %477 = vector.extract_strided_slice %462 {offsets = [0, 384], sizes = [8, 128], strides = [1, 1]} : vector<8x512xf32> to vector<8x128xf32>
    %478 = arith.negf %477 : vector<8x128xf32>
    %479 = math.exp %478 : vector<8x128xf32>
    %cst_146 = arith.constant 1.000000e+00 : f32
    %480 = vector.broadcast %cst_146 : f32 to vector<8x128xf32>
    %481 = arith.addf %480, %479 : vector<8x128xf32>
    %482 = arith.divf %480, %481 : vector<8x128xf32>
    %483 = arith.mulf %474, %455 : vector<8x128xf32>
    %484 = arith.mulf %468, %476 : vector<8x128xf32>
    %485 = arith.addf %483, %484 : vector<8x128xf32>
    %486 = math.tanh %485 : vector<8x128xf32>
    %487 = arith.mulf %482, %486 : vector<8x128xf32>
    %c6_i32_147 = arith.constant 6 : i32
    %488 = arith.index_cast %c6_i32_147 : i32 to index
    %c0_148 = arith.constant 0 : index
    %c0_149 = arith.constant 0 : index
    %489 = vector.load %arg14[%488, %c0_148, %c0_149] : memref<8x8x512xf32, #tpu.memory_space<vmem>>, vector<1x8x512xf32>
    %490 = vector.shape_cast %489 : vector<1x8x512xf32> to vector<8x512xf32>
    %cst_150 = arith.constant dense<0.000000e+00> : vector<8x512xf32>
    %491 = tpu.matmul %487, %295, %cst_150 {dimension_numbers = #tpu.dot_dimension_numbers<[1], [0], [0], [1], [0, 0, 1, 1], [], []>} : vector<8x128xf32>, vector<128x512xf32>, vector<8x512xf32> -> vector<8x512xf32>
    %492 = arith.addf %490, %491 : vector<8x512xf32>
    %493 = vector.extract_strided_slice %492 {offsets = [0, 0], sizes = [8, 128], strides = [1, 1]} : vector<8x512xf32> to vector<8x128xf32>
    %494 = arith.negf %493 : vector<8x128xf32>
    %495 = math.exp %494 : vector<8x128xf32>
    %cst_151 = arith.constant 1.000000e+00 : f32
    %496 = vector.broadcast %cst_151 : f32 to vector<8x128xf32>
    %497 = arith.addf %496, %495 : vector<8x128xf32>
    %498 = arith.divf %496, %497 : vector<8x128xf32>
    %499 = vector.extract_strided_slice %492 {offsets = [0, 128], sizes = [8, 128], strides = [1, 1]} : vector<8x512xf32> to vector<8x128xf32>
    %500 = arith.negf %499 : vector<8x128xf32>
    %501 = math.exp %500 : vector<8x128xf32>
    %cst_152 = arith.constant 1.000000e+00 : f32
    %502 = vector.broadcast %cst_152 : f32 to vector<8x128xf32>
    %503 = arith.addf %502, %501 : vector<8x128xf32>
    %504 = arith.divf %502, %503 : vector<8x128xf32>
    %505 = vector.extract_strided_slice %492 {offsets = [0, 256], sizes = [8, 128], strides = [1, 1]} : vector<8x512xf32> to vector<8x128xf32>
    %506 = math.tanh %505 : vector<8x128xf32>
    %507 = vector.extract_strided_slice %492 {offsets = [0, 384], sizes = [8, 128], strides = [1, 1]} : vector<8x512xf32> to vector<8x128xf32>
    %508 = arith.negf %507 : vector<8x128xf32>
    %509 = math.exp %508 : vector<8x128xf32>
    %cst_153 = arith.constant 1.000000e+00 : f32
    %510 = vector.broadcast %cst_153 : f32 to vector<8x128xf32>
    %511 = arith.addf %510, %509 : vector<8x128xf32>
    %512 = arith.divf %510, %511 : vector<8x128xf32>
    %513 = arith.mulf %504, %485 : vector<8x128xf32>
    %514 = arith.mulf %498, %506 : vector<8x128xf32>
    %515 = arith.addf %513, %514 : vector<8x128xf32>
    %516 = math.tanh %515 : vector<8x128xf32>
    %517 = arith.mulf %512, %516 : vector<8x128xf32>
    %c7_i32_154 = arith.constant 7 : i32
    %518 = arith.index_cast %c7_i32_154 : i32 to index
    %c0_155 = arith.constant 0 : index
    %c0_156 = arith.constant 0 : index
    %519 = vector.load %arg14[%518, %c0_155, %c0_156] : memref<8x8x512xf32, #tpu.memory_space<vmem>>, vector<1x8x512xf32>
    %520 = vector.shape_cast %519 : vector<1x8x512xf32> to vector<8x512xf32>
    %cst_157 = arith.constant dense<0.000000e+00> : vector<8x512xf32>
    %521 = tpu.matmul %517, %295, %cst_157 {dimension_numbers = #tpu.dot_dimension_numbers<[1], [0], [0], [1], [0, 0, 1, 1], [], []>} : vector<8x128xf32>, vector<128x512xf32>, vector<8x512xf32> -> vector<8x512xf32>
    %522 = arith.addf %520, %521 : vector<8x512xf32>
    %523 = vector.extract_strided_slice %522 {offsets = [0, 0], sizes = [8, 128], strides = [1, 1]} : vector<8x512xf32> to vector<8x128xf32>
    %524 = arith.negf %523 : vector<8x128xf32>
    %525 = math.exp %524 : vector<8x128xf32>
    %cst_158 = arith.constant 1.000000e+00 : f32
    %526 = vector.broadcast %cst_158 : f32 to vector<8x128xf32>
    %527 = arith.addf %526, %525 : vector<8x128xf32>
    %528 = arith.divf %526, %527 : vector<8x128xf32>
    %529 = vector.extract_strided_slice %522 {offsets = [0, 128], sizes = [8, 128], strides = [1, 1]} : vector<8x512xf32> to vector<8x128xf32>
    %530 = arith.negf %529 : vector<8x128xf32>
    %531 = math.exp %530 : vector<8x128xf32>
    %cst_159 = arith.constant 1.000000e+00 : f32
    %532 = vector.broadcast %cst_159 : f32 to vector<8x128xf32>
    %533 = arith.addf %532, %531 : vector<8x128xf32>
    %534 = arith.divf %532, %533 : vector<8x128xf32>
    %535 = vector.extract_strided_slice %522 {offsets = [0, 256], sizes = [8, 128], strides = [1, 1]} : vector<8x512xf32> to vector<8x128xf32>
    %536 = math.tanh %535 : vector<8x128xf32>
    %537 = vector.extract_strided_slice %522 {offsets = [0, 384], sizes = [8, 128], strides = [1, 1]} : vector<8x512xf32> to vector<8x128xf32>
    %538 = arith.negf %537 : vector<8x128xf32>
    %539 = math.exp %538 : vector<8x128xf32>
    %cst_160 = arith.constant 1.000000e+00 : f32
    %540 = vector.broadcast %cst_160 : f32 to vector<8x128xf32>
    %541 = arith.addf %540, %539 : vector<8x128xf32>
    %542 = arith.divf %540, %541 : vector<8x128xf32>
    %543 = arith.mulf %534, %515 : vector<8x128xf32>
    %544 = arith.mulf %528, %536 : vector<8x128xf32>
    %545 = arith.addf %543, %544 : vector<8x128xf32>
    %546 = math.tanh %545 : vector<8x128xf32>
    %547 = arith.mulf %542, %546 : vector<8x128xf32>
    %c8_i32_161 = arith.constant 8 : i32
    %548 = vector.extract_strided_slice %547 {offsets = [0, 0], sizes = [2, 32], strides = [1, 1]} : vector<8x128xf32> to vector<2x32xf32>
    %c1_162 = arith.constant 1 : index
    %c0_163 = arith.constant 0 : index
    %c0_164 = arith.constant 0 : index
    %549 = vector.load %arg12[%c1_162, %c0_163, %c0_164] : memref<2x2x32xf32, #tpu.memory_space<vmem>>, vector<1x2x32xf32>
    %550 = vector.shape_cast %549 : vector<1x2x32xf32> to vector<2x32xf32>
    %551 = vector.shape_cast %548 : vector<2x32xf32> to vector<1x2x32xf32>
    tpu.vector_store %arg12[%c1_162, %c0_163, %c0_164], %551 {strides = array<i32>} : memref<2x2x32xf32, #tpu.memory_space<vmem>>, vector<1x2x32xf32>,
    %552 = vector.extract_strided_slice %545 {offsets = [0, 0], sizes = [2, 32], strides = [1, 1]} : vector<8x128xf32> to vector<2x32xf32>
    %c1_165 = arith.constant 1 : index
    %c0_166 = arith.constant 0 : index
    %c0_167 = arith.constant 0 : index
    %553 = vector.load %arg13[%c1_165, %c0_166, %c0_167] : memref<2x2x32xf32, #tpu.memory_space<vmem>>, vector<1x2x32xf32>
    %554 = vector.shape_cast %553 : vector<1x2x32xf32> to vector<2x32xf32>
    %555 = vector.shape_cast %552 : vector<2x32xf32> to vector<1x2x32xf32>
    tpu.vector_store %arg13[%c1_165, %c0_166, %c0_167], %555 {strides = array<i32>} : memref<2x2x32xf32, #tpu.memory_space<vmem>>, vector<1x2x32xf32>,
    %c0_168 = arith.constant 0 : index
    %c0_169 = arith.constant 0 : index
    %556 = vector.load %arg9[%c0_168, %c0_169] : memref<128x128xf32, #tpu.memory_space<vmem>>, vector<128x128xf32>
    %cst_170 = arith.constant dense<0.000000e+00> : vector<8x128xf32>
    %557 = tpu.matmul %547, %556, %cst_170 {dimension_numbers = #tpu.dot_dimension_numbers<[1], [0], [0], [1], [0, 0, 1, 1], [], []>} : vector<8x128xf32>, vector<128x128xf32>, vector<8x128xf32> -> vector<8x128xf32>
    %c0_171 = arith.constant 0 : index
    %c0_172 = arith.constant 0 : index
    %558 = vector.load %arg10[%c0_171, %c0_172] : memref<1x128xf32, #tpu.memory_space<vmem>>, vector<1x128xf32>
    %559 = vector.broadcast %558 : vector<1x128xf32> to vector<8x128xf32>
    %560 = arith.addf %557, %559 : vector<8x128xf32>
    %561 = vector.extract_strided_slice %560 {offsets = [0, 0], sizes = [2, 8], strides = [1, 1]} : vector<8x128xf32> to vector<2x8xf32>
    %c0_173 = arith.constant 0 : index
    %c0_174 = arith.constant 0 : index
    %562 = vector.load %arg11[%c0_173, %c0_174] : memref<2x8xf32, #tpu.memory_space<vmem>>, vector<2x8xf32>
    tpu.vector_store %arg11[%c0_173, %c0_174], %561 {strides = array<i32>} : memref<2x8xf32, #tpu.memory_space<vmem>>, vector<2x8xf32>,
    return
  }
}

</mosaic_0001>

<bundles_post_ra>
// kernel: lstm_net_forward.1
= control target key start
LH: loop header
LB: loop body
LE: loop exit
PB: predicated region body
PF: predicated region fallthrough
CT: control target
= control target key end

     0   :  { %19 = vsyncpa [#allocation5], 0  ;;  %s6734_s0 = inlined_call_operand.vmem [shape: f32[8,8,128], index: 0, kind: input, shape index: {}]   ;;  %s6735_s1 = inlined_call_operand.vmem [shape: f32[2,8,128], index: 1, kind: input, shape index: {}]   ;;  %s6736_s2 = inlined_call_operand.vmem [shape: f32[2,8,128], index: 2, kind: input, shape index: {}]   ;;  %s6737_s3 = inlined_call_operand.hbm [shape: f32[128,512], index: 3, kind: input, shape index: {}]   ;;  %s6738_s4 = inlined_call_operand.hbm [shape: f32[128,512], index: 4, kind: input, shape index: {}]   ;;  %s6739_s5 = inlined_call_operand.vmem [shape: f32[1,512], index: 5, kind: input, shape index: {}]   ;;  %s6740_s6 = inlined_call_operand.hbm [shape: f32[128,512], index: 6, kind: input, shape index: {}]   ;;  %s6741_s7 = inlined_call_operand.hbm [shape: f32[128,512], index: 7, kind: input, shape index: {}]   ;;  %s6742_s8 = inlined_call_operand.vmem [shape: f32[1,512], index: 8, kind: input, shape index: {}]   ;;  %s6743_s9 = inlined_call_operand.vmem [shape: f32[128,128], index: 9, kind: input, shape index: {}]   ;;  %s6744_s10 = inlined_call_operand.vmem [shape: f32[1,128], index: 10, kind: input, shape index: {}]   ;;  %s6745_s11 = inlined_call_operand.hbm [shape: f32[2,8], index: 11, kind: output, shape index: {0}]   ;;  %s6746_s12 = inlined_call_operand.hbm [shape: f32[2,2,32], index: 12, kind: output, shape index: {1}]   ;;  %s6747_s13 = inlined_call_operand.hbm [shape: f32[2,2,32], index: 13, kind: output, shape index: {2}]  }
   0x1   :  { %20 = vsyncpa [#allocation8], 0 }
   0x2   :  { %21 = vsyncpa [#allocation11], 0 }
   0x3   :  { %22 = vsyncpa [#allocation6], 0 }
   0x4   :  { %23 = vsyncpa [#allocation14], 0  ;;  %s4541_s25 = smov [#allocation7]   ;;  %s4542_s27 = smov [#allocation4]  }
   0x5   :  { %s47_s26 = sshll.u32 %s4541_s25, 4  ;;  %s35_s28 = sshll.u32 %s4542_s27, 4  ;;  %s48_s26 = int_to_ptr.vmem [resolvable:$true] %s47_s26  ;;  %s36_s28 = int_to_ptr.vmem [resolvable:$true] %s35_s28 }
   0x6   :  { %s4399_s29 = scalar_lea.vmem %s48_s26, 8192  ;;  %p4404_p1 = scmp.lt.s32.totalorder %s48_s26, %s48_s26 }
   0x7   :  { %p4400_p0 = scmp.ne.s32.totalorder %s48_s26, %s4399_s29  ;;  %p4405_p2 = scmp.lt.s32.totalorder %s4399_s29, %s4399_s29 }
   0x9   :  { %p4406_p3 = por %p4405_p2, %p4404_p1 }
   0xb   :  { %p4407_p4 = pnand %p4406_p3, %p4400_p0 }
   0xd   :  { %4410 = shalt.err (!%p4407_p4)
}
   0xe   :  { %s4543_s30 = smov 512   ;;  %s4544_s14 = smov 32  }
   0xf   :  { %53 = dma.hbm_to_vmem [thread:$0]  %s6738_s4, 8192, %s48_s26, [#allocation8], %s4543_s30, %s4543_s30, %s4544_s14  }
  0x10   :  { %s4419_s17 = scalar_lea.vmem %s36_s28, 8192  ;;  %p4424_p6 = scmp.lt.s32.totalorder %s36_s28, %s36_s28 }
  0x11   :  { %p4420_p5 = scmp.ne.s32.totalorder %s36_s28, %s4419_s17  ;;  %p4425_p7 = scmp.lt.s32.totalorder %s4419_s17, %s4419_s17 }
  0x13   :  { %p4426_p8 = por %p4425_p7, %p4424_p6 }
  0x15   :  { %p4427_p9 = pnand %p4426_p8, %p4420_p5 }
  0x17   :  { %4430 = shalt.err (!%p4427_p9)
}
  0x18   :  { %41 = dma.hbm_to_vmem [thread:$0]  %s6737_s3, 8192, %s36_s28, [#allocation5], %s4543_s30, %s4543_s30, %s4544_s14  }
  0x19   :  { %s4545_s20 = smov [#allocation9]   ;;  %s4546_s22 = smov [#allocation10]  }
  0x1a   :  { %s61_s21 = sshll.u32 %s4545_s20, 4  ;;  %s73_s23 = sshll.u32 %s4546_s22, 4  ;;  %s62_s21 = int_to_ptr.vmem [resolvable:$true] %s61_s21  ;;  %s74_s23 = int_to_ptr.vmem [resolvable:$true] %s73_s23 }
  0x1b   :  { %s4439_s4 = scalar_lea.vmem %s62_s21, 8192  ;;  %p4444_p11 = scmp.lt.s32.totalorder %s62_s21, %s62_s21 }
  0x1c   :  { %p4440_p10 = scmp.ne.s32.totalorder %s62_s21, %s4439_s4  ;;  %p4445_p12 = scmp.lt.s32.totalorder %s4439_s4, %s4439_s4 }
  0x1e   :  { %p4446_p13 = por %p4445_p12, %p4444_p11 }
  0x20   :  { %p4447_p0 = pnand %p4446_p13, %p4440_p10 }
  0x22   :  { %4450 = shalt.err (!%p4447_p0)
}
  0x23   :  { %67 = dma.hbm_to_vmem [thread:$0]  %s6740_s6, 8192, %s62_s21, [#allocation8], %s4543_s30, %s4543_s30, %s4544_s14  }
  0x24   :  { %s4459_s3 = scalar_lea.vmem %s74_s23, 8192  ;;  %p4464_p2 = scmp.lt.s32.totalorder %s74_s23, %s74_s23 }
  0x25   :  { %p4460_p1 = scmp.ne.s32.totalorder %s74_s23, %s4459_s3  ;;  %p4465_p3 = scmp.lt.s32.totalorder %s4459_s3, %s4459_s3 }
  0x27   :  { %p4466_p4 = por %p4465_p3, %p4464_p2 }
  0x29   :  { %p4467_p5 = pnand %p4466_p4, %p4460_p1 }
  0x2b   :  { %4470 = shalt.err (!%p4467_p5)
}
  0x2c   :  { %79 = dma.hbm_to_vmem [thread:$0]  %s6741_s7, 8192, %s74_s23, [#allocation11], %s4543_s30, %s4543_s30, %s4544_s14  }
  0x2d   :  { %4531 = dma.done.wait [#allocation5], 8192  }
  0x2e   :  { %4532 = vsyncadd [#allocation5], 4294959104 }
  0x2f   :  { %4533 = dma.done.wait [#allocation8], 16384  }
  0x30   :  { %4534 = vsyncadd [#allocation8], 4294950912 }
  0x31   :  { %4535 = dma.done.wait [#allocation11], 8192  }
  0x32   :  { %4536 = vsyncadd [#allocation11], 4294959104  ;;  %v6748_v0 = vmov 0.0   ;;  %v159_v1 = vld [vmem:[#allocation4 + $0x1e8] sm:$0xff]  ;;  %v161_v2 = vld [vmem:[#allocation4 + $0x1f8] sm:$0xff]  ;;  %vm1930_vm0 = vcmask 254976  }
  0x33   :  { %320 = vmatprep.mubr.f32.mxu0 %v6748_v0  ;;  %433 = vmatprep.mubr.f32.mxu1 %v6748_v0  ;;  %v158_v3 = vld [vmem:[#allocation4 + $0x1e0] sm:$0xff]  ;;  %v160_v4 = vld [vmem:[#allocation4 + $0x1f0] sm:$0xff]  ;;  %v155_v5 = vld [vmem:[#allocation4 + $0x1c8] sm:$0xff]  ;;  %vm4548_vm1 = vmmov 0  }
  0x34   :  { %256 = vmatprep.subr.mxu0 %v159_v1  ;;  %369 = vmatprep.subr.mxu1 %v161_v2  ;;  %v157_v6 = vld [vmem:[#allocation4 + $0x1d8] sm:$0xff]  ;;  %v154_v7 = vld [vmem:[#allocation4 + $0x1c0] sm:$0xff]  ;;  %v156_v8 = vld [vmem:[#allocation4 + $0x1d0] sm:$0xff] }
  0x35   :  { %257 = vmatpush1.msra.mxu0 %v158_v3  ;;  %370 = vmatpush1.msra.mxu1 %v160_v4  ;;  %v151_v9 = vld [vmem:[#allocation4 + $0x1a8] sm:$0xff]  ;;  %v153_v10 = vld [vmem:[#allocation4 + $0x1b8] sm:$0xff]  ;;  %v150_v11 = vld [vmem:[#allocation4 + $0x1a0] sm:$0xff] }
  0x36   :  { %258 = vmatprep.subr.mxu0 %v155_v5  ;;  %371 = vmatprep.subr.mxu1 %v157_v6  ;;  %v152_v12 = vld [vmem:[#allocation4 + $0x1b0] sm:$0xff]  ;;  %v147_v13 = vld [vmem:[#allocation4 + $0x188] sm:$0xff]  ;;  %v149_v14 = vld [vmem:[#allocation4 + $0x198] sm:$0xff] }
  0x37   :  { %259 = vmatpush1.msra.mxu0 %v154_v7  ;;  %372 = vmatpush1.msra.mxu1 %v156_v8  ;;  %v146_v15 = vld [vmem:[#allocation4 + $0x180] sm:$0xff]  ;;  %v148_v16 = vld [vmem:[#allocation4 + $0x190] sm:$0xff]  ;;  %v143_v17 = vld [vmem:[#allocation4 + $0x168] sm:$0xff] }
  0x38   :  { %260 = vmatprep.subr.mxu0 %v151_v9  ;;  %373 = vmatprep.subr.mxu1 %v153_v10  ;;  %v145_v18 = vld [vmem:[#allocation4 + $0x178] sm:$0xff]  ;;  %v142_v19 = vld [vmem:[#allocation4 + $0x160] sm:$0xff]  ;;  %v144_v20 = vld [vmem:[#allocation4 + $0x170] sm:$0xff] }
  0x39   :  { %261 = vmatpush1.msra.mxu0 %v150_v11  ;;  %374 = vmatpush1.msra.mxu1 %v152_v12  ;;  %v139_v21 = vld [vmem:[#allocation4 + $0x148] sm:$0xff]  ;;  %v141_v22 = vld [vmem:[#allocation4 + $0x158] sm:$0xff]  ;;  %v138_v23 = vld [vmem:[#allocation4 + $0x140] sm:$0xff] }
  0x3a   :  { %262 = vmatprep.subr.mxu0 %v147_v13  ;;  %375 = vmatprep.subr.mxu1 %v149_v14  ;;  %v140_v24 = vld [vmem:[#allocation4 + $0x150] sm:$0xff]  ;;  %v135_v25 = vld [vmem:[#allocation4 + $0x128] sm:$0xff]  ;;  %v137_v26 = vld [vmem:[#allocation4 + $0x138] sm:$0xff] }
  0x3b   :  { %263 = vmatpush1.msra.mxu0 %v146_v15  ;;  %376 = vmatpush1.msra.mxu1 %v148_v16  ;;  %v134_v27 = vld [vmem:[#allocation4 + $0x120] sm:$0xff]  ;;  %v136_v28 = vld [vmem:[#allocation4 + $0x130] sm:$0xff]  ;;  %v131_v29 = vld [vmem:[#allocation4 + $0x108] sm:$0xff] }
  0x3c   :  { %264 = vmatprep.subr.mxu0 %v143_v17  ;;  %377 = vmatprep.subr.mxu1 %v145_v18  ;;  %v133_v30 = vld [vmem:[#allocation4 + $0x118] sm:$0xff]  ;;  %v130_v31 = vld [vmem:[#allocation4 + $0x100] sm:$0xff]  ;;  %v132_v32 = vld [vmem:[#allocation4 + $0x110] sm:$0xff] }
  0x3d   :  { %265 = vmatpush1.msra.mxu0 %v142_v19  ;;  %378 = vmatpush1.msra.mxu1 %v144_v20  ;;  %v127_v33 = vld [vmem:[#allocation4 + $0xe8] sm:$0xff]  ;;  %v129_v34 = vld [vmem:[#allocation4 + $0xf8] sm:$0xff]  ;;  %v126_v35 = vld [vmem:[#allocation4 + $0xe0] sm:$0xff] }
  0x3e   :  { %266 = vmatprep.subr.mxu0 %v139_v21  ;;  %379 = vmatprep.subr.mxu1 %v141_v22  ;;  %v128_v36 = vld [vmem:[#allocation4 + $0xf0] sm:$0xff]  ;;  %v123_v37 = vld [vmem:[#allocation4 + $0xc8] sm:$0xff]  ;;  %v125_v38 = vld [vmem:[#allocation4 + $0xd8] sm:$0xff] }
  0x3f   :  { %267 = vmatpush1.msra.mxu0 %v138_v23  ;;  %380 = vmatpush1.msra.mxu1 %v140_v24  ;;  %v122_v39 = vld [vmem:[#allocation4 + $0xc0] sm:$0xff]  ;;  %v124_v40 = vld [vmem:[#allocation4 + $0xd0] sm:$0xff]  ;;  %v119_v41 = vld [vmem:[#allocation4 + $0xa8] sm:$0xff] }
  0x40   :  { %268 = vmatprep.subr.mxu0 %v135_v25  ;;  %381 = vmatprep.subr.mxu1 %v137_v26  ;;  %v121_v42 = vld [vmem:[#allocation4 + $0xb8] sm:$0xff]  ;;  %v118_v43 = vld [vmem:[#allocation4 + $0xa0] sm:$0xff]  ;;  %v120_v44 = vld [vmem:[#allocation4 + $0xb0] sm:$0xff] }
  0x41   :  { %269 = vmatpush1.msra.mxu0 %v134_v27  ;;  %382 = vmatpush1.msra.mxu1 %v136_v28  ;;  %v115_v45 = vld [vmem:[#allocation4 + $0x88] sm:$0xff]  ;;  %v117_v46 = vld [vmem:[#allocation4 + $0x98] sm:$0xff]  ;;  %v114_v47 = vld [vmem:[#allocation4 + $0x80] sm:$0xff] }
  0x42   :  { %270 = vmatprep.subr.mxu0 %v131_v29  ;;  %383 = vmatprep.subr.mxu1 %v133_v30  ;;  %v116_v48 = vld [vmem:[#allocation4 + $0x90] sm:$0xff]  ;;  %v111_v49 = vld [vmem:[#allocation4 + $0x68] sm:$0xff]  ;;  %v113_v50 = vld [vmem:[#allocation4 + $0x78] sm:$0xff] }
  0x43   :  { %271 = vmatpush1.msra.mxu0 %v130_v31  ;;  %384 = vmatpush1.msra.mxu1 %v132_v32  ;;  %v110_v51 = vld [vmem:[#allocation4 + $0x60] sm:$0xff]  ;;  %v112_v52 = vld [vmem:[#allocation4 + $0x70] sm:$0xff]  ;;  %v107_v53 = vld [vmem:[#allocation4 + $0x48] sm:$0xff] }
  0x44   :  { %272 = vmatprep.subr.mxu0 %v127_v33  ;;  %385 = vmatprep.subr.mxu1 %v129_v34  ;;  %v109_v54 = vld [vmem:[#allocation4 + $0x58] sm:$0xff]  ;;  %v106_v55 = vld [vmem:[#allocation4 + $0x40] sm:$0xff]  ;;  %v108_v56 = vld [vmem:[#allocation4 + $0x50] sm:$0xff] }
  0x45   :  { %273 = vmatpush1.msra.mxu0 %v126_v35  ;;  %386 = vmatpush1.msra.mxu1 %v128_v36  ;;  %v103_v57 = vld [vmem:[#allocation4 + $0x28] sm:$0xff]  ;;  %v105_v58 = vld [vmem:[#allocation4 + $0x38] sm:$0xff]  ;;  %v102_v59 = vld [vmem:[#allocation4 + $0x20] sm:$0xff] }
  0x46   :  { %274 = vmatprep.subr.mxu0 %v123_v37  ;;  %387 = vmatprep.subr.mxu1 %v125_v38  ;;  %v104_v60 = vld [vmem:[#allocation4 + $0x30] sm:$0xff]  ;;  %v99_v61 = vld [vmem:[#allocation4 + $0x8] sm:$0xff]  ;;  %v101_v62 = vld [vmem:[#allocation4 + $0x18] sm:$0xff] }
  0x47   :  { %275 = vmatpush1.msra.mxu0 %v122_v39  ;;  %388 = vmatpush1.msra.mxu1 %v124_v40  ;;  %v98_v63 = vld [vmem:[#allocation4] sm:$0xff]  ;;  %v100_v1 = vld [vmem:[#allocation4 + $0x10] sm:$0xff]  ;;  %v4652_v3 = vld [vmem:[#allocation7 + $0x1e8] sm:$0xff] }
  0x48   :  { %276 = vmatprep.subr.mxu0 %v119_v41  ;;  %389 = vmatprep.subr.mxu1 %v121_v42  ;;  %v227_v2 = vld [vmem:[%s6734_s0] sm:$0xff]  ;;  %6952 = vst [vmem:[#allocation21_spill] sm:$0xff] %v4652_v3  ;;  %v4654_v4 = vld [vmem:[#allocation7 + $0x1f8] sm:$0xff]  ;;  %v4658_v6 = vld [vmem:[#allocation7 + $0x1f0] sm:$0xff] }
  0x49   :  { %277 = vmatpush1.msra.mxu0 %v118_v43  ;;  %390 = vmatpush1.msra.mxu1 %v120_v44  ;;  %6953 = vst [vmem:[#allocation22_spill] sm:$0xff] %v4654_v4  ;;  %v4656_v5 = vld [vmem:[#allocation7 + $0x1e0] sm:$0xff]  ;;  %v4660_v7 = vld [vmem:[#allocation7 + $0x1c8] sm:$0xff]  ;;  %v4662_v8 = vld [vmem:[#allocation7 + $0x1d8] sm:$0xff] }
  0x4a   :  { %278 = vmatprep.subr.mxu0 %v115_v45  ;;  %391 = vmatprep.subr.mxu1 %v117_v46  ;;  %v4668_v9 = vld [vmem:[#allocation7 + $0x1c0] sm:$0xff]  ;;  %v4670_v10 = vld [vmem:[#allocation7 + $0x1d0] sm:$0xff]  ;;  %v228_v11 = vld [vmem:[%s6734_s0 + $0x8] sm:$0xff] }
  0x4b   :  { %279 = vmatpush1.msra.mxu0 %v114_v47  ;;  %392 = vmatpush1.msra.mxu1 %v116_v48  ;;  %v4679_v12 = vld [vmem:[#allocation7 + $0x1a8] sm:$0xff]  ;;  %v4681_v13 = vld [vmem:[#allocation7 + $0x1b8] sm:$0xff]  ;;  %v4685_v14 = vld [vmem:[#allocation7 + $0x1a0] sm:$0xff] }
  0x4c   :  { %280 = vmatprep.subr.mxu0 %v111_v49  ;;  %393 = vmatprep.subr.mxu1 %v113_v50  ;;  %v4687_v15 = vld [vmem:[#allocation7 + $0x1b0] sm:$0xff]  ;;  %v4689_v16 = vld [vmem:[#allocation7 + $0x188] sm:$0xff]  ;;  %v4691_v17 = vld [vmem:[#allocation7 + $0x198] sm:$0xff] }
  0x4d   :  { %281 = vmatpush1.msra.mxu0 %v110_v51  ;;  %394 = vmatpush1.msra.mxu1 %v112_v52  ;;  %v4697_v18 = vld [vmem:[#allocation7 + $0x180] sm:$0xff]  ;;  %v4699_v19 = vld [vmem:[#allocation7 + $0x190] sm:$0xff]  ;;  %v4708_v21 = vld [vmem:[#allocation7 + $0x168] sm:$0xff] }
  0x4e   :  { %282 = vmatprep.subr.mxu0 %v107_v53  ;;  %395 = vmatprep.subr.mxu1 %v109_v54  ;;  %v229_v20 = vld [vmem:[%s6734_s0 + $0x10] sm:$0xff]  ;;  %v4710_v22 = vld [vmem:[#allocation7 + $0x178] sm:$0xff]  ;;  %v4714_v23 = vld [vmem:[#allocation7 + $0x160] sm:$0xff] }
  0x4f   :  { %283 = vmatpush1.msra.mxu0 %v106_v55  ;;  %396 = vmatpush1.msra.mxu1 %v108_v56  ;;  %v4716_v24 = vld [vmem:[#allocation7 + $0x170] sm:$0xff]  ;;  %v4718_v25 = vld [vmem:[#allocation7 + $0x148] sm:$0xff]  ;;  %v4720_v26 = vld [vmem:[#allocation7 + $0x158] sm:$0xff] }
  0x50   :  { %284 = vmatprep.subr.mxu0 %v103_v57  ;;  %397 = vmatprep.subr.mxu1 %v105_v58  ;;  %v4726_v27 = vld [vmem:[#allocation7 + $0x140] sm:$0xff]  ;;  %v4728_v28 = vld [vmem:[#allocation7 + $0x150] sm:$0xff]  ;;  %v230_v29 = vld [vmem:[%s6734_s0 + $0x18] sm:$0xff] }
  0x51   :  { %285 = vmatpush1.msra.mxu0 %v102_v59  ;;  %398 = vmatpush1.msra.mxu1 %v104_v60  ;;  %v4737_v30 = vld [vmem:[#allocation7 + $0x128] sm:$0xff]  ;;  %v4739_v31 = vld [vmem:[#allocation7 + $0x138] sm:$0xff]  ;;  %v4743_v32 = vld [vmem:[#allocation7 + $0x120] sm:$0xff] }
  0x52   :  { %286 = vmatprep.subr.mxu0 %v99_v61  ;;  %399 = vmatprep.subr.mxu1 %v101_v62  ;;  %v4745_v33 = vld [vmem:[#allocation7 + $0x130] sm:$0xff]  ;;  %v4747_v34 = vld [vmem:[#allocation7 + $0x108] sm:$0xff]  ;;  %v4749_v35 = vld [vmem:[#allocation7 + $0x118] sm:$0xff] }
  0x53   :  { %287 = vmatpush1.msra.mxu0 %v98_v63  ;;  %400 = vmatpush1.msra.mxu1 %v100_v1  ;;  %v4755_v36 = vld [vmem:[#allocation7 + $0x100] sm:$0xff]  ;;  %v4757_v37 = vld [vmem:[#allocation7 + $0x110] sm:$0xff]  ;;  %v4766_v39 = vld [vmem:[#allocation7 + $0xe8] sm:$0xff] }
  0x54   :  { %321 = vmatmul.mubr.f32.vlgmr.msra.gmra.mxu0 %v227_v2  ;;  %434 = vmatmul.mubr.f32.vlgmr.msra.gmra.mxu1 %v227_v2  ;;  %v231_v38 = vld [vmem:[%s6734_s0 + $0x20] sm:$0xff]  ;;  %v4768_v40 = vld [vmem:[#allocation7 + $0xf8] sm:$0xff]  ;;  %v4774_v42 = vld [vmem:[#allocation7 + $0xf0] sm:$0xff] }
  0x55   :  { %520 = vmatprep.subr.mxu0 %v4652_v3  ;;  %591 = vmatprep.subr.mxu1 %v4654_v4  ;;  %v4772_v41 = vld [vmem:[#allocation7 + $0xe0] sm:$0xff]  ;;  %v4776_v43 = vld [vmem:[#allocation7 + $0xc8] sm:$0xff]  ;;  %v4778_v44 = vld [vmem:[#allocation7 + $0xd8] sm:$0xff] }
  0x56   :  { %521 = vmatpush1.msra.mxu0 %v4656_v5  ;;  %592 = vmatpush1.msra.mxu1 %v4658_v6  ;;  %v4784_v45 = vld [vmem:[#allocation7 + $0xc0] sm:$0xff]  ;;  %v4786_v46 = vld [vmem:[#allocation7 + $0xd0] sm:$0xff]  ;;  %v232_v47 = vld [vmem:[%s6734_s0 + $0x28] sm:$0xff] }
  0x57   :  { %522 = vmatprep.subr.mxu0 %v4660_v7  ;;  %593 = vmatprep.subr.mxu1 %v4662_v8  ;;  %v4795_v48 = vld [vmem:[#allocation7 + $0xa8] sm:$0xff]  ;;  %v4797_v49 = vld [vmem:[#allocation7 + $0xb8] sm:$0xff]  ;;  %v4801_v50 = vld [vmem:[#allocation7 + $0xa0] sm:$0xff] }
  0x58   :  { %326 = vmatprep.mubr.f32.mxu0 %v6748_v0  ;;  %439 = vmatprep.mubr.f32.mxu1 %v6748_v0  ;;  %v4803_v51 = vld [vmem:[#allocation7 + $0xb0] sm:$0xff]  ;;  %v4805_v52 = vld [vmem:[#allocation7 + $0x88] sm:$0xff]  ;;  %v4807_v53 = vld [vmem:[#allocation7 + $0x98] sm:$0xff] }
  0x59   :  { %523 = vmatpush1.msra.mxu0 %v4668_v9  ;;  %594 = vmatpush1.msra.mxu1 %v4670_v10  ;;  %6954 = vst [vmem:[#allocation23_spill] sm:$0xff] %v4803_v51  ;;  %6955 = vst [vmem:[#allocation24_spill] sm:$0xff] %v4805_v52  ;;  %v4813_v54 = vld [vmem:[#allocation7 + $0x80] sm:$0xff]  ;;  %v4815_v55 = vld [vmem:[#allocation7 + $0x90] sm:$0xff] }
  0x5a   :  { %327 = vmatmul.mubr.f32.gmra.mxu0 %v228_v11  ;;  %440 = vmatmul.mubr.f32.gmra.mxu1 %v228_v11  ;;  %6956 = vst [vmem:[#allocation25_spill] sm:$0xff] %v4807_v53  ;;  %6957 = vst [vmem:[#allocation26_spill] sm:$0xff] %v4813_v54  ;;  %v233_v56 = vld [vmem:[%s6734_s0 + $0x30] sm:$0xff]  ;;  %v4824_v57 = vld [vmem:[#allocation7 + $0x68] sm:$0xff] }
  0x5b   :  { %524 = vmatprep.subr.mxu0 %v4679_v12  ;;  %595 = vmatprep.subr.mxu1 %v4681_v13  ;;  %6958 = vst [vmem:[#allocation27_spill] sm:$0xff] %v4815_v55  ;;  %6959 = vst [vmem:[#allocation28_spill] sm:$0xff] %v4824_v57  ;;  %v4826_v58 = vld [vmem:[#allocation7 + $0x78] sm:$0xff]  ;;  %v4830_v59 = vld [vmem:[#allocation7 + $0x60] sm:$0xff] }
  0x5c   :  { %525 = vmatpush1.msra.mxu0 %v4685_v14  ;;  %596 = vmatpush1.msra.mxu1 %v4687_v15  ;;  %6960 = vst [vmem:[#allocation29_spill] sm:$0xff] %v4826_v58  ;;  %6961 = vst [vmem:[#allocation30_spill] sm:$0xff] %v4830_v59  ;;  %v4832_v60 = vld [vmem:[#allocation7 + $0x70] sm:$0xff]  ;;  %v4834_v61 = vld [vmem:[#allocation7 + $0x48] sm:$0xff] }
  0x5d   :  { %526 = vmatprep.subr.mxu0 %v4689_v16  ;;  %597 = vmatprep.subr.mxu1 %v4691_v17  ;;  %6962 = vst [vmem:[#allocation31_spill] sm:$0xff] %v4832_v60  ;;  %6963 = vst [vmem:[#allocation32_spill] sm:$0xff] %v4834_v61  ;;  %v4836_v62 = vld [vmem:[#allocation7 + $0x58] sm:$0xff]  ;;  %v4842_v63 = vld [vmem:[#allocation7 + $0x40] sm:$0xff] }
  0x5e   :  { %332 = vmatprep.mubr.f32.mxu0 %v6748_v0  ;;  %445 = vmatprep.mubr.f32.mxu1 %v6748_v0  ;;  %6964 = vst [vmem:[#allocation33_spill] sm:$0xff] %v4836_v62  ;;  %6965 = vst [vmem:[#allocation34_spill] sm:$0xff] %v4842_v63  ;;  %v4844_v1 = vld [vmem:[#allocation7 + $0x50] sm:$0xff]  ;;  %v234_v2 = vld [vmem:[%s6734_s0 + $0x38] sm:$0xff] }
  0x5f   :  { %527 = vmatpush1.msra.mxu0 %v4697_v18  ;;  %598 = vmatpush1.msra.mxu1 %v4699_v19  ;;  %6966 = vst [vmem:[#allocation35_spill] sm:$0xff] %v4844_v1  ;;  %v4853_v11 = vld [vmem:[#allocation7 + $0x28] sm:$0xff] }
  0x60   :  { %333 = vmatmul.mubr.f32.gmra.mxu0 %v229_v20  ;;  %446 = vmatmul.mubr.f32.gmra.mxu1 %v229_v20  ;;  %6967 = vst [vmem:[#allocation36_spill] sm:$0xff] %v4853_v11  ;;  %v4855_v20 = vld [vmem:[#allocation7 + $0x38] sm:$0xff] }
  0x61   :  { %528 = vmatprep.subr.mxu0 %v4708_v21  ;;  %599 = vmatprep.subr.mxu1 %v4710_v22  ;;  %6968 = vst [vmem:[#allocation37_spill] sm:$0xff] %v4855_v20 }
  0x62   :  { %529 = vmatpush1.msra.mxu0 %v4714_v23  ;;  %600 = vmatpush1.msra.mxu1 %v4716_v24 }
  0x63   :  { %530 = vmatprep.subr.mxu0 %v4718_v25  ;;  %601 = vmatprep.subr.mxu1 %v4720_v26 }
  0x64   :  { %338 = vmatprep.mubr.f32.mxu0 %v6748_v0  ;;  %451 = vmatprep.mubr.f32.mxu1 %v6748_v0 }
  0x65   :  { %531 = vmatpush1.msra.mxu0 %v4726_v27  ;;  %602 = vmatpush1.msra.mxu1 %v4728_v28 }
  0x66   :  { %339 = vmatmul.mubr.f32.gmra.mxu0 %v230_v29  ;;  %452 = vmatmul.mubr.f32.gmra.mxu1 %v230_v29  ;;  %v4859_v29 = vld [vmem:[#allocation7 + $0x20] sm:$0xff] }
  0x67   :  { %532 = vmatprep.subr.mxu0 %v4737_v30  ;;  %603 = vmatprep.subr.mxu1 %v4739_v31  ;;  %6969 = vst [vmem:[#allocation38_spill] sm:$0xff] %v4859_v29 }
  0x68   :  { %533 = vmatpush1.msra.mxu0 %v4743_v32  ;;  %604 = vmatpush1.msra.mxu1 %v4745_v33 }
  0x69   :  { %534 = vmatprep.subr.mxu0 %v4747_v34  ;;  %605 = vmatprep.subr.mxu1 %v4749_v35 }
  0x6a   :  { %344 = vmatprep.mubr.f32.mxu0 %v6748_v0  ;;  %457 = vmatprep.mubr.f32.mxu1 %v6748_v0 }
  0x6b   :  { %535 = vmatpush1.msra.mxu0 %v4755_v36  ;;  %606 = vmatpush1.msra.mxu1 %v4757_v37 }
  0x6c   :  { %345 = vmatmul.mubr.f32.gmra.mxu0 %v231_v38  ;;  %458 = vmatmul.mubr.f32.gmra.mxu1 %v231_v38  ;;  %v4861_v38 = vld [vmem:[#allocation7 + $0x30] sm:$0xff] }
  0x6d   :  { %536 = vmatprep.subr.mxu0 %v4766_v39  ;;  %607 = vmatprep.subr.mxu1 %v4768_v40  ;;  %6970 = vst [vmem:[#allocation39_spill] sm:$0xff] %v4861_v38 }
  0x6e   :  { %537 = vmatpush1.msra.mxu0 %v4772_v41  ;;  %608 = vmatpush1.msra.mxu1 %v4774_v42 }
  0x6f   :  { %538 = vmatprep.subr.mxu0 %v4776_v43  ;;  %609 = vmatprep.subr.mxu1 %v4778_v44 }
  0x70   :  { %350 = vmatprep.mubr.f32.mxu0 %v6748_v0  ;;  %463 = vmatprep.mubr.f32.mxu1 %v6748_v0 }
  0x71   :  { %539 = vmatpush1.msra.mxu0 %v4784_v45  ;;  %610 = vmatpush1.msra.mxu1 %v4786_v46 }
  0x72   :  { %351 = vmatmul.mubr.f32.gmra.mxu0 %v232_v47  ;;  %464 = vmatmul.mubr.f32.gmra.mxu1 %v232_v47  ;;  %v4863_v47 = vld [vmem:[#allocation7 + $0x8] sm:$0xff] }
  0x73   :  { %540 = vmatprep.subr.mxu0 %v4795_v48  ;;  %611 = vmatprep.subr.mxu1 %v4797_v49  ;;  %6971 = vst [vmem:[#allocation40_spill] sm:$0xff] %v4863_v47 }
  0x74   :  { %541 = vmatpush1.msra.mxu0 %v4801_v50  ;;  %612 = vmatpush1.msra.mxu1 %v4803_v51 }
  0x75   :  { %542 = vmatprep.subr.mxu0 %v4805_v52  ;;  %613 = vmatprep.subr.mxu1 %v4807_v53 }
  0x76   :  { %356 = vmatprep.mubr.f32.mxu0 %v6748_v0  ;;  %469 = vmatprep.mubr.f32.mxu1 %v6748_v0 }
  0x77   :  { %543 = vmatpush1.msra.mxu0 %v4813_v54  ;;  %614 = vmatpush1.msra.mxu1 %v4815_v55 }
  0x78   :  { %357 = vmatmul.mubr.f32.gmra.mxu0 %v233_v56  ;;  %470 = vmatmul.mubr.f32.gmra.mxu1 %v233_v56  ;;  %v4865_v56 = vld [vmem:[#allocation7 + $0x18] sm:$0xff] }
  0x79   :  { %544 = vmatprep.subr.mxu0 %v4824_v57  ;;  %615 = vmatprep.subr.mxu1 %v4826_v58  ;;  %6972 = vst [vmem:[#allocation41_spill] sm:$0xff] %v4865_v56 }
  0x7a   :  { %545 = vmatpush1.msra.mxu0 %v4830_v59  ;;  %616 = vmatpush1.msra.mxu1 %v4832_v60 }
  0x7b   :  { %546 = vmatprep.subr.mxu0 %v4834_v61  ;;  %617 = vmatprep.subr.mxu1 %v4836_v62 }
  0x7c   :  { %362 = vmatprep.mubr.f32.mxu0 %v6748_v0  ;;  %475 = vmatprep.mubr.f32.mxu1 %v6748_v0  ;;  %v4869_v0 = vld [vmem:[#allocation7] sm:$0xff] }
  0x7d   :  { %547 = vmatpush1.msra.mxu0 %v4842_v63  ;;  %618 = vmatpush1.msra.mxu1 %v4844_v1  ;;  %6973 = vst [vmem:[#allocation42_spill] sm:$0xff] %v4869_v0  ;;  %v4873_v1 = vld [vmem:[#allocation7 + $0x10] sm:$0xff] }
  0x7e   :  { %363 = vmatmul.mubr.f32.gmra.mxu0 %v234_v2  ;;  %476 = vmatmul.mubr.f32.gmra.mxu1 %v234_v2  ;;  %6974 = vst [vmem:[#allocation43_spill] sm:$0xff] %v4873_v1  ;;  %v514_v2 = vld [vmem:[%s6735_s1] sm:$0xff] }
  0x7f   :  { %548 = vmatprep.subr.mxu0 %v4853_v11  ;;  %619 = vmatprep.subr.mxu1 %v4855_v20  ;;  %v6975_v11 = vmov 0.0  }
  0x80   :  { %549 = vmatpush1.msra.mxu0 %v4859_v29  ;;  %620 = vmatpush1.msra.mxu1 %v4861_v38 }
  0x81   :  { %550 = vmatprep.subr.mxu0 %v4863_v47  ;;  %621 = vmatprep.subr.mxu1 %v4865_v56 }
  0x82   :  { %551 = vmatpush1.msra.mxu0 %v4869_v0  ;;  %584 = vmatprep.mubr.f32.mxu0 %v6975_v11 }
  0x83   :  { %622 = vmatpush1.msra.mxu1 %v4873_v1  ;;  %655 = vmatprep.mubr.f32.mxu1 %v6975_v11 }
  0x84   :  { %585 = vmatmul.mubr.f32.vlgmr.msra.gmra.mxu0 %v514_v2  ;;  %656 = vmatmul.mubr.f32.vlgmr.msra.gmra.mxu1 %v514_v2  ;;  %v6976_v2 = vld [vmem:[#allocation35_spill] sm:$0xff] }
  0x85   :  { %696 = vmatprep.subr.mxu0 %v4652_v3  ;;  %767 = vmatprep.subr.mxu1 %v4654_v4 }
  0x86   :  { %697 = vmatpush1.msra.mxu0 %v4656_v5  ;;  %768 = vmatpush1.msra.mxu1 %v4658_v6 }
  0x87   :  { %698 = vmatprep.subr.mxu0 %v4660_v7  ;;  %769 = vmatprep.subr.mxu1 %v4662_v8 }
  0x88   :  { %699 = vmatpush1.msra.mxu0 %v4668_v9  ;;  %770 = vmatpush1.msra.mxu1 %v4670_v10 }
  0x89   :  { %700 = vmatprep.subr.mxu0 %v4679_v12  ;;  %771 = vmatprep.subr.mxu1 %v4681_v13 }
  0x8a   :  { %701 = vmatpush1.msra.mxu0 %v4685_v14  ;;  %772 = vmatpush1.msra.mxu1 %v4687_v15 }
  0x8b   :  { %702 = vmatprep.subr.mxu0 %v4689_v16  ;;  %773 = vmatprep.subr.mxu1 %v4691_v17 }
  0x8c   :  { %703 = vmatpush1.msra.mxu0 %v4697_v18  ;;  %774 = vmatpush1.msra.mxu1 %v4699_v19 }
  0x8d   :  { %704 = vmatprep.subr.mxu0 %v4708_v21  ;;  %775 = vmatprep.subr.mxu1 %v4710_v22 }
  0x8e   :  { %705 = vmatpush1.msra.mxu0 %v4714_v23  ;;  %776 = vmatpush1.msra.mxu1 %v4716_v24 }
  0x8f   :  { %706 = vmatprep.subr.mxu0 %v4718_v25  ;;  %777 = vmatprep.subr.mxu1 %v4720_v26 }
  0x90   :  { %707 = vmatpush1.msra.mxu0 %v4726_v27  ;;  %778 = vmatpush1.msra.mxu1 %v4728_v28 }
  0x91   :  { %708 = vmatprep.subr.mxu0 %v4737_v30  ;;  %779 = vmatprep.subr.mxu1 %v4739_v31 }
  0x92   :  { %709 = vmatpush1.msra.mxu0 %v4743_v32  ;;  %780 = vmatpush1.msra.mxu1 %v4745_v33 }
  0x93   :  { %710 = vmatprep.subr.mxu0 %v4747_v34  ;;  %781 = vmatprep.subr.mxu1 %v4749_v35 }
  0x94   :  { %711 = vmatpush1.msra.mxu0 %v4755_v36  ;;  %782 = vmatpush1.msra.mxu1 %v4757_v37 }
  0x95   :  { %712 = vmatprep.subr.mxu0 %v4766_v39  ;;  %783 = vmatprep.subr.mxu1 %v4768_v40 }
  0x96   :  { %713 = vmatpush1.msra.mxu0 %v4772_v41  ;;  %784 = vmatpush1.msra.mxu1 %v4774_v42 }
  0x97   :  { %714 = vmatprep.subr.mxu0 %v4776_v43  ;;  %785 = vmatprep.subr.mxu1 %v4778_v44 }
  0x98   :  { %715 = vmatpush1.msra.mxu0 %v4784_v45  ;;  %786 = vmatpush1.msra.mxu1 %v4786_v46 }
  0x99   :  { %716 = vmatprep.subr.mxu0 %v4795_v48  ;;  %787 = vmatprep.subr.mxu1 %v4797_v49 }
  0x9a   :  { %717 = vmatpush1.msra.mxu0 %v4801_v50  ;;  %788 = vmatpush1.msra.mxu1 %v4803_v51 }
  0x9b   :  { %718 = vmatprep.subr.mxu0 %v4805_v52  ;;  %789 = vmatprep.subr.mxu1 %v4807_v53  ;;  %v6977_v53 = vld [vmem:[#allocation36_spill] sm:$0xff] }
  0x9c   :  { %719 = vmatpush1.msra.mxu0 %v4813_v54  ;;  %790 = vmatpush1.msra.mxu1 %v4815_v55 }
  0x9d   :  { %720 = vmatprep.subr.mxu0 %v4824_v57  ;;  %791 = vmatprep.subr.mxu1 %v4826_v58 }
  0x9e   :  { %721 = vmatpush1.msra.mxu0 %v4830_v59  ;;  %792 = vmatpush1.msra.mxu1 %v4832_v60 }
  0x9f   :  { %722 = vmatprep.subr.mxu0 %v4834_v61  ;;  %793 = vmatprep.subr.mxu1 %v4836_v62 }
  0xa0   :  { %723 = vmatpush1.msra.mxu0 %v4842_v63  ;;  %794 = vmatpush1.msra.mxu1 %v6976_v2 }
  0xa1   :  { %724 = vmatprep.subr.mxu0 %v6977_v53  ;;  %795 = vmatprep.subr.mxu1 %v4855_v20  ;;  %v236_v20 = vlaneseq }
  0xa2   :  { %725 = vmatpush1.msra.mxu0 %v4859_v29  ;;  %796 = vmatpush1.msra.mxu1 %v4861_v38 }
  0xa3   :  { %726 = vmatprep.subr.mxu0 %v4863_v47  ;;  %797 = vmatprep.subr.mxu1 %v4865_v56  ;;  %v4952_v29 = vshrl.u32 %v236_v20, 7 }
  0xa4   :  { %727 = vmatpush1.msra.mxu0 %v4869_v0  ;;  %760 = vmatprep.mubr.f32.mxu0 %v6975_v11 }
  0xa5   :  { %798 = vmatpush1.msra.mxu1 %v4873_v1  ;;  %831 = vmatprep.mubr.f32.mxu1 %v6975_v11  ;;  %6978 = vst [vmem:[#allocation44_spill] sm:$0xff] %v4952_v29  ;;  %v6787_v56 = vsub.s32 0, %v4952_v29  ;;  %v6790_v0 = vsub.s32 2, %v4952_v29  ;;  %v226_v1 = vld [vmem:[%s6739_s5] sm:$0xf]  ;;  %v6798_v20 = vsub.s32 3, %v4952_v29 }
  0xa6   :  { %873 = vmatprep.subr.mxu0 %v4652_v3  ;;  %944 = vmatprep.subr.mxu1 %v4654_v4  ;;  %v6797_v4 = vsub.s32 1, %v4952_v29 }
  0xa7   :  { %v239_v53 = vrot.slane %v226_v1, %v6787_v56  ;;  %v4973_v2 = vrot.slane %v226_v1, %v6790_v0  ;;  %v4979_v60 = vrot.slane %v226_v1, %v6798_v20 }
  0xa8   :  { %v243_v61 = vrot.slane %v226_v1, %v6797_v4 }
 0x114   :  { %v4954_v38 = vpop.f32.mrf.mxu0  ;;  %v4956_v47 = vpop.f32.mrf.mxu1 }
 0x116   :  { %v4963_v11 = vpop.f32.mrf.mxu0  ;;  %v4965_v3 = vpop.f32.mrf.mxu1 }
 0x11a   :  { %v328_v63 = vpop.f32.mrf.mxu0  ;;  %v441_v62 = vpop.f32.mrf.mxu1 }
 0x11b   :  { %v4981_v59 = vadd.f32 %v328_v63, %v239_v53  ;;  %v4984_v58 = vadd.f32 %v441_v62, %v4973_v2 }
 0x11c   :  { %v330_v57 = vpop.f32.mrf.mxu0  ;;  %v443_v56 = vpop.f32.mrf.mxu1 }
 0x11d   :  { %6979 = vst [vmem:[#allocation45_spill] sm:$0xff] %v4984_v58  ;;  %v4986_v55 = vadd.f32 %v330_v57, %v243_v61  ;;  %v4989_v0 = vadd.f32 %v443_v56, %v4979_v60 }
 0x11f   :  { %6980 = vst [vmem:[#allocation46_spill] sm:$0xff] %v4986_v55  ;;  %6981 = vst [vmem:[#allocation47_spill] sm:$0xff] %v4989_v0 }
 0x120   :  { %v334_v54 = vpop.f32.mrf.mxu0  ;;  %v447_v52 = vpop.f32.mrf.mxu1 }
 0x121   :  { %v4991_v51 = vadd.f32 %v334_v54, %v239_v53  ;;  %v4994_v4 = vadd.f32 %v447_v52, %v4973_v2 }
 0x122   :  { %v336_v1 = vpop.f32.mrf.mxu0  ;;  %v449_v63 = vpop.f32.mrf.mxu1 }
 0x123   :  { %6982 = vst [vmem:[#allocation48_spill] sm:$0xff] %v4991_v51  ;;  %6983 = vst [vmem:[#allocation49_spill] sm:$0xff] %v4994_v4  ;;  %v4996_v20 = vadd.f32 %v336_v1, %v243_v61  ;;  %v4999_v62 = vadd.f32 %v449_v63, %v4979_v60 }
 0x125   :  { %6984 = vst [vmem:[#allocation50_spill] sm:$0xff] %v4996_v20  ;;  %6985 = vst [vmem:[#allocation51_spill] sm:$0xff] %v4999_v62 }
 0x126   :  { %v340_v29 = vpop.f32.mrf.mxu0  ;;  %v453_v57 = vpop.f32.mrf.mxu1 }
 0x127   :  { %v5001_v58 = vadd.f32 %v340_v29, %v239_v53  ;;  %v5004_v56 = vadd.f32 %v453_v57, %v4973_v2 }
 0x128   :  { %v342_v0 = vpop.f32.mrf.mxu0  ;;  %v455_v54 = vpop.f32.mrf.mxu1 }
 0x129   :  { %6986 = vst [vmem:[#allocation52_spill] sm:$0xff] %v5001_v58  ;;  %6987 = vst [vmem:[#allocation53_spill] sm:$0xff] %v5004_v56  ;;  %v5006_v51 = vadd.f32 %v342_v0, %v243_v61  ;;  %v5009_v52 = vadd.f32 %v455_v54, %v4979_v60 }
 0x12b   :  { %6988 = vst [vmem:[#allocation54_spill] sm:$0xff] %v5006_v51  ;;  %6989 = vst [vmem:[#allocation55_spill] sm:$0xff] %v5009_v52 }
 0x12c   :  { %v346_v4 = vpop.f32.mrf.mxu0  ;;  %v459_v1 = vpop.f32.mrf.mxu1 }
 0x12d   :  { %v5011_v20 = vadd.f32 %v346_v4, %v239_v53  ;;  %v5014_v63 = vadd.f32 %v459_v1, %v4973_v2 }
 0x12e   :  { %v348_v62 = vpop.f32.mrf.mxu0  ;;  %v461_v29 = vpop.f32.mrf.mxu1 }
 0x12f   :  { %6990 = vst [vmem:[#allocation56_spill] sm:$0xff] %v5011_v20  ;;  %6991 = vst [vmem:[#allocation57_spill] sm:$0xff] %v5014_v63  ;;  %v5016_v58 = vadd.f32 %v348_v62, %v243_v61  ;;  %v5019_v57 = vadd.f32 %v461_v29, %v4979_v60 }
 0x131   :  { %6992 = vst [vmem:[#allocation58_spill] sm:$0xff] %v5016_v58  ;;  %6993 = vst [vmem:[#allocation59_spill] sm:$0xff] %v5019_v57 }
 0x132   :  { %v352_v56 = vpop.f32.mrf.mxu0  ;;  %v465_v0 = vpop.f32.mrf.mxu1 }
 0x133   :  { %v5021_v51 = vadd.f32 %v352_v56, %v239_v53  ;;  %v5024_v54 = vadd.f32 %v465_v0, %v4973_v2 }
 0x134   :  { %v354_v52 = vpop.f32.mrf.mxu0  ;;  %v467_v4 = vpop.f32.mrf.mxu1 }
 0x135   :  { %6994 = vst [vmem:[#allocation60_spill] sm:$0xff] %v5021_v51  ;;  %6995 = vst [vmem:[#allocation61_spill] sm:$0xff] %v5024_v54  ;;  %v5026_v20 = vadd.f32 %v354_v52, %v243_v61  ;;  %v5029_v1 = vadd.f32 %v467_v4, %v4979_v60 }
 0x137   :  { %6996 = vst [vmem:[#allocation62_spill] sm:$0xff] %v5026_v20  ;;  %6997 = vst [vmem:[#allocation63_spill] sm:$0xff] %v5029_v1 }
 0x138   :  { %v358_v63 = vpop.f32.mrf.mxu0  ;;  %v471_v62 = vpop.f32.mrf.mxu1 }
 0x139   :  { %v5031_v58 = vadd.f32 %v358_v63, %v239_v53  ;;  %v5034_v29 = vadd.f32 %v471_v62, %v4973_v2 }
 0x13a   :  { %v360_v57 = vpop.f32.mrf.mxu0  ;;  %v473_v56 = vpop.f32.mrf.mxu1 }
 0x13b   :  { %6998 = vst [vmem:[#allocation64_spill] sm:$0xff] %v5031_v58  ;;  %6999 = vst [vmem:[#allocation65_spill] sm:$0xff] %v5034_v29  ;;  %v5036_v51 = vadd.f32 %v360_v57, %v243_v61  ;;  %v5039_v0 = vadd.f32 %v473_v56, %v4979_v60  ;;  %v323_v57 = vadd.f32 %v4954_v38, %v239_v53 }
 0x13c   :  { %v325_v56 = vadd.f32 %v4963_v11, %v243_v61 }
 0x13d   :  { %7000 = vst [vmem:[#allocation66_spill] sm:$0xff] %v5036_v51  ;;  %7001 = vst [vmem:[#allocation67_spill] sm:$0xff] %v5039_v0 }
 0x13e   :  { %v364_v54 = vpop.f32.mrf.mxu0  ;;  %v477_v52 = vpop.f32.mrf.mxu1 }
 0x13f   :  { %v5041_v20 = vadd.f32 %v364_v54, %v239_v53  ;;  %v5044_v4 = vadd.f32 %v477_v52, %v4973_v2 }
 0x140   :  { %v366_v1 = vpop.f32.mrf.mxu0  ;;  %v479_v63 = vpop.f32.mrf.mxu1 }
 0x141   :  { %7002 = vst [vmem:[#allocation68_spill] sm:$0xff] %v5041_v20  ;;  %7003 = vst [vmem:[#allocation69_spill] sm:$0xff] %v5044_v4  ;;  %v5046_v58 = vadd.f32 %v366_v1, %v243_v61  ;;  %v5049_v62 = vadd.f32 %v479_v63, %v4979_v60  ;;  %v438_v1 = vadd.f32 %v4965_v3, %v4979_v60  ;;  %v515_v3 = vld [vmem:[%s6736_s2] sm:$0xff] }
 0x142   :  { %v436_v63 = vadd.f32 %v4956_v47, %v4973_v2 }
 0x143   :  { %7004 = vst [vmem:[#allocation70_spill] sm:$0xff] %v5046_v58  ;;  %7005 = vst [vmem:[#allocation71_spill] sm:$0xff] %v5049_v62 }
 0x144   :  { %v586_v29 = vpop.f32.mrf.mxu0  ;;  %v657_v20 = vpop.f32.mrf.mxu1 }
 0x145   :  { %v662_v0 = vadd.f32 %v586_v29, %v323_v57  ;;  %v664_v62 = vadd.f32 %v657_v20, %v436_v63  ;;  %v7011_v63 = vld [vmem:[#allocation27_spill] sm:$0xff] }
 0x146   :  { %v588_v51 = vpop.f32.mrf.mxu0  ;;  %v659_v4 = vpop.f32.mrf.mxu1 }
 0x147   :  { %v3892_v55 = vmul.f32 -1.442695, %v662_v0  ;;  %v663_v54 = vadd.f32 %v588_v51, %v325_v56  ;;  %v665_v58 = vadd.f32 %v659_v4, %v438_v1  ;;  %v7007_v56 = vld [vmem:[#allocation23_spill] sm:$0xff]  ;;  %v7010_v1 = vld [vmem:[#allocation26_spill] sm:$0xff] }
 0x149   :  { %4007 = vpow2.f32 %v3892_v55  ;;  %v3893_v52 = vmul.f32 -1.442695, %v663_v54  ;;  %v3894_v53 = vmul.f32 -1.442695, %v665_v58  ;;  %v7008_v54 = vld [vmem:[#allocation24_spill] sm:$0xff] }
 0x14b   :  { %4009 = vpow2.f32 %v3893_v52  ;;  %v7009_v52 = vld [vmem:[#allocation25_spill] sm:$0xff] }
 0x14c   :  { %4011 = vpow2.f32 %v3894_v53  ;;  %v7012_v53 = vld [vmem:[#allocation28_spill] sm:$0xff] }
 0x156   :  { %v4008_v38 = vpop.eup %4007 }
 0x157   :  { %v669_v61 = vadd.f32 1.0, %v4008_v38  ;;  %v7013_v38 = vld [vmem:[#allocation29_spill] sm:$0xff] }
 0x158   :  { %v4010_v11 = vpop.eup %4009 }
 0x159   :  { %4013 = vrcp.f32 %v669_v61  ;;  %v675_v51 = vadd.f32 1.0, %v4010_v11  ;;  %v4012_v55 = vpop.eup %4011  ;;  %v7014_v61 = vld [vmem:[#allocation30_spill] sm:$0xff]  ;;  %v7015_v11 = vld [vmem:[#allocation31_spill] sm:$0xff] }
 0x15a   :  { %4015 = vtanh.f32 %v664_v62  ;;  %v682_v4 = vadd.f32 1.0, %v4012_v55  ;;  %v7017_v55 = vld [vmem:[#allocation33_spill] sm:$0xff] }
 0x15b   :  { %4017 = vrcp.f32 %v675_v51  ;;  %v7016_v51 = vld [vmem:[#allocation32_spill] sm:$0xff] }
 0x15c   :  { %4019 = vrcp.f32 %v682_v4  ;;  %v7022_v4 = vld [vmem:[#allocation38_spill] sm:$0xff] }
 0x166   :  { %v4014_v29 = vpop.eup %4013 }
 0x167   :  { %v4016_v60 = vpop.eup %4015 }
 0x168   :  { %v4018_v0 = vpop.eup %4017  ;;  %v686_v47 = vmul.f32 %v4016_v60, %v4014_v29  ;;  %v7018_v29 = vld [vmem:[#allocation34_spill] sm:$0xff]  ;;  %v7020_v60 = vld [vmem:[#allocation36_spill] sm:$0xff] }
 0x169   :  { %v685_v58 = vmul.f32 %v4018_v0, %v515_v3  ;;  %v4020_v20 = vpop.eup %4019  ;;  %v7019_v3 = vld [vmem:[#allocation35_spill] sm:$0xff]  ;;  %v7021_v0 = vld [vmem:[#allocation37_spill] sm:$0xff] }
 0x16b   :  { %v5060_v2 = vadd.f32 %v686_v47, %v685_v58  ;;  %v7023_v47 = vld [vmem:[#allocation39_spill] sm:$0xff]  ;;  %v7024_v58 = vld [vmem:[#allocation40_spill] sm:$0xff] }
 0x16d   :  { %4021 = vtanh.f32 %v5060_v2 }
 0x17a   :  { %v4022_v57 = vpop.eup %4021 }
 0x17b   :  { %v5063_v62 = vmul.f32 %v4022_v57, %v4020_v20  ;;  %v7025_v20 = vld [vmem:[#allocation41_spill] sm:$0xff]  ;;  %v7026_v57 = vld [vmem:[#allocation42_spill] sm:$0xff] }
 0x17d   :  { %7006 = vst [vmem:[#allocation72_spill] sm:$0xff] %v5063_v62  ;;  %761 = vmatmul.mubr.f32.vlgmr.msra.gmra.mxu0 %v5063_v62  ;;  %832 = vmatmul.mubr.f32.vlgmr.msra.gmra.mxu1 %v5063_v62  ;;  %v7027_v62 = vmov 0.0  }
 0x17e   :  { %874 = vmatpush1.msra.mxu0 %v4656_v5  ;;  %945 = vmatpush1.msra.mxu1 %v4658_v6 }
 0x17f   :  { %875 = vmatprep.subr.mxu0 %v4660_v7  ;;  %946 = vmatprep.subr.mxu1 %v4662_v8 }
 0x180   :  { %876 = vmatpush1.msra.mxu0 %v4668_v9  ;;  %947 = vmatpush1.msra.mxu1 %v4670_v10 }
 0x181   :  { %877 = vmatprep.subr.mxu0 %v4679_v12  ;;  %948 = vmatprep.subr.mxu1 %v4681_v13 }
 0x182   :  { %878 = vmatpush1.msra.mxu0 %v4685_v14  ;;  %949 = vmatpush1.msra.mxu1 %v4687_v15 }
 0x183   :  { %879 = vmatprep.subr.mxu0 %v4689_v16  ;;  %950 = vmatprep.subr.mxu1 %v4691_v17 }
 0x184   :  { %880 = vmatpush1.msra.mxu0 %v4697_v18  ;;  %951 = vmatpush1.msra.mxu1 %v4699_v19 }
 0x185   :  { %881 = vmatprep.subr.mxu0 %v4708_v21  ;;  %952 = vmatprep.subr.mxu1 %v4710_v22 }
 0x186   :  { %882 = vmatpush1.msra.mxu0 %v4714_v23  ;;  %953 = vmatpush1.msra.mxu1 %v4716_v24 }
 0x187   :  { %883 = vmatprep.subr.mxu0 %v4718_v25  ;;  %954 = vmatprep.subr.mxu1 %v4720_v26 }
 0x188   :  { %884 = vmatpush1.msra.mxu0 %v4726_v27  ;;  %955 = vmatpush1.msra.mxu1 %v4728_v28 }
 0x189   :  { %885 = vmatprep.subr.mxu0 %v4737_v30  ;;  %956 = vmatprep.subr.mxu1 %v4739_v31 }
 0x18a   :  { %886 = vmatpush1.msra.mxu0 %v4743_v32  ;;  %957 = vmatpush1.msra.mxu1 %v4745_v33 }
 0x18b   :  { %887 = vmatprep.subr.mxu0 %v4747_v34  ;;  %958 = vmatprep.subr.mxu1 %v4749_v35 }
 0x18c   :  { %888 = vmatpush1.msra.mxu0 %v4755_v36  ;;  %959 = vmatpush1.msra.mxu1 %v4757_v37 }
 0x18d   :  { %889 = vmatprep.subr.mxu0 %v4766_v39  ;;  %960 = vmatprep.subr.mxu1 %v4768_v40 }
 0x18e   :  { %890 = vmatpush1.msra.mxu0 %v4772_v41  ;;  %961 = vmatpush1.msra.mxu1 %v4774_v42 }
 0x18f   :  { %891 = vmatprep.subr.mxu0 %v4776_v43  ;;  %962 = vmatprep.subr.mxu1 %v4778_v44 }
 0x190   :  { %892 = vmatpush1.msra.mxu0 %v4784_v45  ;;  %963 = vmatpush1.msra.mxu1 %v4786_v46 }
 0x191   :  { %893 = vmatprep.subr.mxu0 %v4795_v48  ;;  %964 = vmatprep.subr.mxu1 %v4797_v49 }
 0x192   :  { %894 = vmatpush1.msra.mxu0 %v4801_v50  ;;  %965 = vmatpush1.msra.mxu1 %v7007_v56 }
 0x193   :  { %895 = vmatprep.subr.mxu0 %v7008_v54  ;;  %966 = vmatprep.subr.mxu1 %v7009_v52 }
 0x194   :  { %896 = vmatpush1.msra.mxu0 %v7010_v1  ;;  %967 = vmatpush1.msra.mxu1 %v7011_v63 }
 0x195   :  { %897 = vmatprep.subr.mxu0 %v7012_v53  ;;  %968 = vmatprep.subr.mxu1 %v7013_v38  ;;  %v7033_v38 = vld [vmem:[#allocation45_spill] sm:$0xff] }
 0x196   :  { %898 = vmatpush1.msra.mxu0 %v7014_v61  ;;  %969 = vmatpush1.msra.mxu1 %v7015_v11  ;;  %v7032_v61 = vld [vmem:[#allocation47_spill] sm:$0xff] }
 0x197   :  { %899 = vmatprep.subr.mxu0 %v7016_v51  ;;  %970 = vmatprep.subr.mxu1 %v7017_v55  ;;  %v7028_v55 = vld [vmem:[#allocation43_spill] sm:$0xff] }
 0x198   :  { %900 = vmatpush1.msra.mxu0 %v7018_v29  ;;  %971 = vmatpush1.msra.mxu1 %v7019_v3  ;;  %v7029_v3 = vld [vmem:[#allocation21_spill] sm:$0xff] }
 0x199   :  { %901 = vmatprep.subr.mxu0 %v7020_v60  ;;  %972 = vmatprep.subr.mxu1 %v7021_v0  ;;  %v7030_v60 = vld [vmem:[#allocation22_spill] sm:$0xff] }
 0x19a   :  { %902 = vmatpush1.msra.mxu0 %v7022_v4  ;;  %973 = vmatpush1.msra.mxu1 %v7023_v47 }
 0x19b   :  { %903 = vmatprep.subr.mxu0 %v7024_v58  ;;  %974 = vmatprep.subr.mxu1 %v7025_v20  ;;  %v7031_v58 = vld [vmem:[#allocation46_spill] sm:$0xff] }
 0x19c   :  { %904 = vmatpush1.msra.mxu0 %v7026_v57  ;;  %937 = vmatprep.mubr.f32.mxu0 %v7027_v62 }
 0x19d   :  { %975 = vmatpush1.msra.mxu1 %v7028_v55  ;;  %1008 = vmatprep.mubr.f32.mxu1 %v7027_v62 }
 0x19e   :  { %1050 = vmatprep.subr.mxu0 %v7029_v3  ;;  %1121 = vmatprep.subr.mxu1 %v7030_v60 }
 0x23d   :  { %v762_v0 = vpop.f32.mrf.mxu0  ;;  %v833_v20 = vpop.f32.mrf.mxu1 }
 0x23e   :  { %v838_v4 = vadd.f32 %v762_v0, %v4981_v59  ;;  %v840_v62 = vadd.f32 %v833_v20, %v7033_v38  ;;  %v7057_v20 = vld [vmem:[#allocation51_spill] sm:$0xff] }
 0x23f   :  { %v764_v47 = vpop.f32.mrf.mxu0  ;;  %v835_v11 = vpop.f32.mrf.mxu1 }
 0x240   :  { %v3895_v29 = vmul.f32 -1.442695, %v838_v4  ;;  %v839_v51 = vadd.f32 %v764_v47, %v7031_v58  ;;  %v841_v55 = vadd.f32 %v835_v11, %v7032_v61 }
 0x242   :  { %4023 = vpow2.f32 %v3895_v29  ;;  %v3896_v57 = vmul.f32 -1.442695, %v839_v51  ;;  %v3897_v53 = vmul.f32 -1.442695, %v841_v55 }
 0x244   :  { %4025 = vpow2.f32 %v3896_v57 }
 0x245   :  { %4027 = vtanh.f32 %v840_v62 }
 0x246   :  { %4029 = vpow2.f32 %v3897_v53 }
 0x24f   :  { %v4024_v3 = vpop.eup %4023 }
 0x250   :  { %v845_v63 = vadd.f32 1.0, %v4024_v3 }
 0x251   :  { %v4026_v60 = vpop.eup %4025 }
 0x252   :  { %4031 = vrcp.f32 %v845_v63  ;;  %v851_v59 = vadd.f32 1.0, %v4026_v60  ;;  %v4028_v0 = vpop.eup %4027  ;;  %v7058_v60 = vld [vmem:[#allocation49_spill] sm:$0xff] }
 0x253   :  { %v4030_v4 = vpop.eup %4029 }
 0x254   :  { %4033 = vrcp.f32 %v851_v59  ;;  %v858_v58 = vadd.f32 1.0, %v4030_v4 }
 0x256   :  { %4035 = vrcp.f32 %v858_v58 }
 0x25f   :  { %v4032_v29 = vpop.eup %4031 }
 0x260   :  { %v862_v47 = vmul.f32 %v4032_v29, %v4028_v0 }
 0x261   :  { %v4034_v51 = vpop.eup %4033 }
 0x262   :  { %v861_v57 = vmul.f32 %v4034_v51, %v5060_v2 }
 0x263   :  { %v4036_v38 = vpop.eup %4035 }
 0x264   :  { %v5138_v61 = vadd.f32 %v862_v47, %v861_v57 }
 0x266   :  { %4037 = vtanh.f32 %v5138_v61 }
 0x273   :  { %v4038_v62 = vpop.eup %4037 }
 0x274   :  { %v5141_v11 = vmul.f32 %v4038_v62, %v4036_v38 }
 0x276   :  { %7034 = vst [vmem:[#allocation23_spill] sm:$0xff] %v5141_v11  ;;  %938 = vmatmul.mubr.f32.vlgmr.msra.gmra.mxu0 %v5141_v11  ;;  %1009 = vmatmul.mubr.f32.vlgmr.msra.gmra.mxu1 %v5141_v11  ;;  %v5296_v11 = vld [vmem:[#allocation7 + $0x138] sm:$0xff] }
 0x277   :  { %1051 = vmatpush1.msra.mxu0 %v4656_v5  ;;  %1122 = vmatpush1.msra.mxu1 %v4658_v6  ;;  %v7035_v5 = vld [vmem:[#allocation27_spill] sm:$0xff]  ;;  %v7036_v6 = vld [vmem:[#allocation28_spill] sm:$0xff] }
 0x278   :  { %1052 = vmatprep.subr.mxu0 %v4660_v7  ;;  %1123 = vmatprep.subr.mxu1 %v4662_v8  ;;  %v7037_v7 = vld [vmem:[#allocation29_spill] sm:$0xff]  ;;  %v7038_v8 = vld [vmem:[#allocation30_spill] sm:$0xff] }
 0x279   :  { %1053 = vmatpush1.msra.mxu0 %v4668_v9  ;;  %1124 = vmatpush1.msra.mxu1 %v4670_v10  ;;  %v7039_v9 = vld [vmem:[#allocation31_spill] sm:$0xff]  ;;  %v7040_v10 = vld [vmem:[#allocation32_spill] sm:$0xff] }
 0x27a   :  { %1054 = vmatprep.subr.mxu0 %v4679_v12  ;;  %1125 = vmatprep.subr.mxu1 %v4681_v13  ;;  %v7041_v12 = vld [vmem:[#allocation33_spill] sm:$0xff]  ;;  %v7042_v13 = vld [vmem:[#allocation34_spill] sm:$0xff] }
 0x27b   :  { %1055 = vmatpush1.msra.mxu0 %v4685_v14  ;;  %1126 = vmatpush1.msra.mxu1 %v4687_v15  ;;  %v7043_v14 = vld [vmem:[#allocation35_spill] sm:$0xff]  ;;  %v7044_v15 = vld [vmem:[#allocation36_spill] sm:$0xff] }
 0x27c   :  { %1056 = vmatprep.subr.mxu0 %v4689_v16  ;;  %1127 = vmatprep.subr.mxu1 %v4691_v17  ;;  %v7045_v16 = vld [vmem:[#allocation37_spill] sm:$0xff]  ;;  %v7046_v17 = vld [vmem:[#allocation38_spill] sm:$0xff] }
 0x27d   :  { %1057 = vmatpush1.msra.mxu0 %v4697_v18  ;;  %1128 = vmatpush1.msra.mxu1 %v4699_v19  ;;  %v7047_v18 = vld [vmem:[#allocation39_spill] sm:$0xff]  ;;  %v7048_v19 = vld [vmem:[#allocation40_spill] sm:$0xff] }
 0x27e   :  { %1058 = vmatprep.subr.mxu0 %v4708_v21  ;;  %1129 = vmatprep.subr.mxu1 %v4710_v22  ;;  %v7049_v21 = vld [vmem:[#allocation41_spill] sm:$0xff]  ;;  %v7050_v22 = vld [vmem:[#allocation42_spill] sm:$0xff] }
 0x27f   :  { %1059 = vmatpush1.msra.mxu0 %v4714_v23  ;;  %1130 = vmatpush1.msra.mxu1 %v4716_v24  ;;  %v7051_v23 = vmov 0.0   ;;  %v7052_v24 = vld [vmem:[#allocation43_spill] sm:$0xff] }
 0x280   :  { %1060 = vmatprep.subr.mxu0 %v4718_v25  ;;  %1131 = vmatprep.subr.mxu1 %v4720_v26  ;;  %v5209_v25 = vld [vmem:[#allocation7 + $0x1e8] sm:$0xff]  ;;  %v5212_v26 = vld [vmem:[#allocation7 + $0x1f8] sm:$0xff] }
 0x281   :  { %1061 = vmatpush1.msra.mxu0 %v4726_v27  ;;  %1132 = vmatpush1.msra.mxu1 %v4728_v28  ;;  %7053 = vst [vmem:[#allocation24_spill] sm:$0xff] %v5209_v25  ;;  %7054 = vst [vmem:[#allocation25_spill] sm:$0xff] %v5212_v26  ;;  %v7055_v28 = vld [vmem:[#allocation48_spill] sm:$0xff] }
 0x282   :  { %1062 = vmatprep.subr.mxu0 %v4737_v30  ;;  %1133 = vmatprep.subr.mxu1 %v4739_v31 }
 0x283   :  { %1063 = vmatpush1.msra.mxu0 %v4743_v32  ;;  %1134 = vmatpush1.msra.mxu1 %v4745_v33  ;;  %v7056_v33 = vld [vmem:[#allocation50_spill] sm:$0xff] }
 0x284   :  { %1064 = vmatprep.subr.mxu0 %v4747_v34  ;;  %1135 = vmatprep.subr.mxu1 %v4749_v35 }
 0x285   :  { %1065 = vmatpush1.msra.mxu0 %v4755_v36  ;;  %1136 = vmatpush1.msra.mxu1 %v4757_v37 }
 0x286   :  { %1066 = vmatprep.subr.mxu0 %v4766_v39  ;;  %1137 = vmatprep.subr.mxu1 %v4768_v40 }
 0x287   :  { %1067 = vmatpush1.msra.mxu0 %v4772_v41  ;;  %1138 = vmatpush1.msra.mxu1 %v4774_v42 }
 0x288   :  { %1068 = vmatprep.subr.mxu0 %v4776_v43  ;;  %1139 = vmatprep.subr.mxu1 %v4778_v44 }
 0x289   :  { %1069 = vmatpush1.msra.mxu0 %v4784_v45  ;;  %1140 = vmatpush1.msra.mxu1 %v4786_v46 }
 0x28a   :  { %1070 = vmatprep.subr.mxu0 %v4795_v48  ;;  %1141 = vmatprep.subr.mxu1 %v4797_v49 }
 0x28b   :  { %1071 = vmatpush1.msra.mxu0 %v4801_v50  ;;  %1142 = vmatpush1.msra.mxu1 %v7007_v56 }
 0x28c   :  { %1072 = vmatprep.subr.mxu0 %v7008_v54  ;;  %1143 = vmatprep.subr.mxu1 %v7009_v52 }
 0x28d   :  { %1073 = vmatpush1.msra.mxu0 %v7010_v1  ;;  %1144 = vmatpush1.msra.mxu1 %v7035_v5 }
 0x28e   :  { %1074 = vmatprep.subr.mxu0 %v7036_v6  ;;  %1145 = vmatprep.subr.mxu1 %v7037_v7 }
 0x28f   :  { %1075 = vmatpush1.msra.mxu0 %v7038_v8  ;;  %1146 = vmatpush1.msra.mxu1 %v7039_v9 }
 0x290   :  { %1076 = vmatprep.subr.mxu0 %v7040_v10  ;;  %1147 = vmatprep.subr.mxu1 %v7041_v12 }
 0x291   :  { %1077 = vmatpush1.msra.mxu0 %v7042_v13  ;;  %1148 = vmatpush1.msra.mxu1 %v7043_v14 }
 0x292   :  { %1078 = vmatprep.subr.mxu0 %v7044_v15  ;;  %1149 = vmatprep.subr.mxu1 %v7045_v16 }
 0x293   :  { %1079 = vmatpush1.msra.mxu0 %v7046_v17  ;;  %1150 = vmatpush1.msra.mxu1 %v7047_v18 }
 0x294   :  { %1080 = vmatprep.subr.mxu0 %v7048_v19  ;;  %1151 = vmatprep.subr.mxu1 %v7049_v21 }
 0x295   :  { %1081 = vmatpush1.msra.mxu0 %v7050_v22  ;;  %1114 = vmatprep.mubr.f32.mxu0 %v7051_v23 }
 0x296   :  { %1152 = vmatpush1.msra.mxu1 %v7052_v24  ;;  %1185 = vmatprep.mubr.f32.mxu1 %v7051_v23 }
 0x297   :  { %1227 = vmatprep.subr.mxu0 %v5209_v25  ;;  %1298 = vmatprep.subr.mxu1 %v5212_v26 }
 0x336   :  { %v939_v27 = vpop.f32.mrf.mxu0  ;;  %v1010_v63 = vpop.f32.mrf.mxu1 }
 0x337   :  { %v1015_v30 = vadd.f32 %v939_v27, %v7055_v28  ;;  %v1017_v59 = vadd.f32 %v1010_v63, %v7058_v60  ;;  %v5227_v63 = vld [vmem:[#allocation7 + $0x1e0] sm:$0xff]  ;;  %v5245_v60 = vld [vmem:[#allocation7 + $0x1a8] sm:$0xff] }
 0x338   :  { %v941_v31 = vpop.f32.mrf.mxu0  ;;  %v1012_v55 = vpop.f32.mrf.mxu1 }
 0x339   :  { %v3898_v32 = vmul.f32 -1.442695, %v1015_v30  ;;  %v1016_v2 = vadd.f32 %v941_v31, %v7056_v33  ;;  %v1018_v3 = vadd.f32 %v1012_v55, %v7057_v20  ;;  %v5236_v55 = vld [vmem:[#allocation7 + $0x1d8] sm:$0xff]  ;;  %v5239_v20 = vld [vmem:[#allocation7 + $0x1c0] sm:$0xff] }
 0x33b   :  { %4039 = vpow2.f32 %v3898_v32  ;;  %v3899_v53 = vmul.f32 -1.442695, %v1016_v2  ;;  %v3900_v0 = vmul.f32 -1.442695, %v1018_v3  ;;  %v5242_v3 = vld [vmem:[#allocation7 + $0x1d0] sm:$0xff] }
 0x33d   :  { %4041 = vpow2.f32 %v3899_v53  ;;  %v5230_v53 = vld [vmem:[#allocation7 + $0x1f0] sm:$0xff] }
 0x33e   :  { %4043 = vtanh.f32 %v1017_v59  ;;  %v5248_v59 = vld [vmem:[#allocation7 + $0x1b8] sm:$0xff] }
 0x33f   :  { %4045 = vpow2.f32 %v3900_v0  ;;  %v5251_v0 = vld [vmem:[#allocation7 + $0x1a0] sm:$0xff] }
 0x348   :  { %v4040_v4 = vpop.eup %4039 }
 0x349   :  { %v1022_v29 = vadd.f32 1.0, %v4040_v4  ;;  %v5254_v4 = vld [vmem:[#allocation7 + $0x1b0] sm:$0xff] }
 0x34a   :  { %v4042_v47 = vpop.eup %4041 }
 0x34b   :  { %4047 = vrcp.f32 %v1022_v29  ;;  %v1028_v51 = vadd.f32 1.0, %v4042_v47  ;;  %v4044_v58 = vpop.eup %4043  ;;  %v5257_v29 = vld [vmem:[#allocation7 + $0x188] sm:$0xff]  ;;  %v5260_v47 = vld [vmem:[#allocation7 + $0x198] sm:$0xff] }
 0x34c   :  { %v4046_v57 = vpop.eup %4045 }
 0x34d   :  { %4049 = vrcp.f32 %v1028_v51  ;;  %v1035_v28 = vadd.f32 1.0, %v4046_v57  ;;  %v5263_v51 = vld [vmem:[#allocation7 + $0x180] sm:$0xff]  ;;  %v5269_v57 = vld [vmem:[#allocation7 + $0x168] sm:$0xff] }
 0x34f   :  { %4051 = vrcp.f32 %v1035_v28  ;;  %v5281_v28 = vld [vmem:[#allocation7 + $0x148] sm:$0xff] }
 0x350   :  { %7060 = vst [vmem:[#allocation21_spill] sm:$0xff] %v5281_v28 }
 0x358   :  { %v4048_v38 = vpop.eup %4047 }
 0x359   :  { %v1039_v62 = vmul.f32 %v4048_v38, %v4044_v58  ;;  %v5266_v58 = vld [vmem:[#allocation7 + $0x190] sm:$0xff]  ;;  %v5272_v38 = vld [vmem:[#allocation7 + $0x178] sm:$0xff] }
 0x35a   :  { %v4050_v27 = vpop.eup %4049 }
 0x35b   :  { %v1038_v30 = vmul.f32 %v4050_v27, %v5138_v61  ;;  %v5233_v61 = vld [vmem:[#allocation7 + $0x1c8] sm:$0xff]  ;;  %v5278_v27 = vld [vmem:[#allocation7 + $0x170] sm:$0xff] }
 0x35c   :  { %v4052_v32 = vpop.eup %4051 }
 0x35d   :  { %v5220_v31 = vadd.f32 %v1039_v62, %v1038_v30  ;;  %v5275_v62 = vld [vmem:[#allocation7 + $0x160] sm:$0xff]  ;;  %v5284_v30 = vld [vmem:[#allocation7 + $0x158] sm:$0xff] }
 0x35e   :  { %7061 = vst [vmem:[#allocation22_spill] sm:$0xff] %v5284_v30 }
 0x35f   :  { %4053 = vtanh.f32 %v5220_v31 }
 0x36c   :  { %v4054_v33 = vpop.eup %4053 }
 0x36d   :  { %v5223_v2 = vmul.f32 %v4054_v33, %v4052_v32  ;;  %v5287_v32 = vld [vmem:[#allocation7 + $0x140] sm:$0xff]  ;;  %v5290_v33 = vld [vmem:[#allocation7 + $0x150] sm:$0xff] }
 0x36f   :  { %7059 = vst [vmem:[#allocation26_spill] sm:$0xff] %v5223_v2  ;;  %1115 = vmatmul.mubr.f32.vlgmr.msra.gmra.mxu0 %v5223_v2  ;;  %1186 = vmatmul.mubr.f32.vlgmr.msra.gmra.mxu1 %v5223_v2  ;;  %v5293_v2 = vld [vmem:[#allocation7 + $0x128] sm:$0xff] }
 0x370   :  { %1228 = vmatpush1.msra.mxu0 %v5227_v63  ;;  %1299 = vmatpush1.msra.mxu1 %v5230_v53 }
 0x371   :  { %1229 = vmatprep.subr.mxu0 %v5233_v61  ;;  %1300 = vmatprep.subr.mxu1 %v5236_v55 }
 0x372   :  { %1230 = vmatpush1.msra.mxu0 %v5239_v20  ;;  %1301 = vmatpush1.msra.mxu1 %v5242_v3 }
 0x373   :  { %1231 = vmatprep.subr.mxu0 %v5245_v60  ;;  %1302 = vmatprep.subr.mxu1 %v5248_v59 }
 0x374   :  { %1232 = vmatpush1.msra.mxu0 %v5251_v0  ;;  %1303 = vmatpush1.msra.mxu1 %v5254_v4 }
 0x375   :  { %1233 = vmatprep.subr.mxu0 %v5257_v29  ;;  %1304 = vmatprep.subr.mxu1 %v5260_v47 }
 0x376   :  { %1234 = vmatpush1.msra.mxu0 %v5263_v51  ;;  %1305 = vmatpush1.msra.mxu1 %v5266_v58 }
 0x377   :  { %1235 = vmatprep.subr.mxu0 %v5269_v57  ;;  %1306 = vmatprep.subr.mxu1 %v5272_v38 }
 0x378   :  { %1236 = vmatpush1.msra.mxu0 %v5275_v62  ;;  %1307 = vmatpush1.msra.mxu1 %v5278_v27 }
 0x379   :  { %1237 = vmatprep.subr.mxu0 %v5281_v28  ;;  %1308 = vmatprep.subr.mxu1 %v5284_v30  ;;  %v5299_v28 = vld [vmem:[#allocation7 + $0x120] sm:$0xff]  ;;  %v5302_v30 = vld [vmem:[#allocation7 + $0x130] sm:$0xff] }
 0x37a   :  { %1238 = vmatpush1.msra.mxu0 %v5287_v32  ;;  %1309 = vmatpush1.msra.mxu1 %v5290_v33 }
 0x37b   :  { %1239 = vmatprep.subr.mxu0 %v5293_v2  ;;  %1310 = vmatprep.subr.mxu1 %v5296_v11 }
 0x37c   :  { %1240 = vmatpush1.msra.mxu0 %v5299_v28  ;;  %1311 = vmatpush1.msra.mxu1 %v5302_v30 }
 0x37d   :  { %1241 = vmatprep.subr.mxu0 %v4747_v34  ;;  %1312 = vmatprep.subr.mxu1 %v4749_v35  ;;  %v7062_v35 = vld [vmem:[#allocation52_spill] sm:$0xff] }
 0x37e   :  { %1242 = vmatpush1.msra.mxu0 %v4755_v36  ;;  %1313 = vmatpush1.msra.mxu1 %v4757_v37 }
 0x37f   :  { %1243 = vmatprep.subr.mxu0 %v4766_v39  ;;  %1314 = vmatprep.subr.mxu1 %v4768_v40  ;;  %v7063_v40 = vld [vmem:[#allocation54_spill] sm:$0xff] }
 0x380   :  { %1244 = vmatpush1.msra.mxu0 %v4772_v41  ;;  %1315 = vmatpush1.msra.mxu1 %v4774_v42 }
 0x381   :  { %1245 = vmatprep.subr.mxu0 %v4776_v43  ;;  %1316 = vmatprep.subr.mxu1 %v4778_v44 }
 0x382   :  { %1246 = vmatpush1.msra.mxu0 %v4784_v45  ;;  %1317 = vmatpush1.msra.mxu1 %v4786_v46  ;;  %v7064_v45 = vld [vmem:[#allocation55_spill] sm:$0xff] }
 0x383   :  { %1247 = vmatprep.subr.mxu0 %v4795_v48  ;;  %1318 = vmatprep.subr.mxu1 %v4797_v49  ;;  %v7065_v48 = vld [vmem:[#allocation53_spill] sm:$0xff] }
 0x384   :  { %1248 = vmatpush1.msra.mxu0 %v4801_v50  ;;  %1319 = vmatpush1.msra.mxu1 %v7007_v56 }
 0x385   :  { %1249 = vmatprep.subr.mxu0 %v7008_v54  ;;  %1320 = vmatprep.subr.mxu1 %v7009_v52 }
 0x386   :  { %1250 = vmatpush1.msra.mxu0 %v7010_v1  ;;  %1321 = vmatpush1.msra.mxu1 %v7035_v5 }
 0x387   :  { %1251 = vmatprep.subr.mxu0 %v7036_v6  ;;  %1322 = vmatprep.subr.mxu1 %v7037_v7 }
 0x388   :  { %1252 = vmatpush1.msra.mxu0 %v7038_v8  ;;  %1323 = vmatpush1.msra.mxu1 %v7039_v9 }
 0x389   :  { %1253 = vmatprep.subr.mxu0 %v7040_v10  ;;  %1324 = vmatprep.subr.mxu1 %v7041_v12 }
 0x38a   :  { %1254 = vmatpush1.msra.mxu0 %v7042_v13  ;;  %1325 = vmatpush1.msra.mxu1 %v7043_v14 }
 0x38b   :  { %1255 = vmatprep.subr.mxu0 %v7044_v15  ;;  %1326 = vmatprep.subr.mxu1 %v7045_v16 }
 0x38c   :  { %1256 = vmatpush1.msra.mxu0 %v7046_v17  ;;  %1327 = vmatpush1.msra.mxu1 %v7047_v18  ;;  %v7067_v17 = vld [vmem:[#allocation21_spill] sm:$0xff]  ;;  %v7068_v18 = vld [vmem:[#allocation22_spill] sm:$0xff] }
 0x38d   :  { %1257 = vmatprep.subr.mxu0 %v7048_v19  ;;  %1328 = vmatprep.subr.mxu1 %v7049_v21  ;;  %v5383_v19 = vld [vmem:[#allocation7 + $0x108] sm:$0xff]  ;;  %v5386_v21 = vld [vmem:[#allocation7 + $0x118] sm:$0xff] }
 0x38e   :  { %1258 = vmatpush1.msra.mxu0 %v7050_v22  ;;  %1291 = vmatprep.mubr.f32.mxu0 %v7051_v23  ;;  %v5389_v22 = vld [vmem:[#allocation7 + $0x100] sm:$0xff] }
 0x38f   :  { %1329 = vmatpush1.msra.mxu1 %v7052_v24  ;;  %1362 = vmatprep.mubr.f32.mxu1 %v7051_v23  ;;  %v5392_v24 = vld [vmem:[#allocation7 + $0x110] sm:$0xff] }
 0x390   :  { %1404 = vmatprep.subr.mxu0 %v5209_v25  ;;  %1475 = vmatprep.subr.mxu1 %v5212_v26 }
 0x42f   :  { %v1116_v34 = vpop.f32.mrf.mxu0  ;;  %v1187_v42 = vpop.f32.mrf.mxu1 }
 0x430   :  { %v1192_v36 = vadd.f32 %v1116_v34, %v7062_v35  ;;  %v1194_v49 = vadd.f32 %v1187_v42, %v7065_v48  ;;  %v5398_v34 = vld [vmem:[#allocation7 + $0xf8] sm:$0xff]  ;;  %v5401_v35 = vld [vmem:[#allocation7 + $0xe0] sm:$0xff]  ;;  %v5419_v42 = vld [vmem:[#allocation7 + $0xa8] sm:$0xff] }
 0x431   :  { %v1118_v37 = vpop.f32.mrf.mxu0  ;;  %v1189_v44 = vpop.f32.mrf.mxu1  ;;  %v5434_v48 = vld [vmem:[#allocation7 + $0x98] sm:$0xff] }
 0x432   :  { %v3901_v39 = vmul.f32 -1.442695, %v1192_v36  ;;  %v1193_v41 = vadd.f32 %v1118_v37, %v7063_v40  ;;  %v1195_v46 = vadd.f32 %v1189_v44, %v7064_v45  ;;  %v5404_v36 = vld [vmem:[#allocation7 + $0xf0] sm:$0xff]  ;;  %v5407_v37 = vld [vmem:[#allocation7 + $0xc8] sm:$0xff]  ;;  %v5413_v40 = vld [vmem:[#allocation7 + $0xc0] sm:$0xff] }
 0x433   :  { %v5425_v44 = vld [vmem:[#allocation7 + $0xa0] sm:$0xff]  ;;  %v5428_v45 = vld [vmem:[#allocation7 + $0xb0] sm:$0xff] }
 0x434   :  { %4055 = vpow2.f32 %v3901_v39  ;;  %v3902_v43 = vmul.f32 -1.442695, %v1193_v41  ;;  %v3903_v50 = vmul.f32 -1.442695, %v1195_v46  ;;  %v5410_v39 = vld [vmem:[#allocation7 + $0xd8] sm:$0xff]  ;;  %v5416_v41 = vld [vmem:[#allocation7 + $0xd0] sm:$0xff] }
 0x435   :  { %v5431_v46 = vld [vmem:[#allocation7 + $0x88] sm:$0xff] }
 0x436   :  { %4057 = vpow2.f32 %v3902_v43  ;;  %v5422_v43 = vld [vmem:[#allocation7 + $0xb8] sm:$0xff] }
 0x437   :  { %4059 = vtanh.f32 %v1194_v49  ;;  %v5437_v49 = vld [vmem:[#allocation7 + $0x80] sm:$0xff] }
 0x438   :  { %4061 = vpow2.f32 %v3903_v50  ;;  %v5440_v50 = vld [vmem:[#allocation7 + $0x90] sm:$0xff] }
 0x439   :  { %7069 = vst [vmem:[#allocation47_spill] sm:$0xff] %v5440_v50 }
 0x441   :  { %v4056_v56 = vpop.eup %4055 }
 0x442   :  { %v1199_v54 = vadd.f32 1.0, %v4056_v56  ;;  %v5443_v56 = vld [vmem:[#allocation7 + $0x68] sm:$0xff] }
 0x443   :  { %v4058_v52 = vpop.eup %4057  ;;  %7070 = vst [vmem:[#allocation45_spill] sm:$0xff] %v5443_v56 }
 0x444   :  { %4063 = vrcp.f32 %v1199_v54  ;;  %v1205_v1 = vadd.f32 1.0, %v4058_v52  ;;  %v4060_v5 = vpop.eup %4059  ;;  %v5446_v54 = vld [vmem:[#allocation7 + $0x78] sm:$0xff]  ;;  %v5449_v52 = vld [vmem:[#allocation7 + $0x60] sm:$0xff] }
 0x445   :  { %v4062_v6 = vpop.eup %4061  ;;  %7071 = vst [vmem:[#allocation27_spill] sm:$0xff] %v5446_v54  ;;  %7072 = vst [vmem:[#allocation28_spill] sm:$0xff] %v5449_v52 }
 0x446   :  { %4065 = vrcp.f32 %v1205_v1  ;;  %v1212_v10 = vadd.f32 1.0, %v4062_v6  ;;  %v5452_v1 = vld [vmem:[#allocation7 + $0x70] sm:$0xff]  ;;  %v5458_v6 = vld [vmem:[#allocation7 + $0x58] sm:$0xff] }
 0x447   :  { %7073 = vst [vmem:[#allocation29_spill] sm:$0xff] %v5452_v1  ;;  %7075 = vst [vmem:[#allocation31_spill] sm:$0xff] %v5458_v6 }
 0x448   :  { %4067 = vrcp.f32 %v1212_v10  ;;  %v5470_v10 = vld [vmem:[#allocation7 + $0x38] sm:$0xff] }
 0x449   :  { %7079 = vst [vmem:[#allocation35_spill] sm:$0xff] %v5470_v10 }
 0x451   :  { %v4064_v7 = vpop.eup %4063 }
 0x452   :  { %v1216_v8 = vmul.f32 %v4064_v7, %v4060_v5  ;;  %v5455_v5 = vld [vmem:[#allocation7 + $0x48] sm:$0xff]  ;;  %v5461_v7 = vld [vmem:[#allocation7 + $0x40] sm:$0xff] }
 0x453   :  { %v4066_v9 = vpop.eup %4065  ;;  %7074 = vst [vmem:[#allocation30_spill] sm:$0xff] %v5455_v5  ;;  %7076 = vst [vmem:[#allocation32_spill] sm:$0xff] %v5461_v7 }
 0x454   :  { %v1215_v12 = vmul.f32 %v4066_v9, %v5220_v31  ;;  %v5395_v31 = vld [vmem:[#allocation7 + $0xe8] sm:$0xff] }
 0x455   :  { %v4068_v14 = vpop.eup %4067  ;;  %v5467_v9 = vld [vmem:[#allocation7 + $0x28] sm:$0xff] }
 0x456   :  { %v5350_v13 = vadd.f32 %v1216_v8, %v1215_v12  ;;  %v5464_v8 = vld [vmem:[#allocation7 + $0x50] sm:$0xff]  ;;  %7078 = vst [vmem:[#allocation34_spill] sm:$0xff] %v5467_v9  ;;  %v5473_v12 = vld [vmem:[#allocation7 + $0x20] sm:$0xff] }
 0x457   :  { %7077 = vst [vmem:[#allocation33_spill] sm:$0xff] %v5464_v8  ;;  %7080 = vst [vmem:[#allocation36_spill] sm:$0xff] %v5473_v12 }
 0x458   :  { %4069 = vtanh.f32 %v5350_v13 }
 0x465   :  { %v4070_v15 = vpop.eup %4069 }
 0x466   :  { %v5353_v16 = vmul.f32 %v4070_v15, %v4068_v14  ;;  %v5476_v14 = vld [vmem:[#allocation7 + $0x30] sm:$0xff]  ;;  %v5479_v15 = vld [vmem:[#allocation7 + $0x8] sm:$0xff] }
 0x467   :  { %7081 = vst [vmem:[#allocation37_spill] sm:$0xff] %v5476_v14  ;;  %7082 = vst [vmem:[#allocation38_spill] sm:$0xff] %v5479_v15 }
 0x468   :  { %7066 = vst [vmem:[#allocation46_spill] sm:$0xff] %v5353_v16  ;;  %1292 = vmatmul.mubr.f32.vlgmr.msra.gmra.mxu0 %v5353_v16  ;;  %1363 = vmatmul.mubr.f32.vlgmr.msra.gmra.mxu1 %v5353_v16  ;;  %v5482_v16 = vld [vmem:[#allocation7 + $0x18] sm:$0xff] }
 0x469   :  { %1405 = vmatpush1.msra.mxu0 %v5227_v63  ;;  %1476 = vmatpush1.msra.mxu1 %v5230_v53  ;;  %7083 = vst [vmem:[#allocation39_spill] sm:$0xff] %v5482_v16 }
 0x46a   :  { %1406 = vmatprep.subr.mxu0 %v5233_v61  ;;  %1477 = vmatprep.subr.mxu1 %v5236_v55 }
 0x46b   :  { %1407 = vmatpush1.msra.mxu0 %v5239_v20  ;;  %1478 = vmatpush1.msra.mxu1 %v5242_v3 }
 0x46c   :  { %1408 = vmatprep.subr.mxu0 %v5245_v60  ;;  %1479 = vmatprep.subr.mxu1 %v5248_v59 }
 0x46d   :  { %1409 = vmatpush1.msra.mxu0 %v5251_v0  ;;  %1480 = vmatpush1.msra.mxu1 %v5254_v4 }
 0x46e   :  { %1410 = vmatprep.subr.mxu0 %v5257_v29  ;;  %1481 = vmatprep.subr.mxu1 %v5260_v47 }
 0x46f   :  { %1411 = vmatpush1.msra.mxu0 %v5263_v51  ;;  %1482 = vmatpush1.msra.mxu1 %v5266_v58 }
 0x470   :  { %1412 = vmatprep.subr.mxu0 %v5269_v57  ;;  %1483 = vmatprep.subr.mxu1 %v5272_v38 }
 0x471   :  { %1413 = vmatpush1.msra.mxu0 %v5275_v62  ;;  %1484 = vmatpush1.msra.mxu1 %v5278_v27 }
 0x472   :  { %1414 = vmatprep.subr.mxu0 %v7067_v17  ;;  %1485 = vmatprep.subr.mxu1 %v7068_v18 }
 0x473   :  { %1415 = vmatpush1.msra.mxu0 %v5287_v32  ;;  %1486 = vmatpush1.msra.mxu1 %v5290_v33 }
 0x474   :  { %1416 = vmatprep.subr.mxu0 %v5293_v2  ;;  %1487 = vmatprep.subr.mxu1 %v5296_v11 }
 0x475   :  { %1417 = vmatpush1.msra.mxu0 %v5299_v28  ;;  %1488 = vmatpush1.msra.mxu1 %v5302_v30 }
 0x476   :  { %1418 = vmatprep.subr.mxu0 %v5383_v19  ;;  %1489 = vmatprep.subr.mxu1 %v5386_v21 }
 0x477   :  { %1419 = vmatpush1.msra.mxu0 %v5389_v22  ;;  %1490 = vmatpush1.msra.mxu1 %v5392_v24 }
 0x478   :  { %1420 = vmatprep.subr.mxu0 %v5395_v31  ;;  %1491 = vmatprep.subr.mxu1 %v5398_v34 }
 0x479   :  { %1421 = vmatpush1.msra.mxu0 %v5401_v35  ;;  %1492 = vmatpush1.msra.mxu1 %v5404_v36 }
 0x47a   :  { %1422 = vmatprep.subr.mxu0 %v5407_v37  ;;  %1493 = vmatprep.subr.mxu1 %v5410_v39 }
 0x47b   :  { %1423 = vmatpush1.msra.mxu0 %v5413_v40  ;;  %1494 = vmatpush1.msra.mxu1 %v5416_v41 }
 0x47c   :  { %1424 = vmatprep.subr.mxu0 %v5419_v42  ;;  %1495 = vmatprep.subr.mxu1 %v5422_v43 }
 0x47d   :  { %1425 = vmatpush1.msra.mxu0 %v5425_v44  ;;  %1496 = vmatpush1.msra.mxu1 %v5428_v45 }
 0x47e   :  { %1426 = vmatprep.subr.mxu0 %v5431_v46  ;;  %1497 = vmatprep.subr.mxu1 %v5434_v48 }
 0x47f   :  { %1427 = vmatpush1.msra.mxu0 %v5437_v49  ;;  %1498 = vmatpush1.msra.mxu1 %v5440_v50 }
 0x480   :  { %1428 = vmatprep.subr.mxu0 %v5443_v56  ;;  %1499 = vmatprep.subr.mxu1 %v5446_v54  ;;  %v7089_v54 = vld [vmem:[#allocation57_spill] sm:$0xff] }
 0x481   :  { %1429 = vmatpush1.msra.mxu0 %v5449_v52  ;;  %1500 = vmatpush1.msra.mxu1 %v5452_v1  ;;  %v7088_v52 = vld [vmem:[#allocation59_spill] sm:$0xff] }
 0x482   :  { %1430 = vmatprep.subr.mxu0 %v5455_v5  ;;  %1501 = vmatprep.subr.mxu1 %v5458_v6 }
 0x483   :  { %1431 = vmatpush1.msra.mxu0 %v5461_v7  ;;  %1502 = vmatpush1.msra.mxu1 %v5464_v8  ;;  %v7087_v7 = vld [vmem:[#allocation58_spill] sm:$0xff] }
 0x484   :  { %1432 = vmatprep.subr.mxu0 %v5467_v9  ;;  %1503 = vmatprep.subr.mxu1 %v5470_v10  ;;  %v5485_v9 = vld [vmem:[#allocation7] sm:$0xff]  ;;  %v5489_v10 = vld [vmem:[#allocation7 + $0x10] sm:$0xff] }
 0x485   :  { %1433 = vmatpush1.msra.mxu0 %v5473_v12  ;;  %1504 = vmatpush1.msra.mxu1 %v5476_v14  ;;  %7084 = vst [vmem:[#allocation40_spill] sm:$0xff] %v5485_v9  ;;  %7085 = vst [vmem:[#allocation41_spill] sm:$0xff] %v5489_v10  ;;  %v7086_v14 = vld [vmem:[#allocation56_spill] sm:$0xff] }
 0x486   :  { %1434 = vmatprep.subr.mxu0 %v5479_v15  ;;  %1505 = vmatprep.subr.mxu1 %v5482_v16 }
 0x487   :  { %1435 = vmatpush1.msra.mxu0 %v5485_v9  ;;  %1468 = vmatprep.mubr.f32.mxu0 %v7051_v23 }
 0x488   :  { %1506 = vmatpush1.msra.mxu1 %v5489_v10  ;;  %1539 = vmatprep.mubr.f32.mxu1 %v7051_v23 }
 0x489   :  { %1581 = vmatprep.subr.mxu0 %v5209_v25  ;;  %1652 = vmatprep.subr.mxu1 %v5212_v26 }
 0x528   :  { %v1293_v15 = vpop.f32.mrf.mxu0  ;;  %v1364_v9 = vpop.f32.mrf.mxu1 }
 0x529   :  { %v1369_v12 = vadd.f32 %v1293_v15, %v7086_v14  ;;  %v1371_v23 = vadd.f32 %v1364_v9, %v7089_v54  ;;  %v7096_v9 = vld [vmem:[#allocation30_spill] sm:$0xff] }
 0x52a   :  { %v1295_v16 = vpop.f32.mrf.mxu0  ;;  %v1366_v1 = vpop.f32.mrf.mxu1 }
 0x52b   :  { %v3904_v8 = vmul.f32 -1.442695, %v1369_v12  ;;  %v1370_v6 = vadd.f32 %v1295_v16, %v7087_v7  ;;  %v1372_v10 = vadd.f32 %v1366_v1, %v7088_v52  ;;  %v7095_v1 = vld [vmem:[#allocation29_spill] sm:$0xff] }
 0x52d   :  { %4071 = vpow2.f32 %v3904_v8  ;;  %v3905_v5 = vmul.f32 -1.442695, %v1370_v6  ;;  %v3906_v56 = vmul.f32 -1.442695, %v1372_v10  ;;  %v7097_v10 = vld [vmem:[#allocation31_spill] sm:$0xff] }
 0x52f   :  { %4073 = vpow2.f32 %v3905_v5 }
 0x530   :  { %4075 = vtanh.f32 %v1371_v23 }
 0x531   :  { %4077 = vpow2.f32 %v3906_v56  ;;  %v7094_v56 = vld [vmem:[#allocation28_spill] sm:$0xff] }
 0x53a   :  { %v4072_v25 = vpop.eup %4071 }
 0x53b   :  { %v1376_v50 = vadd.f32 1.0, %v4072_v25 }
 0x53c   :  { %v4074_v26 = vpop.eup %4073 }
 0x53d   :  { %4079 = vrcp.f32 %v1376_v50  ;;  %v1382_v14 = vadd.f32 1.0, %v4074_v26  ;;  %v4076_v12 = vpop.eup %4075  ;;  %v7091_v26 = vld [vmem:[#allocation47_spill] sm:$0xff] }
 0x53e   :  { %v4078_v16 = vpop.eup %4077  ;;  %v7093_v50 = vld [vmem:[#allocation27_spill] sm:$0xff] }
 0x53f   :  { %4081 = vrcp.f32 %v1382_v14  ;;  %v1389_v5 = vadd.f32 1.0, %v4078_v16  ;;  %v7098_v14 = vld [vmem:[#allocation32_spill] sm:$0xff]  ;;  %v7100_v16 = vld [vmem:[#allocation34_spill] sm:$0xff] }
 0x541   :  { %4083 = vrcp.f32 %v1389_v5  ;;  %v7104_v5 = vld [vmem:[#allocation38_spill] sm:$0xff] }
 0x54a   :  { %v4080_v7 = vpop.eup %4079 }
 0x54b   :  { %v1393_v8 = vmul.f32 %v4080_v7, %v4076_v12  ;;  %v7099_v12 = vld [vmem:[#allocation33_spill] sm:$0xff]  ;;  %v7101_v7 = vld [vmem:[#allocation35_spill] sm:$0xff] }
 0x54c   :  { %v4082_v6 = vpop.eup %4081 }
 0x54d   :  { %v1392_v15 = vmul.f32 %v4082_v6, %v5350_v13  ;;  %v7092_v13 = vld [vmem:[#allocation45_spill] sm:$0xff] }
 0x54e   :  { %v4084_v25 = vpop.eup %4083  ;;  %v7103_v6 = vld [vmem:[#allocation37_spill] sm:$0xff] }
 0x54f   :  { %v5500_v52 = vadd.f32 %v1393_v8, %v1392_v15  ;;  %v7102_v8 = vld [vmem:[#allocation36_spill] sm:$0xff]  ;;  %v7105_v15 = vld [vmem:[#allocation39_spill] sm:$0xff] }
 0x551   :  { %4085 = vtanh.f32 %v5500_v52 }
 0x55e   :  { %v4086_v23 = vpop.eup %4085 }
 0x55f   :  { %v5503_v54 = vmul.f32 %v4086_v23, %v4084_v25  ;;  %v7106_v25 = vld [vmem:[#allocation40_spill] sm:$0xff]  ;;  %v7107_v23 = vmov 0.0  }
 0x561   :  { %7090 = vst [vmem:[#allocation42_spill] sm:$0xff] %v5503_v54  ;;  %1469 = vmatmul.mubr.f32.vlgmr.msra.gmra.mxu0 %v5503_v54  ;;  %1540 = vmatmul.mubr.f32.vlgmr.msra.gmra.mxu1 %v5503_v54  ;;  %v7108_v54 = vld [vmem:[#allocation41_spill] sm:$0xff] }
 0x562   :  { %1582 = vmatpush1.msra.mxu0 %v5227_v63  ;;  %1653 = vmatpush1.msra.mxu1 %v5230_v53 }
 0x563   :  { %1583 = vmatprep.subr.mxu0 %v5233_v61  ;;  %1654 = vmatprep.subr.mxu1 %v5236_v55 }
 0x564   :  { %1584 = vmatpush1.msra.mxu0 %v5239_v20  ;;  %1655 = vmatpush1.msra.mxu1 %v5242_v3 }
 0x565   :  { %1585 = vmatprep.subr.mxu0 %v5245_v60  ;;  %1656 = vmatprep.subr.mxu1 %v5248_v59 }
 0x566   :  { %1586 = vmatpush1.msra.mxu0 %v5251_v0  ;;  %1657 = vmatpush1.msra.mxu1 %v5254_v4 }
 0x567   :  { %1587 = vmatprep.subr.mxu0 %v5257_v29  ;;  %1658 = vmatprep.subr.mxu1 %v5260_v47 }
 0x568   :  { %1588 = vmatpush1.msra.mxu0 %v5263_v51  ;;  %1659 = vmatpush1.msra.mxu1 %v5266_v58 }
 0x569   :  { %1589 = vmatprep.subr.mxu0 %v5269_v57  ;;  %1660 = vmatprep.subr.mxu1 %v5272_v38 }
 0x56a   :  { %1590 = vmatpush1.msra.mxu0 %v5275_v62  ;;  %1661 = vmatpush1.msra.mxu1 %v5278_v27 }
 0x56b   :  { %1591 = vmatprep.subr.mxu0 %v7067_v17  ;;  %1662 = vmatprep.subr.mxu1 %v7068_v18 }
 0x56c   :  { %1592 = vmatpush1.msra.mxu0 %v5287_v32  ;;  %1663 = vmatpush1.msra.mxu1 %v5290_v33 }
 0x56d   :  { %1593 = vmatprep.subr.mxu0 %v5293_v2  ;;  %1664 = vmatprep.subr.mxu1 %v5296_v11 }
 0x56e   :  { %1594 = vmatpush1.msra.mxu0 %v5299_v28  ;;  %1665 = vmatpush1.msra.mxu1 %v5302_v30 }
 0x56f   :  { %1595 = vmatprep.subr.mxu0 %v5383_v19  ;;  %1666 = vmatprep.subr.mxu1 %v5386_v21 }
 0x570   :  { %1596 = vmatpush1.msra.mxu0 %v5389_v22  ;;  %1667 = vmatpush1.msra.mxu1 %v5392_v24 }
 0x571   :  { %1597 = vmatprep.subr.mxu0 %v5395_v31  ;;  %1668 = vmatprep.subr.mxu1 %v5398_v34 }
 0x572   :  { %1598 = vmatpush1.msra.mxu0 %v5401_v35  ;;  %1669 = vmatpush1.msra.mxu1 %v5404_v36 }
 0x573   :  { %1599 = vmatprep.subr.mxu0 %v5407_v37  ;;  %1670 = vmatprep.subr.mxu1 %v5410_v39 }
 0x574   :  { %1600 = vmatpush1.msra.mxu0 %v5413_v40  ;;  %1671 = vmatpush1.msra.mxu1 %v5416_v41 }
 0x575   :  { %1601 = vmatprep.subr.mxu0 %v5419_v42  ;;  %1672 = vmatprep.subr.mxu1 %v5422_v43 }
 0x576   :  { %1602 = vmatpush1.msra.mxu0 %v5425_v44  ;;  %1673 = vmatpush1.msra.mxu1 %v5428_v45 }
 0x577   :  { %1603 = vmatprep.subr.mxu0 %v5431_v46  ;;  %1674 = vmatprep.subr.mxu1 %v5434_v48 }
 0x578   :  { %1604 = vmatpush1.msra.mxu0 %v5437_v49  ;;  %1675 = vmatpush1.msra.mxu1 %v7091_v26 }
 0x579   :  { %1605 = vmatprep.subr.mxu0 %v7092_v13  ;;  %1676 = vmatprep.subr.mxu1 %v7093_v50  ;;  %v7114_v50 = vld [vmem:[#allocation61_spill] sm:$0xff] }
 0x57a   :  { %1606 = vmatpush1.msra.mxu0 %v7094_v56  ;;  %1677 = vmatpush1.msra.mxu1 %v7095_v1  ;;  %v7113_v56 = vld [vmem:[#allocation63_spill] sm:$0xff] }
 0x57b   :  { %1607 = vmatprep.subr.mxu0 %v7096_v9  ;;  %1678 = vmatprep.subr.mxu1 %v7097_v10 }
 0x57c   :  { %1608 = vmatpush1.msra.mxu0 %v7098_v14  ;;  %1679 = vmatpush1.msra.mxu1 %v7099_v12  ;;  %v7109_v12 = vld [vmem:[#allocation24_spill] sm:$0xff] }
 0x57d   :  { %1609 = vmatprep.subr.mxu0 %v7100_v16  ;;  %1680 = vmatprep.subr.mxu1 %v7101_v7  ;;  %v7110_v16 = vld [vmem:[#allocation25_spill] sm:$0xff] }
 0x57e   :  { %1610 = vmatpush1.msra.mxu0 %v7102_v8  ;;  %1681 = vmatpush1.msra.mxu1 %v7103_v6  ;;  %v7111_v8 = vld [vmem:[#allocation60_spill] sm:$0xff] }
 0x57f   :  { %1611 = vmatprep.subr.mxu0 %v7104_v5  ;;  %1682 = vmatprep.subr.mxu1 %v7105_v15  ;;  %v7112_v5 = vld [vmem:[#allocation62_spill] sm:$0xff] }
 0x580   :  { %1612 = vmatpush1.msra.mxu0 %v7106_v25  ;;  %1645 = vmatprep.mubr.f32.mxu0 %v7107_v23 }
 0x581   :  { %1683 = vmatpush1.msra.mxu1 %v7108_v54  ;;  %1716 = vmatprep.mubr.f32.mxu1 %v7107_v23 }
 0x582   :  { %1758 = vmatprep.subr.mxu0 %v7109_v12  ;;  %1829 = vmatprep.subr.mxu1 %v7110_v16 }
 0x621   :  { %v1470_v7 = vpop.f32.mrf.mxu0  ;;  %v1541_v15 = vpop.f32.mrf.mxu1 }
 0x622   :  { %v1546_v14 = vadd.f32 %v1470_v7, %v7111_v8  ;;  %v1548_v23 = vadd.f32 %v1541_v15, %v7114_v50 }
 0x623   :  { %v1472_v6 = vpop.f32.mrf.mxu0  ;;  %v1543_v1 = vpop.f32.mrf.mxu1 }
 0x624   :  { %v3907_v10 = vmul.f32 -1.442695, %v1546_v14  ;;  %v1547_v9 = vadd.f32 %v1472_v6, %v7112_v5  ;;  %v1549_v54 = vadd.f32 %v1543_v1, %v7113_v56 }
 0x626   :  { %4087 = vpow2.f32 %v3907_v10  ;;  %v3908_v25 = vmul.f32 -1.442695, %v1547_v9  ;;  %v3909_v13 = vmul.f32 -1.442695, %v1549_v54 }
 0x628   :  { %4089 = vpow2.f32 %v3908_v25 }
 0x629   :  { %4091 = vtanh.f32 %v1548_v23 }
 0x62a   :  { %4093 = vpow2.f32 %v3909_v13 }
 0x633   :  { %v4088_v12 = vpop.eup %4087 }
 0x634   :  { %v1553_v26 = vadd.f32 1.0, %v4088_v12  ;;  %v1993_v12 = vld [vmem:[#allocation9 + $0x1e0] sm:$0xff] }
 0x635   :  { %v4090_v16 = vpop.eup %4089 }
 0x636   :  { %4095 = vrcp.f32 %v1553_v26  ;;  %v1559_v7 = vadd.f32 1.0, %v4090_v16  ;;  %v4092_v14 = vpop.eup %4091  ;;  %v1995_v16 = vld [vmem:[#allocation9 + $0x1f0] sm:$0xff] }
 0x637   :  { %v4094_v8 = vpop.eup %4093 }
 0x638   :  { %4097 = vrcp.f32 %v1559_v7  ;;  %v1566_v5 = vadd.f32 1.0, %v4094_v8  ;;  %v1990_v7 = vld [vmem:[#allocation9 + $0x1c8] sm:$0xff]  ;;  %v1989_v8 = vld [vmem:[#allocation9 + $0x1c0] sm:$0xff] }
 0x63a   :  { %4099 = vrcp.f32 %v1566_v5  ;;  %v1985_v5 = vld [vmem:[#allocation9 + $0x1a0] sm:$0xff] }
 0x643   :  { %v4096_v10 = vpop.eup %4095 }
 0x644   :  { %v1570_v6 = vmul.f32 %v4096_v10, %v4092_v14  ;;  %v1992_v14 = vld [vmem:[#allocation9 + $0x1d8] sm:$0xff]  ;;  %v1991_v10 = vld [vmem:[#allocation9 + $0x1d0] sm:$0xff] }
 0x645   :  { %v4098_v9 = vpop.eup %4097 }
 0x646   :  { %v1569_v25 = vmul.f32 %v4098_v9, %v5500_v52  ;;  %v1988_v9 = vld [vmem:[#allocation9 + $0x1b8] sm:$0xff] }
 0x647   :  { %v4100_v54 = vpop.eup %4099 }
 0x648   :  { %v5578_v56 = vadd.f32 %v1570_v6, %v1569_v25  ;;  %v1986_v6 = vld [vmem:[#allocation9 + $0x1a8] sm:$0xff]  ;;  %v1987_v25 = vld [vmem:[#allocation9 + $0x1b0] sm:$0xff] }
 0x64a   :  { %4101 = vtanh.f32 %v5578_v56 }
 0x657   :  { %v4102_v50 = vpop.eup %4101 }
 0x658   :  { %v5581_v1 = vmul.f32 %v4102_v50, %v4100_v54  ;;  %v1984_v54 = vld [vmem:[#allocation9 + $0x198] sm:$0xff]  ;;  %v1981_v50 = vld [vmem:[#allocation9 + $0x180] sm:$0xff] }
 0x65a   :  { %1646 = vmatmul.mubr.f32.vlgmr.msra.gmra.mxu0 %v5581_v1  ;;  %1717 = vmatmul.mubr.f32.vlgmr.msra.gmra.mxu1 %v5581_v1 }
 0x65b   :  { %1759 = vmatpush1.msra.mxu0 %v5227_v63  ;;  %1830 = vmatpush1.msra.mxu1 %v5230_v53  ;;  %v7117_v63 = vld [vmem:[#allocation27_spill] sm:$0xff]  ;;  %v7118_v53 = vld [vmem:[#allocation28_spill] sm:$0xff] }
 0x65c   :  { %1760 = vmatprep.subr.mxu0 %v5233_v61  ;;  %1831 = vmatprep.subr.mxu1 %v5236_v55  ;;  %v7119_v61 = vld [vmem:[#allocation29_spill] sm:$0xff]  ;;  %v7120_v55 = vld [vmem:[#allocation30_spill] sm:$0xff] }
 0x65d   :  { %1761 = vmatpush1.msra.mxu0 %v5239_v20  ;;  %1832 = vmatpush1.msra.mxu1 %v5242_v3  ;;  %v7121_v20 = vld [vmem:[#allocation31_spill] sm:$0xff]  ;;  %v7122_v3 = vld [vmem:[#allocation32_spill] sm:$0xff] }
 0x65e   :  { %1762 = vmatprep.subr.mxu0 %v5245_v60  ;;  %1833 = vmatprep.subr.mxu1 %v5248_v59  ;;  %v7123_v60 = vld [vmem:[#allocation33_spill] sm:$0xff]  ;;  %v7124_v59 = vld [vmem:[#allocation34_spill] sm:$0xff] }
 0x65f   :  { %1763 = vmatpush1.msra.mxu0 %v5251_v0  ;;  %1834 = vmatpush1.msra.mxu1 %v5254_v4  ;;  %v7125_v0 = vld [vmem:[#allocation35_spill] sm:$0xff]  ;;  %v7126_v4 = vld [vmem:[#allocation36_spill] sm:$0xff] }
 0x660   :  { %1764 = vmatprep.subr.mxu0 %v5257_v29  ;;  %1835 = vmatprep.subr.mxu1 %v5260_v47  ;;  %v7127_v29 = vld [vmem:[#allocation37_spill] sm:$0xff]  ;;  %v7128_v47 = vld [vmem:[#allocation38_spill] sm:$0xff] }
 0x661   :  { %1765 = vmatpush1.msra.mxu0 %v5263_v51  ;;  %1836 = vmatpush1.msra.mxu1 %v5266_v58  ;;  %v7129_v51 = vld [vmem:[#allocation39_spill] sm:$0xff]  ;;  %v7130_v58 = vld [vmem:[#allocation40_spill] sm:$0xff] }
 0x662   :  { %1766 = vmatprep.subr.mxu0 %v5269_v57  ;;  %1837 = vmatprep.subr.mxu1 %v5272_v38  ;;  %v7131_v57 = vld [vmem:[#allocation41_spill] sm:$0xff]  ;;  %v7132_v38 = vmov 0.0  }
 0x663   :  { %1767 = vmatpush1.msra.mxu0 %v5275_v62  ;;  %1838 = vmatpush1.msra.mxu1 %v5278_v27  ;;  %v1994_v62 = vld [vmem:[#allocation9 + $0x1e8] sm:$0xff]  ;;  %v1996_v27 = vld [vmem:[#allocation9 + $0x1f8] sm:$0xff] }
 0x664   :  { %1768 = vmatprep.subr.mxu0 %v7067_v17  ;;  %1839 = vmatprep.subr.mxu1 %v7068_v18  ;;  %v7134_v18 = vld [vmem:[#allocation66_spill] sm:$0xff] }
 0x665   :  { %1769 = vmatpush1.msra.mxu0 %v5287_v32  ;;  %1840 = vmatpush1.msra.mxu1 %v5290_v33 }
 0x666   :  { %1770 = vmatprep.subr.mxu0 %v5293_v2  ;;  %1841 = vmatprep.subr.mxu1 %v5296_v11  ;;  %v7115_v11 = vld [vmem:[#allocation47_spill] sm:$0xff]  ;;  %v7116_v2 = vld [vmem:[#allocation45_spill] sm:$0xff] }
 0x667   :  { %1771 = vmatpush1.msra.mxu0 %v5299_v28  ;;  %1842 = vmatpush1.msra.mxu1 %v5302_v30  ;;  %v7133_v30 = vld [vmem:[#allocation64_spill] sm:$0xff] }
 0x668   :  { %1772 = vmatprep.subr.mxu0 %v5383_v19  ;;  %1843 = vmatprep.subr.mxu1 %v5386_v21 }
 0x669   :  { %1773 = vmatpush1.msra.mxu0 %v5389_v22  ;;  %1844 = vmatpush1.msra.mxu1 %v5392_v24 }
 0x66a   :  { %1774 = vmatprep.subr.mxu0 %v5395_v31  ;;  %1845 = vmatprep.subr.mxu1 %v5398_v34  ;;  %v7135_v31 = vld [vmem:[#allocation67_spill] sm:$0xff] }
 0x66b   :  { %1775 = vmatpush1.msra.mxu0 %v5401_v35  ;;  %1846 = vmatpush1.msra.mxu1 %v5404_v36  ;;  %v7136_v35 = vld [vmem:[#allocation65_spill] sm:$0xff] }
 0x66c   :  { %1776 = vmatprep.subr.mxu0 %v5407_v37  ;;  %1847 = vmatprep.subr.mxu1 %v5410_v39 }
 0x66d   :  { %1777 = vmatpush1.msra.mxu0 %v5413_v40  ;;  %1848 = vmatpush1.msra.mxu1 %v5416_v41 }
 0x66e   :  { %1778 = vmatprep.subr.mxu0 %v5419_v42  ;;  %1849 = vmatprep.subr.mxu1 %v5422_v43 }
 0x66f   :  { %1779 = vmatpush1.msra.mxu0 %v5425_v44  ;;  %1850 = vmatpush1.msra.mxu1 %v5428_v45 }
 0x670   :  { %1780 = vmatprep.subr.mxu0 %v5431_v46  ;;  %1851 = vmatprep.subr.mxu1 %v5434_v48 }
 0x671   :  { %1781 = vmatpush1.msra.mxu0 %v5437_v49  ;;  %1852 = vmatpush1.msra.mxu1 %v7115_v11  ;;  %v1983_v11 = vld [vmem:[#allocation9 + $0x190] sm:$0xff] }
 0x672   :  { %1782 = vmatprep.subr.mxu0 %v7116_v2  ;;  %1853 = vmatprep.subr.mxu1 %v7117_v63  ;;  %v1978_v2 = vld [vmem:[#allocation9 + $0x168] sm:$0xff]  ;;  %v1980_v63 = vld [vmem:[#allocation9 + $0x178] sm:$0xff] }
 0x673   :  { %1783 = vmatpush1.msra.mxu0 %v7118_v53  ;;  %1854 = vmatpush1.msra.mxu1 %v7119_v61  ;;  %v1977_v53 = vld [vmem:[#allocation9 + $0x160] sm:$0xff]  ;;  %v1979_v61 = vld [vmem:[#allocation9 + $0x170] sm:$0xff] }
 0x674   :  { %1784 = vmatprep.subr.mxu0 %v7120_v55  ;;  %1855 = vmatprep.subr.mxu1 %v7121_v20  ;;  %v1974_v55 = vld [vmem:[#allocation9 + $0x148] sm:$0xff]  ;;  %v1976_v20 = vld [vmem:[#allocation9 + $0x158] sm:$0xff] }
 0x675   :  { %1785 = vmatpush1.msra.mxu0 %v7122_v3  ;;  %1856 = vmatpush1.msra.mxu1 %v7123_v60  ;;  %v1973_v3 = vld [vmem:[#allocation9 + $0x140] sm:$0xff]  ;;  %v1975_v60 = vld [vmem:[#allocation9 + $0x150] sm:$0xff] }
 0x676   :  { %1786 = vmatprep.subr.mxu0 %v7124_v59  ;;  %1857 = vmatprep.subr.mxu1 %v7125_v0  ;;  %v1970_v59 = vld [vmem:[#allocation9 + $0x128] sm:$0xff]  ;;  %v1972_v0 = vld [vmem:[#allocation9 + $0x138] sm:$0xff] }
 0x677   :  { %1787 = vmatpush1.msra.mxu0 %v7126_v4  ;;  %1858 = vmatpush1.msra.mxu1 %v7127_v29  ;;  %v1969_v4 = vld [vmem:[#allocation9 + $0x120] sm:$0xff]  ;;  %v1971_v29 = vld [vmem:[#allocation9 + $0x130] sm:$0xff] }
 0x678   :  { %1788 = vmatprep.subr.mxu0 %v7128_v47  ;;  %1859 = vmatprep.subr.mxu1 %v7129_v51  ;;  %v1966_v47 = vld [vmem:[#allocation9 + $0x108] sm:$0xff]  ;;  %v1968_v51 = vld [vmem:[#allocation9 + $0x118] sm:$0xff] }
 0x679   :  { %1789 = vmatpush1.msra.mxu0 %v7130_v58  ;;  %1860 = vmatpush1.msra.mxu1 %v7131_v57  ;;  %v1965_v58 = vld [vmem:[#allocation9 + $0x100] sm:$0xff]  ;;  %v1967_v57 = vld [vmem:[#allocation9 + $0x110] sm:$0xff] }
 0x67a   :  { %1822 = vmatprep.mubr.f32.mxu0 %v7132_v38  ;;  %1893 = vmatprep.mubr.f32.mxu1 %v7132_v38 }
 0x67b   :  { %2091 = vmatprep.subr.mxu0 %v1994_v62  ;;  %2204 = vmatprep.subr.mxu1 %v1996_v27  ;;  %v1962_v62 = vld [vmem:[#allocation9 + $0xe8] sm:$0xff]  ;;  %v1964_v27 = vld [vmem:[#allocation9 + $0xf8] sm:$0xff] }
 0x71a   :  { %v1647_v28 = vpop.f32.mrf.mxu0  ;;  %v1718_v21 = vpop.f32.mrf.mxu1 }
 0x71b   :  { %v1723_v32 = vadd.f32 %v1647_v28, %v7133_v30  ;;  %v1725_v36 = vadd.f32 %v1718_v21, %v7136_v35  ;;  %v1961_v28 = vld [vmem:[#allocation9 + $0xe0] sm:$0xff]  ;;  %v1963_v30 = vld [vmem:[#allocation9 + $0xf0] sm:$0xff]  ;;  %v1956_v21 = vld [vmem:[#allocation9 + $0xb8] sm:$0xff] }
 0x71c   :  { %v1649_v33 = vpop.f32.mrf.mxu0  ;;  %v1720_v24 = vpop.f32.mrf.mxu1  ;;  %v1949_v35 = vld [vmem:[#allocation9 + $0x80] sm:$0xff] }
 0x71d   :  { %v3910_v17 = vmul.f32 -1.442695, %v1723_v32  ;;  %v1724_v19 = vadd.f32 %v1649_v33, %v7134_v18  ;;  %v1726_v34 = vadd.f32 %v1720_v24, %v7135_v31  ;;  %v1958_v32 = vld [vmem:[#allocation9 + $0xc8] sm:$0xff]  ;;  %v1960_v33 = vld [vmem:[#allocation9 + $0xd8] sm:$0xff]  ;;  %v1959_v18 = vld [vmem:[#allocation9 + $0xd0] sm:$0xff] }
 0x71e   :  { %v1955_v24 = vld [vmem:[#allocation9 + $0xb0] sm:$0xff]  ;;  %v1950_v31 = vld [vmem:[#allocation9 + $0x88] sm:$0xff] }
 0x71f   :  { %4103 = vpow2.f32 %v3910_v17  ;;  %v3911_v22 = vmul.f32 -1.442695, %v1724_v19  ;;  %v3912_v37 = vmul.f32 -1.442695, %v1726_v34  ;;  %v1957_v17 = vld [vmem:[#allocation9 + $0xc0] sm:$0xff]  ;;  %v1954_v19 = vld [vmem:[#allocation9 + $0xa8] sm:$0xff] }
 0x720   :  { %v1952_v34 = vld [vmem:[#allocation9 + $0x98] sm:$0xff] }
 0x721   :  { %4105 = vpow2.f32 %v3911_v22  ;;  %v1953_v22 = vld [vmem:[#allocation9 + $0xa0] sm:$0xff] }
 0x722   :  { %4107 = vtanh.f32 %v1725_v36  ;;  %v1951_v36 = vld [vmem:[#allocation9 + $0x90] sm:$0xff] }
 0x723   :  { %4109 = vpow2.f32 %v3912_v37  ;;  %v1946_v37 = vld [vmem:[#allocation9 + $0x68] sm:$0xff] }
 0x72c   :  { %v4104_v39 = vpop.eup %4103 }
 0x72d   :  { %v1730_v40 = vadd.f32 1.0, %v4104_v39  ;;  %v1948_v39 = vld [vmem:[#allocation9 + $0x78] sm:$0xff] }
 0x72e   :  { %v4106_v41 = vpop.eup %4105 }
 0x72f   :  { %4111 = vrcp.f32 %v1730_v40  ;;  %v1736_v42 = vadd.f32 1.0, %v4106_v41  ;;  %v4108_v43 = vpop.eup %4107  ;;  %v1945_v40 = vld [vmem:[#allocation9 + $0x60] sm:$0xff]  ;;  %v1947_v41 = vld [vmem:[#allocation9 + $0x70] sm:$0xff] }
 0x730   :  { %v4110_v44 = vpop.eup %4109 }
 0x731   :  { %4113 = vrcp.f32 %v1736_v42  ;;  %v1743_v49 = vadd.f32 1.0, %v4110_v44  ;;  %v1942_v42 = vld [vmem:[#allocation9 + $0x48] sm:$0xff]  ;;  %v1941_v44 = vld [vmem:[#allocation9 + $0x40] sm:$0xff] }
 0x733   :  { %4115 = vrcp.f32 %v1743_v49  ;;  %v1937_v49 = vld [vmem:[#allocation9 + $0x20] sm:$0xff] }
 0x73c   :  { %v4112_v45 = vpop.eup %4111 }
 0x73d   :  { %v1747_v46 = vmul.f32 %v4112_v45, %v4108_v43  ;;  %v1944_v43 = vld [vmem:[#allocation9 + $0x58] sm:$0xff]  ;;  %v1943_v45 = vld [vmem:[#allocation9 + $0x50] sm:$0xff] }
 0x73e   :  { %v4114_v48 = vpop.eup %4113 }
 0x73f   :  { %v1746_v52 = vmul.f32 %v4114_v48, %v5578_v56  ;;  %v1982_v56 = vld [vmem:[#allocation9 + $0x188] sm:$0xff]  ;;  %v1940_v48 = vld [vmem:[#allocation9 + $0x38] sm:$0xff] }
 0x740   :  { %v4116_v13 = vpop.eup %4115 }
 0x741   :  { %v5654_v26 = vadd.f32 %v1747_v46, %v1746_v52  ;;  %v1938_v46 = vld [vmem:[#allocation9 + $0x28] sm:$0xff]  ;;  %v1939_v52 = vld [vmem:[#allocation9 + $0x30] sm:$0xff] }
 0x743   :  { %4117 = vtanh.f32 %v5654_v26 }
 0x750   :  { %v4118_v15 = vpop.eup %4117 }
 0x751   :  { %v5657_v23 = vmul.f32 %v4118_v15, %v4116_v13  ;;  %v1934_v13 = vld [vmem:[#allocation9 + $0x8] sm:$0xff]  ;;  %v1936_v15 = vld [vmem:[#allocation9 + $0x18] sm:$0xff] }
 0x753   :  { %1823 = vmatmul.mubr.f32.vlgmr.msra.gmra.mxu0 %v5657_v23  ;;  %1894 = vmatmul.mubr.f32.vlgmr.msra.gmra.mxu1 %v5657_v23 }
 0x754   :  { %2092 = vmatpush1.msra.mxu0 %v1993_v12  ;;  %2205 = vmatpush1.msra.mxu1 %v1995_v16  ;;  %v1933_v12 = vld [vmem:[#allocation9] sm:$0xff]  ;;  %v1935_v16 = vld [vmem:[#allocation9 + $0x10] sm:$0xff] }
 0x755   :  { %2093 = vmatprep.subr.mxu0 %v1990_v7  ;;  %2206 = vmatprep.subr.mxu1 %v1992_v14  ;;  %v7137_v7 = vld [vmem:[#allocation72_spill] sm:$0xff]  ;;  %v7138_v14 = vld [vmem:[#allocation23_spill] sm:$0xff] }
 0x756   :  { %2094 = vmatpush1.msra.mxu0 %v1989_v8  ;;  %2207 = vmatpush1.msra.mxu1 %v1991_v10  ;;  %v7139_v8 = vld [vmem:[#allocation26_spill] sm:$0xff] }
 0x757   :  { %2095 = vmatprep.subr.mxu0 %v1986_v6  ;;  %2208 = vmatprep.subr.mxu1 %v1988_v9  ;;  %v7140_v10 = vld [vmem:[#allocation46_spill] sm:$0xff]  ;;  %v5691_v9 = vld [vmem:[#allocation10 + $0x1e8] sm:$0xff] }
 0x758   :  { %2096 = vmatpush1.msra.mxu0 %v1985_v5  ;;  %2209 = vmatpush1.msra.mxu1 %v1987_v25  ;;  %v7141_v6 = vld [vmem:[#allocation42_spill] sm:$0xff]  ;;  %7142 = vst [vmem:[#allocation43_spill] sm:$0xff] %v5691_v9 }
 0x759   :  { %2097 = vmatprep.subr.mxu0 %v1982_v56  ;;  %2210 = vmatprep.subr.mxu1 %v1984_v54  ;;  %v5693_v5 = vld [vmem:[#allocation10 + $0x1f8] sm:$0xff]  ;;  %v5699_v25 = vld [vmem:[#allocation10 + $0x1f0] sm:$0xff]  ;;  %v5709_v54 = vld [vmem:[#allocation10 + $0x1c0] sm:$0xff] }
 0x75a   :  { %2098 = vmatpush1.msra.mxu0 %v1981_v50  ;;  %2211 = vmatpush1.msra.mxu1 %v1983_v11  ;;  %7143 = vst [vmem:[#allocation48_spill] sm:$0xff] %v5693_v5  ;;  %v5705_v56 = vld [vmem:[#allocation10 + $0x1d8] sm:$0xff]  ;;  %v5711_v50 = vld [vmem:[#allocation10 + $0x1d0] sm:$0xff]  ;;  %v5715_v11 = vld [vmem:[#allocation10 + $0x1a8] sm:$0xff] }
 0x75b   :  { %2099 = vmatprep.subr.mxu0 %v1978_v2  ;;  %2212 = vmatprep.subr.mxu1 %v1980_v63  ;;  %v5717_v2 = vld [vmem:[#allocation10 + $0x1b8] sm:$0xff]  ;;  %v5721_v63 = vld [vmem:[#allocation10 + $0x1a0] sm:$0xff] }
 0x75c   :  { %2100 = vmatpush1.msra.mxu0 %v1977_v53  ;;  %2213 = vmatpush1.msra.mxu1 %v1979_v61  ;;  %v5723_v53 = vld [vmem:[#allocation10 + $0x1b0] sm:$0xff]  ;;  %v5727_v61 = vld [vmem:[#allocation10 + $0x188] sm:$0xff] }
 0x75d   :  { %2101 = vmatprep.subr.mxu0 %v1974_v55  ;;  %2214 = vmatprep.subr.mxu1 %v1976_v20  ;;  %v5729_v55 = vld [vmem:[#allocation10 + $0x198] sm:$0xff]  ;;  %v5733_v20 = vld [vmem:[#allocation10 + $0x180] sm:$0xff] }
 0x75e   :  { %2102 = vmatpush1.msra.mxu0 %v1973_v3  ;;  %2215 = vmatpush1.msra.mxu1 %v1975_v60  ;;  %v5735_v3 = vld [vmem:[#allocation10 + $0x190] sm:$0xff]  ;;  %v5739_v60 = vld [vmem:[#allocation10 + $0x168] sm:$0xff] }
 0x75f   :  { %2103 = vmatprep.subr.mxu0 %v1970_v59  ;;  %2216 = vmatprep.subr.mxu1 %v1972_v0  ;;  %v5741_v59 = vld [vmem:[#allocation10 + $0x178] sm:$0xff]  ;;  %v5745_v0 = vld [vmem:[#allocation10 + $0x160] sm:$0xff] }
 0x760   :  { %2104 = vmatpush1.msra.mxu0 %v1969_v4  ;;  %2217 = vmatpush1.msra.mxu1 %v1971_v29  ;;  %v5747_v4 = vld [vmem:[#allocation10 + $0x170] sm:$0xff]  ;;  %v5751_v29 = vld [vmem:[#allocation10 + $0x148] sm:$0xff] }
 0x761   :  { %2105 = vmatprep.subr.mxu0 %v1966_v47  ;;  %2218 = vmatprep.subr.mxu1 %v1968_v51  ;;  %v5753_v47 = vld [vmem:[#allocation10 + $0x158] sm:$0xff]  ;;  %v5757_v51 = vld [vmem:[#allocation10 + $0x140] sm:$0xff] }
 0x762   :  { %2106 = vmatpush1.msra.mxu0 %v1965_v58  ;;  %2219 = vmatpush1.msra.mxu1 %v1967_v57  ;;  %v5759_v58 = vld [vmem:[#allocation10 + $0x150] sm:$0xff]  ;;  %v5763_v57 = vld [vmem:[#allocation10 + $0x128] sm:$0xff] }
 0x763   :  { %2107 = vmatprep.subr.mxu0 %v1962_v62  ;;  %2220 = vmatprep.subr.mxu1 %v1964_v27  ;;  %v5765_v62 = vld [vmem:[#allocation10 + $0x138] sm:$0xff]  ;;  %v5769_v27 = vld [vmem:[#allocation10 + $0x120] sm:$0xff] }
 0x764   :  { %2108 = vmatpush1.msra.mxu0 %v1961_v28  ;;  %2221 = vmatpush1.msra.mxu1 %v1963_v30  ;;  %v5771_v28 = vld [vmem:[#allocation10 + $0x130] sm:$0xff]  ;;  %v5775_v30 = vld [vmem:[#allocation10 + $0x108] sm:$0xff] }
 0x765   :  { %2109 = vmatprep.subr.mxu0 %v1958_v32  ;;  %2222 = vmatprep.subr.mxu1 %v1960_v33  ;;  %v5777_v32 = vld [vmem:[#allocation10 + $0x118] sm:$0xff]  ;;  %v5781_v33 = vld [vmem:[#allocation10 + $0x100] sm:$0xff] }
 0x766   :  { %2110 = vmatpush1.msra.mxu0 %v1957_v17  ;;  %2223 = vmatpush1.msra.mxu1 %v1959_v18  ;;  %v5783_v17 = vld [vmem:[#allocation10 + $0x110] sm:$0xff]  ;;  %v5787_v18 = vld [vmem:[#allocation10 + $0xe8] sm:$0xff] }
 0x767   :  { %2111 = vmatprep.subr.mxu0 %v1954_v19  ;;  %2224 = vmatprep.subr.mxu1 %v1956_v21  ;;  %v5789_v19 = vld [vmem:[#allocation10 + $0xf8] sm:$0xff]  ;;  %v5793_v21 = vld [vmem:[#allocation10 + $0xe0] sm:$0xff] }
 0x768   :  { %2112 = vmatpush1.msra.mxu0 %v1953_v22  ;;  %2225 = vmatpush1.msra.mxu1 %v1955_v24  ;;  %v5795_v22 = vld [vmem:[#allocation10 + $0xf0] sm:$0xff]  ;;  %v5799_v24 = vld [vmem:[#allocation10 + $0xc8] sm:$0xff] }
 0x769   :  { %2113 = vmatprep.subr.mxu0 %v1950_v31  ;;  %2226 = vmatprep.subr.mxu1 %v1952_v34  ;;  %v5801_v31 = vld [vmem:[#allocation10 + $0xd8] sm:$0xff]  ;;  %v5805_v34 = vld [vmem:[#allocation10 + $0xc0] sm:$0xff] }
 0x76a   :  { %2114 = vmatpush1.msra.mxu0 %v1949_v35  ;;  %2227 = vmatpush1.msra.mxu1 %v1951_v36  ;;  %v5807_v35 = vld [vmem:[#allocation10 + $0xd0] sm:$0xff]  ;;  %v5811_v36 = vld [vmem:[#allocation10 + $0xa8] sm:$0xff] }
 0x76b   :  { %2115 = vmatprep.subr.mxu0 %v1946_v37  ;;  %2228 = vmatprep.subr.mxu1 %v1948_v39  ;;  %v5813_v37 = vld [vmem:[#allocation10 + $0xb8] sm:$0xff]  ;;  %v5817_v39 = vld [vmem:[#allocation10 + $0xa0] sm:$0xff] }
 0x76c   :  { %2116 = vmatpush1.msra.mxu0 %v1945_v40  ;;  %2229 = vmatpush1.msra.mxu1 %v1947_v41  ;;  %v5819_v40 = vld [vmem:[#allocation10 + $0xb0] sm:$0xff]  ;;  %v5823_v41 = vld [vmem:[#allocation10 + $0x88] sm:$0xff] }
 0x76d   :  { %2117 = vmatprep.subr.mxu0 %v1942_v42  ;;  %2230 = vmatprep.subr.mxu1 %v1944_v43  ;;  %7144 = vst [vmem:[#allocation50_spill] sm:$0xff] %v5819_v40  ;;  %7145 = vst [vmem:[#allocation51_spill] sm:$0xff] %v5823_v41  ;;  %v5825_v42 = vld [vmem:[#allocation10 + $0x98] sm:$0xff]  ;;  %v5829_v43 = vld [vmem:[#allocation10 + $0x80] sm:$0xff] }
 0x76e   :  { %2118 = vmatpush1.msra.mxu0 %v1941_v44  ;;  %2231 = vmatpush1.msra.mxu1 %v1943_v45  ;;  %7146 = vst [vmem:[#allocation49_spill] sm:$0xff] %v5825_v42  ;;  %7147 = vst [vmem:[#allocation52_spill] sm:$0xff] %v5829_v43  ;;  %v5831_v44 = vld [vmem:[#allocation10 + $0x90] sm:$0xff]  ;;  %v5835_v45 = vld [vmem:[#allocation10 + $0x68] sm:$0xff] }
 0x76f   :  { %2119 = vmatprep.subr.mxu0 %v1938_v46  ;;  %2232 = vmatprep.subr.mxu1 %v1940_v48  ;;  %7148 = vst [vmem:[#allocation54_spill] sm:$0xff] %v5831_v44  ;;  %7149 = vst [vmem:[#allocation55_spill] sm:$0xff] %v5835_v45  ;;  %v5837_v46 = vld [vmem:[#allocation10 + $0x78] sm:$0xff]  ;;  %v5841_v48 = vld [vmem:[#allocation10 + $0x60] sm:$0xff] }
 0x770   :  { %2120 = vmatpush1.msra.mxu0 %v1937_v49  ;;  %2233 = vmatpush1.msra.mxu1 %v1939_v52  ;;  %7150 = vst [vmem:[#allocation53_spill] sm:$0xff] %v5837_v46  ;;  %7151 = vst [vmem:[#allocation21_spill] sm:$0xff] %v5841_v48  ;;  %v5843_v49 = vld [vmem:[#allocation10 + $0x70] sm:$0xff]  ;;  %v5847_v52 = vld [vmem:[#allocation10 + $0x48] sm:$0xff] }
 0x771   :  { %2121 = vmatprep.subr.mxu0 %v1934_v13  ;;  %2234 = vmatprep.subr.mxu1 %v1936_v15  ;;  %7152 = vst [vmem:[#allocation22_spill] sm:$0xff] %v5843_v49  ;;  %7153 = vst [vmem:[#allocation56_spill] sm:$0xff] %v5847_v52  ;;  %v5849_v13 = vld [vmem:[#allocation10 + $0x58] sm:$0xff]  ;;  %v5853_v15 = vld [vmem:[#allocation10 + $0x40] sm:$0xff] }
 0x772   :  { %2122 = vmatpush1.msra.mxu0 %v1933_v12  ;;  %2155 = vmatprep.mubr.f32.mxu0 %v7132_v38  ;;  %7154 = vst [vmem:[#allocation58_spill] sm:$0xff] %v5849_v13  ;;  %7155 = vst [vmem:[#allocation59_spill] sm:$0xff] %v5853_v15  ;;  %v5855_v12 = vld [vmem:[#allocation10 + $0x50] sm:$0xff] }
 0x773   :  { %2235 = vmatpush1.msra.mxu1 %v1935_v16  ;;  %2268 = vmatprep.mubr.f32.mxu1 %v7132_v38  ;;  %7156 = vst [vmem:[#allocation57_spill] sm:$0xff] %v5855_v12  ;;  %v5859_v16 = vld [vmem:[#allocation10 + $0x28] sm:$0xff] }
 0x774   :  { %2156 = vmatmul.mubr.f32.vlgmr.msra.gmra.mxu0 %v7137_v7  ;;  %2269 = vmatmul.mubr.f32.vlgmr.msra.gmra.mxu1 %v7137_v7  ;;  %7157 = vst [vmem:[#allocation24_spill] sm:$0xff] %v5859_v16  ;;  %v5861_v7 = vld [vmem:[#allocation10 + $0x38] sm:$0xff] }
 0x775   :  { %2161 = vmatprep.mubr.f32.mxu0 %v7132_v38  ;;  %2274 = vmatprep.mubr.f32.mxu1 %v7132_v38  ;;  %7158 = vst [vmem:[#allocation25_spill] sm:$0xff] %v5861_v7 }
 0x776   :  { %2357 = vmatprep.subr.mxu0 %v5691_v9  ;;  %2428 = vmatprep.subr.mxu1 %v5693_v5 }
 0x777   :  { %2429 = vmatpush1.msra.mxu1 %v5699_v25 }
 0x778   :  { %2162 = vmatmul.mubr.f32.gmra.mxu0 %v7138_v14  ;;  %2275 = vmatmul.mubr.f32.gmra.mxu1 %v7138_v14  ;;  %v5865_v14 = vld [vmem:[#allocation10 + $0x20] sm:$0xff] }
 0x779   :  { %2167 = vmatprep.mubr.f32.mxu0 %v7132_v38  ;;  %2280 = vmatprep.mubr.f32.mxu1 %v7132_v38  ;;  %7159 = vst [vmem:[#allocation60_spill] sm:$0xff] %v5865_v14 }
 0x77a   :  { %2430 = vmatprep.subr.mxu1 %v5705_v56 }
 0x77b   :  { %2431 = vmatpush1.msra.mxu1 %v5711_v50 }
 0x77c   :  { %2168 = vmatmul.mubr.f32.gmra.mxu0 %v7139_v8  ;;  %2281 = vmatmul.mubr.f32.gmra.mxu1 %v7139_v8  ;;  %v5867_v8 = vld [vmem:[#allocation10 + $0x30] sm:$0xff] }
 0x77d   :  { %2173 = vmatprep.mubr.f32.mxu0 %v7132_v38  ;;  %2286 = vmatprep.mubr.f32.mxu1 %v7132_v38  ;;  %7160 = vst [vmem:[#allocation62_spill] sm:$0xff] %v5867_v8 }
 0x77e   :  { %2432 = vmatprep.subr.mxu1 %v5717_v2 }
 0x77f   :  { %2433 = vmatpush1.msra.mxu1 %v5723_v53 }
 0x780   :  { %2174 = vmatmul.mubr.f32.gmra.mxu0 %v7140_v10  ;;  %2287 = vmatmul.mubr.f32.gmra.mxu1 %v7140_v10  ;;  %v5871_v10 = vld [vmem:[#allocation10 + $0x8] sm:$0xff] }
 0x781   :  { %2179 = vmatprep.mubr.f32.mxu0 %v7132_v38  ;;  %2292 = vmatprep.mubr.f32.mxu1 %v7132_v38  ;;  %7161 = vst [vmem:[#allocation63_spill] sm:$0xff] %v5871_v10 }
 0x782   :  { %2434 = vmatprep.subr.mxu1 %v5729_v55 }
 0x783   :  { %2435 = vmatpush1.msra.mxu1 %v5735_v3 }
 0x784   :  { %2180 = vmatmul.mubr.f32.gmra.mxu0 %v7141_v6  ;;  %2293 = vmatmul.mubr.f32.gmra.mxu1 %v7141_v6  ;;  %v5873_v6 = vld [vmem:[#allocation10 + $0x18] sm:$0xff] }
 0x785   :  { %2185 = vmatprep.mubr.f32.mxu0 %v7132_v38  ;;  %2298 = vmatprep.mubr.f32.mxu1 %v7132_v38  ;;  %7162 = vst [vmem:[#allocation61_spill] sm:$0xff] %v5873_v6 }
 0x786   :  { %2436 = vmatprep.subr.mxu1 %v5741_v59 }
 0x787   :  { %2437 = vmatpush1.msra.mxu1 %v5747_v4 }
 0x788   :  { %2186 = vmatmul.mubr.f32.gmra.mxu0 %v5581_v1  ;;  %2299 = vmatmul.mubr.f32.gmra.mxu1 %v5581_v1  ;;  %v5697_v1 = vld [vmem:[#allocation10 + $0x1e0] sm:$0xff] }
 0x789   :  { %2191 = vmatprep.mubr.f32.mxu0 %v7132_v38  ;;  %2304 = vmatprep.mubr.f32.mxu1 %v7132_v38 }
 0x78a   :  { %2358 = vmatpush1.msra.mxu0 %v5697_v1  ;;  %2438 = vmatprep.subr.mxu1 %v5753_v47 }
 0x78b   :  { %2439 = vmatpush1.msra.mxu1 %v5759_v58 }
 0x78c   :  { %2192 = vmatmul.mubr.f32.gmra.mxu0 %v5657_v23  ;;  %2305 = vmatmul.mubr.f32.gmra.mxu1 %v5657_v23  ;;  %v5703_v23 = vld [vmem:[#allocation10 + $0x1c8] sm:$0xff] }
 0x78d   :  { %2197 = vmatprep.mubr.f32.mxu0 %v7132_v38  ;;  %2310 = vmatprep.mubr.f32.mxu1 %v7132_v38 }
 0x78e   :  { %2359 = vmatprep.subr.mxu0 %v5703_v23  ;;  %2440 = vmatprep.subr.mxu1 %v5765_v62 }
 0x78f   :  { %2360 = vmatpush1.msra.mxu0 %v5709_v54  ;;  %2441 = vmatpush1.msra.mxu1 %v5771_v28 }
 0x790   :  { %2361 = vmatprep.subr.mxu0 %v5715_v11  ;;  %2442 = vmatprep.subr.mxu1 %v5777_v32 }
 0x791   :  { %2362 = vmatpush1.msra.mxu0 %v5721_v63  ;;  %2443 = vmatpush1.msra.mxu1 %v5783_v17 }
 0x792   :  { %2363 = vmatprep.subr.mxu0 %v5727_v61  ;;  %2444 = vmatprep.subr.mxu1 %v5789_v19 }
 0x793   :  { %2364 = vmatpush1.msra.mxu0 %v5733_v20  ;;  %2445 = vmatpush1.msra.mxu1 %v5795_v22 }
 0x794   :  { %2365 = vmatprep.subr.mxu0 %v5739_v60  ;;  %2446 = vmatprep.subr.mxu1 %v5801_v31 }
 0x795   :  { %2366 = vmatpush1.msra.mxu0 %v5745_v0  ;;  %2447 = vmatpush1.msra.mxu1 %v5807_v35 }
 0x796   :  { %2367 = vmatprep.subr.mxu0 %v5751_v29  ;;  %2448 = vmatprep.subr.mxu1 %v5813_v37 }
 0x797   :  { %2368 = vmatpush1.msra.mxu0 %v5757_v51  ;;  %2449 = vmatpush1.msra.mxu1 %v5819_v40 }
 0x798   :  { %2369 = vmatprep.subr.mxu0 %v5763_v57  ;;  %2450 = vmatprep.subr.mxu1 %v5825_v42 }
 0x799   :  { %2370 = vmatpush1.msra.mxu0 %v5769_v27  ;;  %2451 = vmatpush1.msra.mxu1 %v5831_v44 }
 0x79a   :  { %2371 = vmatprep.subr.mxu0 %v5775_v30  ;;  %2452 = vmatprep.subr.mxu1 %v5837_v46  ;;  %v7167_v46 = vld [vmem:[#allocation71_spill] sm:$0xff] }
 0x79b   :  { %2372 = vmatpush1.msra.mxu0 %v5781_v33  ;;  %2453 = vmatpush1.msra.mxu1 %v5843_v49 }
 0x79c   :  { %2373 = vmatprep.subr.mxu0 %v5787_v18  ;;  %2454 = vmatprep.subr.mxu1 %v5849_v13 }
 0x79d   :  { %2374 = vmatpush1.msra.mxu0 %v5793_v21  ;;  %2455 = vmatpush1.msra.mxu1 %v5855_v12  ;;  %v5875_v12 = vld [vmem:[#allocation10] sm:$0xff] }
 0x79e   :  { %2375 = vmatprep.subr.mxu0 %v5799_v24  ;;  %2456 = vmatprep.subr.mxu1 %v5861_v7  ;;  %7163 = vst [vmem:[#allocation47_spill] sm:$0xff] %v5875_v12 }
 0x79f   :  { %2376 = vmatpush1.msra.mxu0 %v5805_v34  ;;  %2457 = vmatpush1.msra.mxu1 %v5867_v8 }
 0x7a0   :  { %2377 = vmatprep.subr.mxu0 %v5811_v36  ;;  %2458 = vmatprep.subr.mxu1 %v5873_v6 }
 0x7a1   :  { %2378 = vmatpush1.msra.mxu0 %v5817_v39 }
 0x7a2   :  { %2379 = vmatprep.subr.mxu0 %v5823_v41 }
 0x7a3   :  { %2380 = vmatpush1.msra.mxu0 %v5829_v43 }
 0x7a4   :  { %2381 = vmatprep.subr.mxu0 %v5835_v45  ;;  %v7168_v45 = vld [vmem:[#allocation69_spill] sm:$0xff] }
 0x7a5   :  { %2382 = vmatpush1.msra.mxu0 %v5841_v48 }
 0x7a6   :  { %2383 = vmatprep.subr.mxu0 %v5847_v52  ;;  %v7166_v52 = vld [vmem:[#allocation70_spill] sm:$0xff] }
 0x7a7   :  { %2384 = vmatpush1.msra.mxu0 %v5853_v15 }
 0x7a8   :  { %2385 = vmatprep.subr.mxu0 %v5859_v16  ;;  %v5879_v16 = vld [vmem:[#allocation10 + $0x10] sm:$0xff] }
 0x7a9   :  { %2386 = vmatpush1.msra.mxu0 %v5865_v14  ;;  %7164 = vst [vmem:[#allocation45_spill] sm:$0xff] %v5879_v16  ;;  %2459 = vmatpush1.msra.mxu1 %v5879_v16  ;;  %v7165_v14 = vld [vmem:[#allocation68_spill] sm:$0xff] }
 0x7aa   :  { %2387 = vmatprep.subr.mxu0 %v5871_v10  ;;  %2602 = vmatprep.subr.mxu1 %v5693_v5 }
 0x7ab   :  { %2388 = vmatpush1.msra.mxu0 %v5875_v12 }
 0x7ac   :  { %2531 = vmatprep.subr.mxu0 %v5691_v9 }
 0x813   :  { %v1824_v8 = vpop.f32.mrf.mxu0  ;;  %v1895_v10 = vpop.f32.mrf.mxu1 }
 0x814   :  { %v1900_v7 = vadd.f32 %v1824_v8, %v7165_v14  ;;  %v1902_v16 = vadd.f32 %v1895_v10, %v7168_v45  ;;  %v7174_v10 = vld [vmem:[#allocation22_spill] sm:$0xff] }
 0x815   :  { %v1826_v15 = vpop.f32.mrf.mxu0  ;;  %v1897_v48 = vpop.f32.mrf.mxu1 }
 0x816   :  { %v3913_v13 = vmul.f32 -1.442695, %v1900_v7  ;;  %v1901_v49 = vadd.f32 %v1826_v15, %v7166_v52  ;;  %v1903_v12 = vadd.f32 %v1897_v48, %v7167_v46  ;;  %v7171_v48 = vld [vmem:[#allocation55_spill] sm:$0xff] }
 0x818   :  { %4119 = vpow2.f32 %v3913_v13  ;;  %v3914_v6 = vmul.f32 -1.442695, %v1901_v49  ;;  %v3915_v44 = vmul.f32 -1.442695, %v1903_v12  ;;  %v7172_v12 = vld [vmem:[#allocation53_spill] sm:$0xff] }
 0x81a   :  { %4121 = vpow2.f32 %v3914_v6 }
 0x81b   :  { %4123 = vtanh.f32 %v1902_v16  ;;  %v7173_v16 = vld [vmem:[#allocation21_spill] sm:$0xff] }
 0x81c   :  { %4125 = vpow2.f32 %v3915_v44 }
 0x825   :  { %v4120_v9 = vpop.eup %4119 }
 0x826   :  { %v1907_v43 = vadd.f32 1.0, %v4120_v9 }
 0x827   :  { %v4122_v5 = vpop.eup %4121 }
 0x828   :  { %4127 = vrcp.f32 %v1907_v43  ;;  %v1913_v14 = vadd.f32 1.0, %v4122_v5  ;;  %v4124_v7 = vpop.eup %4123  ;;  %v7169_v5 = vld [vmem:[#allocation52_spill] sm:$0xff]  ;;  %v7170_v43 = vld [vmem:[#allocation54_spill] sm:$0xff] }
 0x829   :  { %v4126_v52 = vpop.eup %4125 }
 0x82a   :  { %4129 = vrcp.f32 %v1913_v14  ;;  %v1920_v8 = vadd.f32 1.0, %v4126_v52  ;;  %v7175_v14 = vld [vmem:[#allocation56_spill] sm:$0xff]  ;;  %v7177_v52 = vld [vmem:[#allocation59_spill] sm:$0xff] }
 0x82c   :  { %4131 = vrcp.f32 %v1920_v8  ;;  %v7181_v8 = vld [vmem:[#allocation60_spill] sm:$0xff] }
 0x835   :  { %v4128_v13 = vpop.eup %4127 }
 0x836   :  { %v1924_v15 = vmul.f32 %v4128_v13, %v4124_v7  ;;  %v7176_v7 = vld [vmem:[#allocation58_spill] sm:$0xff]  ;;  %v7178_v13 = vld [vmem:[#allocation57_spill] sm:$0xff] }
 0x837   :  { %v4130_v49 = vpop.eup %4129 }
 0x838   :  { %v1923_v6 = vmul.f32 %v4130_v49, %v5654_v26  ;;  %v3916_v26 = vld [vmem:[%s6735_s1 + $0x8] sm:$0xff] }
 0x839   :  { %v4132_v9 = vpop.eup %4131  ;;  %v7180_v49 = vld [vmem:[#allocation25_spill] sm:$0xff] }
 0x83a   :  { %v1925_v46 = vadd.f32 %v1924_v15, %v1923_v6  ;;  %v7179_v15 = vld [vmem:[#allocation24_spill] sm:$0xff]  ;;  %v7182_v6 = vld [vmem:[#allocation62_spill] sm:$0xff] }
 0x83c   :  { %4133 = vtanh.f32 %v1925_v46  ;;  %1932 = vst.msk [vmem:[#allocation15] sm:$0x3] %vm1930_vm0, %v1925_v46  ;;  %v7183_v46 = vld [vmem:[#allocation63_spill] sm:$0xff] }
 0x849   :  { %v4134_v45 = vpop.eup %4133 }
 0x84a   :  { %v1927_v44 = vmul.f32 %v4134_v45, %v4132_v9  ;;  %v7184_v9 = vld [vmem:[#allocation61_spill] sm:$0xff]  ;;  %v7185_v45 = vld [vmem:[#allocation47_spill] sm:$0xff] }
 0x84c   :  { %2198 = vmatmul.mubr.f32.gmra.mxu0 %v1927_v44  ;;  %2311 = vmatmul.mubr.f32.gmra.mxu1 %v1927_v44  ;;  %1931 = vst.msk [vmem:[#allocation13] sm:$0x3] %vm1930_vm0, %v1927_v44  ;;  %v7186_v44 = vld [vmem:[#allocation45_spill] sm:$0xff] }
 0x84d   :  { %2421 = vmatprep.mubr.f32.mxu0 %v7132_v38  ;;  %2492 = vmatprep.mubr.f32.mxu1 %v7132_v38 }
 0x850   :  { %2422 = vmatmul.mubr.f32.vlgmr.msra.gmra.mxu0 %v3916_v26  ;;  %2493 = vmatmul.mubr.f32.vlgmr.msra.gmra.mxu1 %v3916_v26  ;;  %v7187_v26 = vld [vmem:[#allocation43_spill] sm:$0xff] }
 0x851   :  { %2532 = vmatpush1.msra.mxu0 %v5697_v1  ;;  %2603 = vmatpush1.msra.mxu1 %v5699_v25 }
 0x852   :  { %2533 = vmatprep.subr.mxu0 %v5703_v23  ;;  %2604 = vmatprep.subr.mxu1 %v5705_v56 }
 0x853   :  { %2534 = vmatpush1.msra.mxu0 %v5709_v54  ;;  %2605 = vmatpush1.msra.mxu1 %v5711_v50 }
 0x854   :  { %2535 = vmatprep.subr.mxu0 %v5715_v11  ;;  %2606 = vmatprep.subr.mxu1 %v5717_v2 }
 0x855   :  { %2536 = vmatpush1.msra.mxu0 %v5721_v63  ;;  %2607 = vmatpush1.msra.mxu1 %v5723_v53 }
 0x856   :  { %2537 = vmatprep.subr.mxu0 %v5727_v61  ;;  %2608 = vmatprep.subr.mxu1 %v5729_v55 }
 0x857   :  { %2538 = vmatpush1.msra.mxu0 %v5733_v20  ;;  %2609 = vmatpush1.msra.mxu1 %v5735_v3 }
 0x858   :  { %2539 = vmatprep.subr.mxu0 %v5739_v60  ;;  %2610 = vmatprep.subr.mxu1 %v5741_v59 }
 0x859   :  { %2540 = vmatpush1.msra.mxu0 %v5745_v0  ;;  %2611 = vmatpush1.msra.mxu1 %v5747_v4 }
 0x85a   :  { %2541 = vmatprep.subr.mxu0 %v5751_v29  ;;  %2612 = vmatprep.subr.mxu1 %v5753_v47 }
 0x85b   :  { %2542 = vmatpush1.msra.mxu0 %v5757_v51  ;;  %2613 = vmatpush1.msra.mxu1 %v5759_v58 }
 0x85c   :  { %2543 = vmatprep.subr.mxu0 %v5763_v57  ;;  %2614 = vmatprep.subr.mxu1 %v5765_v62 }
 0x85d   :  { %2544 = vmatpush1.msra.mxu0 %v5769_v27  ;;  %2615 = vmatpush1.msra.mxu1 %v5771_v28 }
 0x85e   :  { %2545 = vmatprep.subr.mxu0 %v5775_v30  ;;  %2616 = vmatprep.subr.mxu1 %v5777_v32 }
 0x85f   :  { %2546 = vmatpush1.msra.mxu0 %v5781_v33  ;;  %2617 = vmatpush1.msra.mxu1 %v5783_v17 }
 0x860   :  { %2547 = vmatprep.subr.mxu0 %v5787_v18  ;;  %2618 = vmatprep.subr.mxu1 %v5789_v19 }
 0x861   :  { %2548 = vmatpush1.msra.mxu0 %v5793_v21  ;;  %2619 = vmatpush1.msra.mxu1 %v5795_v22 }
 0x862   :  { %2549 = vmatprep.subr.mxu0 %v5799_v24  ;;  %2620 = vmatprep.subr.mxu1 %v5801_v31 }
 0x863   :  { %2550 = vmatpush1.msra.mxu0 %v5805_v34  ;;  %2621 = vmatpush1.msra.mxu1 %v5807_v35 }
 0x864   :  { %2551 = vmatprep.subr.mxu0 %v5811_v36  ;;  %2622 = vmatprep.subr.mxu1 %v5813_v37 }
 0x865   :  { %2552 = vmatpush1.msra.mxu0 %v5817_v39  ;;  %2623 = vmatpush1.msra.mxu1 %v5819_v40 }
 0x866   :  { %2553 = vmatprep.subr.mxu0 %v5823_v41  ;;  %2624 = vmatprep.subr.mxu1 %v5825_v42 }
 0x867   :  { %2554 = vmatpush1.msra.mxu0 %v7169_v5  ;;  %2625 = vmatpush1.msra.mxu1 %v7170_v43 }
 0x868   :  { %2555 = vmatprep.subr.mxu0 %v7171_v48  ;;  %2626 = vmatprep.subr.mxu1 %v7172_v12 }
 0x869   :  { %2556 = vmatpush1.msra.mxu0 %v7173_v16  ;;  %2627 = vmatpush1.msra.mxu1 %v7174_v10 }
 0x86a   :  { %2557 = vmatprep.subr.mxu0 %v7175_v14  ;;  %2628 = vmatprep.subr.mxu1 %v7176_v7 }
 0x86b   :  { %2558 = vmatpush1.msra.mxu0 %v7177_v52  ;;  %2629 = vmatpush1.msra.mxu1 %v7178_v13 }
 0x86c   :  { %2559 = vmatprep.subr.mxu0 %v7179_v15  ;;  %2630 = vmatprep.subr.mxu1 %v7180_v49  ;;  %v7188_v15 = vld [vmem:[#allocation48_spill] sm:$0xff]  ;;  %v2157_v49 = vpop.f32.mrf.mxu0 }
 0x86d   :  { %2560 = vmatpush1.msra.mxu0 %v7181_v8  ;;  %2631 = vmatpush1.msra.mxu1 %v7182_v6  ;;  %v2270_v8 = vpop.f32.mrf.mxu1 }
 0x86e   :  { %2561 = vmatprep.subr.mxu0 %v7183_v46  ;;  %2632 = vmatprep.subr.mxu1 %v7184_v9  ;;  %v2159_v13 = vpop.f32.mrf.mxu0 }
 0x86f   :  { %2562 = vmatpush1.msra.mxu0 %v7185_v45  ;;  %2595 = vmatprep.mubr.f32.mxu0 %v7132_v38  ;;  %v2272_v6 = vpop.f32.mrf.mxu1 }
 0x870   :  { %2633 = vmatpush1.msra.mxu1 %v7186_v44  ;;  %2666 = vmatprep.mubr.f32.mxu1 %v7132_v38  ;;  %v5963_v52 = vpop.f32.mrf.mxu0 }
 0x871   :  { %2705 = vmatprep.subr.mxu0 %v7187_v26  ;;  %2776 = vmatprep.subr.mxu1 %v7188_v15  ;;  %7189 = vst [vmem:[#allocation27_spill] sm:$0xff] %v5963_v52  ;;  %v5965_v46 = vpop.f32.mrf.mxu1 }
 0x872   :  { %7190 = vst [vmem:[#allocation28_spill] sm:$0xff] %v5965_v46  ;;  %v5967_v9 = vpop.f32.mrf.mxu0 }
 0x873   :  { %7191 = vst [vmem:[#allocation29_spill] sm:$0xff] %v5967_v9  ;;  %v5969_v45 = vpop.f32.mrf.mxu1 }
 0x874   :  { %7192 = vst [vmem:[#allocation30_spill] sm:$0xff] %v5969_v45  ;;  %v5971_v7 = vpop.f32.mrf.mxu0 }
 0x875   :  { %7193 = vst [vmem:[#allocation31_spill] sm:$0xff] %v5971_v7  ;;  %v5973_v44 = vpop.f32.mrf.mxu1 }
 0x876   :  { %7194 = vst [vmem:[#allocation32_spill] sm:$0xff] %v5973_v44  ;;  %v5975_v38 = vpop.f32.mrf.mxu0 }
 0x877   :  { %7195 = vst [vmem:[#allocation33_spill] sm:$0xff] %v5975_v38  ;;  %v5977_v26 = vpop.f32.mrf.mxu1 }
 0x878   :  { %7196 = vst [vmem:[#allocation34_spill] sm:$0xff] %v5977_v26  ;;  %v5979_v15 = vpop.f32.mrf.mxu0 }
 0x879   :  { %7197 = vst [vmem:[#allocation35_spill] sm:$0xff] %v5979_v15  ;;  %v5981_v14 = vpop.f32.mrf.mxu1 }
 0x87a   :  { %7198 = vst [vmem:[#allocation36_spill] sm:$0xff] %v5981_v14  ;;  %v5983_v10 = vpop.f32.mrf.mxu0 }
 0x87b   :  { %7199 = vst [vmem:[#allocation37_spill] sm:$0xff] %v5983_v10  ;;  %v5985_v52 = vpop.f32.mrf.mxu1 }
 0x87c   :  { %7200 = vst [vmem:[#allocation38_spill] sm:$0xff] %v5985_v52  ;;  %v5987_v46 = vpop.f32.mrf.mxu0 }
 0x87d   :  { %7201 = vst [vmem:[#allocation39_spill] sm:$0xff] %v5987_v46  ;;  %v5989_v9 = vpop.f32.mrf.mxu1 }
 0x87e   :  { %7202 = vst [vmem:[#allocation40_spill] sm:$0xff] %v5989_v9  ;;  %v5991_v45 = vpop.f32.mrf.mxu0  ;;  %v2061_v9 = vld [vmem:[%s6742_s8] sm:$0xf] }
 0x87f   :  { %7203 = vst [vmem:[#allocation41_spill] sm:$0xff] %v5991_v45  ;;  %v5993_v7 = vpop.f32.mrf.mxu1  ;;  %v7212_v45 = vld [vmem:[#allocation44_spill] sm:$0xff] }
 0x880   :  { %7204 = vst [vmem:[#allocation64_spill] sm:$0xff] %v5993_v7  ;;  %v5995_v44 = vpop.f32.mrf.mxu0  ;;  %v7213_v7 = vsub.s32 0, %v7212_v45 }
 0x881   :  { %7205 = vst [vmem:[#allocation66_spill] sm:$0xff] %v5995_v44  ;;  %v5997_v38 = vpop.f32.mrf.mxu1 }
 0x882   :  { %7206 = vst [vmem:[#allocation67_spill] sm:$0xff] %v5997_v38  ;;  %v5999_v26 = vpop.f32.mrf.mxu0  ;;  %v6014_v52 = vrot.slane %v2061_v9, %v7213_v7 }
 0x883   :  { %7207 = vst [vmem:[#allocation65_spill] sm:$0xff] %v5999_v26  ;;  %v6001_v15 = vpop.f32.mrf.mxu1 }
 0x884   :  { %7208 = vst [vmem:[#allocation72_spill] sm:$0xff] %v6001_v15  ;;  %v6003_v14 = vpop.f32.mrf.mxu0  ;;  %7214 = vst [vmem:[#allocation42_spill] sm:$0xff] %v6014_v52  ;;  %v7217_v15 = vsub.s32 1, %v7212_v45  ;;  %v2158_v16 = vadd.f32 %v2157_v49, %v6014_v52 }
 0x885   :  { %7209 = vst [vmem:[#allocation23_spill] sm:$0xff] %v6003_v14  ;;  %v6005_v10 = vpop.f32.mrf.mxu1 }
 0x886   :  { %7210 = vst [vmem:[#allocation26_spill] sm:$0xff] %v6005_v10  ;;  %v6010_v46 = vpop.f32.mrf.mxu0  ;;  %v6022_v26 = vrot.slane %v2061_v9, %v7217_v15  ;;  %v7221_v15 = vsub.s32 3, %v7212_v45 }
 0x887   :  { %7211 = vst [vmem:[#allocation46_spill] sm:$0xff] %v6010_v46  ;;  %v6016_v44 = vpop.f32.mrf.mxu1 }
 0x888   :  { %7215 = vst [vmem:[#allocation68_spill] sm:$0xff] %v6016_v44  ;;  %v2160_v46 = vadd.f32 %v2159_v13, %v6022_v26  ;;  %v6034_v41 = vrot.slane %v2061_v9, %v7221_v15 }
 0x88a   :  { %v2273_v49 = vadd.f32 %v2272_v6, %v6034_v41 }
 0x90c   :  { %v6018_v38 = vpop.f32.mrf.mxu0  ;;  %v6024_v14 = vpop.f32.mrf.mxu1 }
 0x90d   :  { %7216 = vst [vmem:[#allocation70_spill] sm:$0xff] %v6018_v38  ;;  %7218 = vst [vmem:[#allocation71_spill] sm:$0xff] %v6024_v14 }
 0x90e   :  { %v6026_v10 = vpop.f32.mrf.mxu0  ;;  %v6030_v48 = vpop.f32.mrf.mxu1 }
 0x90f   :  { %7219 = vst [vmem:[#allocation69_spill] sm:$0xff] %v6026_v10  ;;  %7220 = vst [vmem:[#allocation44_spill] sm:$0xff] %v6030_v48  ;;  %v7222_v10 = vsub.s32 2, %v7212_v45 }
 0x910   :  { %v2423_v12 = vpop.f32.mrf.mxu0  ;;  %v2494_v38 = vpop.f32.mrf.mxu1 }
 0x911   :  { %v2499_v7 = vadd.f32 %v2423_v12, %v2158_v16  ;;  %v6039_v13 = vrot.slane %v2061_v9, %v7222_v10  ;;  %v3917_v10 = vld [vmem:[%s6736_s2 + $0x8] sm:$0xff] }
 0x912   :  { %v2425_v43 = vpop.f32.mrf.mxu0  ;;  %v2496_v14 = vpop.f32.mrf.mxu1 }
 0x913   :  { %v3918_v44 = vmul.f32 -1.442695, %v2499_v7  ;;  %v2500_v5 = vadd.f32 %v2425_v43, %v2160_v46  ;;  %v2502_v48 = vadd.f32 %v2496_v14, %v2273_v49  ;;  %v2271_v12 = vadd.f32 %v2270_v8, %v6039_v13 }
 0x915   :  { %4135 = vpow2.f32 %v3918_v44  ;;  %v3919_v42 = vmul.f32 -1.442695, %v2500_v5  ;;  %v3920_v16 = vmul.f32 -1.442695, %v2502_v48  ;;  %v2501_v46 = vadd.f32 %v2494_v38, %v2271_v12 }
 0x917   :  { %4137 = vpow2.f32 %v3919_v42 }
 0x918   :  { %4139 = vpow2.f32 %v3920_v16  ;;  %v7223_v16 = vld [vmem:[#allocation51_spill] sm:$0xff] }
 0x922   :  { %v4136_v43 = vpop.eup %4135 }
 0x923   :  { %v2506_v44 = vadd.f32 1.0, %v4136_v43  ;;  %v7224_v43 = vld [vmem:[#allocation49_spill] sm:$0xff] }
 0x924   :  { %v4138_v5 = vpop.eup %4137 }
 0x925   :  { %4141 = vrcp.f32 %v2506_v44  ;;  %v2512_v7 = vadd.f32 1.0, %v4138_v5  ;;  %v4140_v42 = vpop.eup %4139  ;;  %v7226_v44 = vld [vmem:[#allocation54_spill] sm:$0xff]  ;;  %v7227_v5 = vld [vmem:[#allocation55_spill] sm:$0xff] }
 0x926   :  { %4143 = vtanh.f32 %v2501_v46  ;;  %v2519_v9 = vadd.f32 1.0, %v4140_v42  ;;  %v7225_v46 = vld [vmem:[#allocation52_spill] sm:$0xff]  ;;  %v7229_v42 = vld [vmem:[#allocation21_spill] sm:$0xff] }
 0x927   :  { %4145 = vrcp.f32 %v2512_v7  ;;  %v7228_v7 = vld [vmem:[#allocation53_spill] sm:$0xff] }
 0x928   :  { %4147 = vrcp.f32 %v2519_v9  ;;  %v7234_v9 = vld [vmem:[#allocation57_spill] sm:$0xff] }
 0x932   :  { %v4142_v15 = vpop.eup %4141 }
 0x933   :  { %v4144_v6 = vpop.eup %4143 }
 0x934   :  { %v4146_v14 = vpop.eup %4145  ;;  %v2523_v8 = vmul.f32 %v4144_v6, %v4142_v15  ;;  %v7230_v15 = vld [vmem:[#allocation22_spill] sm:$0xff] }
 0x935   :  { %v2522_v48 = vmul.f32 %v4146_v14, %v3917_v10  ;;  %v4148_v38 = vpop.eup %4147  ;;  %v7231_v10 = vld [vmem:[#allocation56_spill] sm:$0xff]  ;;  %v7232_v6 = vld [vmem:[#allocation58_spill] sm:$0xff]  ;;  %v7233_v14 = vld [vmem:[#allocation59_spill] sm:$0xff] }
 0x937   :  { %v6045_v45 = vadd.f32 %v2523_v8, %v2522_v48  ;;  %v7235_v8 = vld [vmem:[#allocation24_spill] sm:$0xff]  ;;  %v7236_v48 = vld [vmem:[#allocation25_spill] sm:$0xff] }
 0x939   :  { %4149 = vtanh.f32 %v6045_v45 }
 0x946   :  { %v4150_v49 = vpop.eup %4149 }
 0x947   :  { %v2526_v12 = vmul.f32 %v4150_v49, %v4148_v38  ;;  %v7237_v38 = vld [vmem:[#allocation60_spill] sm:$0xff]  ;;  %v7238_v49 = vld [vmem:[#allocation62_spill] sm:$0xff] }
 0x949   :  { %2596 = vmatmul.mubr.f32.vlgmr.msra.gmra.mxu0 %v2526_v12  ;;  %2667 = vmatmul.mubr.f32.vlgmr.msra.gmra.mxu1 %v2526_v12  ;;  %v7239_v12 = vld [vmem:[#allocation63_spill] sm:$0xff] }
 0x94a   :  { %2706 = vmatpush1.msra.mxu0 %v5697_v1  ;;  %2777 = vmatpush1.msra.mxu1 %v5699_v25 }
 0x94b   :  { %2707 = vmatprep.subr.mxu0 %v5703_v23  ;;  %2778 = vmatprep.subr.mxu1 %v5705_v56 }
 0x94c   :  { %2708 = vmatpush1.msra.mxu0 %v5709_v54  ;;  %2779 = vmatpush1.msra.mxu1 %v5711_v50 }
 0x94d   :  { %2709 = vmatprep.subr.mxu0 %v5715_v11  ;;  %2780 = vmatprep.subr.mxu1 %v5717_v2 }
 0x94e   :  { %2710 = vmatpush1.msra.mxu0 %v5721_v63  ;;  %2781 = vmatpush1.msra.mxu1 %v5723_v53 }
 0x94f   :  { %2711 = vmatprep.subr.mxu0 %v5727_v61  ;;  %2782 = vmatprep.subr.mxu1 %v5729_v55 }
 0x950   :  { %2712 = vmatpush1.msra.mxu0 %v5733_v20  ;;  %2783 = vmatpush1.msra.mxu1 %v5735_v3 }
 0x951   :  { %2713 = vmatprep.subr.mxu0 %v5739_v60  ;;  %2784 = vmatprep.subr.mxu1 %v5741_v59 }
 0x952   :  { %2714 = vmatpush1.msra.mxu0 %v5745_v0  ;;  %2785 = vmatpush1.msra.mxu1 %v5747_v4 }
 0x953   :  { %2715 = vmatprep.subr.mxu0 %v5751_v29  ;;  %2786 = vmatprep.subr.mxu1 %v5753_v47 }
 0x954   :  { %2716 = vmatpush1.msra.mxu0 %v5757_v51  ;;  %2787 = vmatpush1.msra.mxu1 %v5759_v58 }
 0x955   :  { %2717 = vmatprep.subr.mxu0 %v5763_v57  ;;  %2788 = vmatprep.subr.mxu1 %v5765_v62 }
 0x956   :  { %2718 = vmatpush1.msra.mxu0 %v5769_v27  ;;  %2789 = vmatpush1.msra.mxu1 %v5771_v28 }
 0x957   :  { %2719 = vmatprep.subr.mxu0 %v5775_v30  ;;  %2790 = vmatprep.subr.mxu1 %v5777_v32 }
 0x958   :  { %2720 = vmatpush1.msra.mxu0 %v5781_v33  ;;  %2791 = vmatpush1.msra.mxu1 %v5783_v17 }
 0x959   :  { %2721 = vmatprep.subr.mxu0 %v5787_v18  ;;  %2792 = vmatprep.subr.mxu1 %v5789_v19 }
 0x95a   :  { %2722 = vmatpush1.msra.mxu0 %v5793_v21  ;;  %2793 = vmatpush1.msra.mxu1 %v5795_v22 }
 0x95b   :  { %2723 = vmatprep.subr.mxu0 %v5799_v24  ;;  %2794 = vmatprep.subr.mxu1 %v5801_v31 }
 0x95c   :  { %2724 = vmatpush1.msra.mxu0 %v5805_v34  ;;  %2795 = vmatpush1.msra.mxu1 %v5807_v35 }
 0x95d   :  { %2725 = vmatprep.subr.mxu0 %v5811_v36  ;;  %2796 = vmatprep.subr.mxu1 %v5813_v37 }
 0x95e   :  { %2726 = vmatpush1.msra.mxu0 %v5817_v39  ;;  %2797 = vmatpush1.msra.mxu1 %v5819_v40 }
 0x95f   :  { %2727 = vmatprep.subr.mxu0 %v7223_v16  ;;  %2798 = vmatprep.subr.mxu1 %v7224_v43  ;;  %v7249_v43 = vld [vmem:[#allocation28_spill] sm:$0xff] }
 0x960   :  { %2728 = vmatpush1.msra.mxu0 %v7225_v46  ;;  %2799 = vmatpush1.msra.mxu1 %v7226_v44 }
 0x961   :  { %2729 = vmatprep.subr.mxu0 %v7227_v5  ;;  %2800 = vmatprep.subr.mxu1 %v7228_v7 }
 0x962   :  { %2730 = vmatpush1.msra.mxu0 %v7229_v42  ;;  %2801 = vmatpush1.msra.mxu1 %v7230_v15  ;;  %v7240_v42 = vld [vmem:[#allocation61_spill] sm:$0xff]  ;;  %v7241_v15 = vld [vmem:[#allocation47_spill] sm:$0xff] }
 0x963   :  { %2731 = vmatprep.subr.mxu0 %v7231_v10  ;;  %2802 = vmatprep.subr.mxu1 %v7232_v6  ;;  %v7242_v10 = vmov 0.0   ;;  %v7243_v6 = vld [vmem:[#allocation45_spill] sm:$0xff] }
 0x964   :  { %2732 = vmatpush1.msra.mxu0 %v7233_v14  ;;  %2803 = vmatpush1.msra.mxu1 %v7234_v9  ;;  %v7244_v9 = vld [vmem:[#allocation43_spill] sm:$0xff] }
 0x965   :  { %2733 = vmatprep.subr.mxu0 %v7235_v8  ;;  %2804 = vmatprep.subr.mxu1 %v7236_v48  ;;  %v7245_v8 = vld [vmem:[#allocation48_spill] sm:$0xff] }
 0x966   :  { %2734 = vmatpush1.msra.mxu0 %v7237_v38  ;;  %2805 = vmatpush1.msra.mxu1 %v7238_v49  ;;  %v7246_v38 = vld [vmem:[#allocation27_spill] sm:$0xff] }
 0x967   :  { %2735 = vmatprep.subr.mxu0 %v7239_v12  ;;  %2806 = vmatprep.subr.mxu1 %v7240_v42  ;;  %v2164_v48 = vadd.f32 %v7246_v38, %v6014_v52  ;;  %v7247_v12 = vld [vmem:[#allocation29_spill] sm:$0xff]  ;;  %v2277_v38 = vadd.f32 %v7249_v43, %v6039_v13 }
 0x968   :  { %2736 = vmatpush1.msra.mxu0 %v7241_v15  ;;  %2769 = vmatprep.mubr.f32.mxu0 %v7242_v10  ;;  %v2166_v14 = vadd.f32 %v7247_v12, %v6022_v26 }
 0x969   :  { %2807 = vmatpush1.msra.mxu1 %v7243_v6  ;;  %2840 = vmatprep.mubr.f32.mxu1 %v7242_v10 }
 0x96a   :  { %2879 = vmatprep.subr.mxu0 %v7244_v9  ;;  %2950 = vmatprep.subr.mxu1 %v7245_v8  ;;  %v7248_v9 = vld [vmem:[#allocation30_spill] sm:$0xff] }
 0x96b   :  { %v2279_v46 = vadd.f32 %v7248_v9, %v6034_v41 }
 0xa09   :  { %v2597_v49 = vpop.f32.mrf.mxu0  ;;  %v2668_v44 = vpop.f32.mrf.mxu1 }
 0xa0a   :  { %v2673_v42 = vadd.f32 %v2597_v49, %v2164_v48  ;;  %v2675_v52 = vadd.f32 %v2668_v44, %v2277_v38  ;;  %v7268_v44 = vld [vmem:[#allocation61_spill] sm:$0xff]  ;;  %v7270_v49 = vmov 0.0  }
 0xa0b   :  { %v2599_v7 = vpop.f32.mrf.mxu0  ;;  %v2670_v10 = vpop.f32.mrf.mxu1  ;;  %v7271_v38 = vld [vmem:[#allocation45_spill] sm:$0xff] }
 0xa0c   :  { %v3921_v15 = vmul.f32 -1.442695, %v2673_v42  ;;  %v2674_v5 = vadd.f32 %v2599_v7, %v2166_v14  ;;  %v2676_v8 = vadd.f32 %v2670_v10, %v2279_v46 }
 0xa0e   :  { %4151 = vpow2.f32 %v3921_v15  ;;  %v3922_v6 = vmul.f32 -1.442695, %v2674_v5  ;;  %v3923_v16 = vmul.f32 -1.442695, %v2676_v8  ;;  %v7269_v8 = vld [vmem:[#allocation47_spill] sm:$0xff] }
 0xa10   :  { %4153 = vpow2.f32 %v3922_v6 }
 0xa11   :  { %4155 = vtanh.f32 %v2675_v52 }
 0xa12   :  { %4157 = vpow2.f32 %v3923_v16  ;;  %v7267_v16 = vld [vmem:[#allocation63_spill] sm:$0xff] }
 0xa1b   :  { %v4152_v40 = vpop.eup %4151 }
 0xa1c   :  { %v2680_v12 = vadd.f32 1.0, %v4152_v40 }
 0xa1d   :  { %v4154_v48 = vpop.eup %4153 }
 0xa1e   :  { %4159 = vrcp.f32 %v2680_v12  ;;  %v2686_v7 = vadd.f32 1.0, %v4154_v48  ;;  %v4156_v5 = vpop.eup %4155  ;;  %v7272_v12 = vld [vmem:[#allocation43_spill] sm:$0xff]  ;;  %v7273_v48 = vld [vmem:[#allocation48_spill] sm:$0xff] }
 0xa1f   :  { %v4158_v42 = vpop.eup %4157 }
 0xa20   :  { %4161 = vrcp.f32 %v2686_v7  ;;  %v2693_v9 = vadd.f32 1.0, %v4158_v42  ;;  %v7274_v7 = vld [vmem:[#allocation42_spill] sm:$0xff] }
 0xa22   :  { %4163 = vrcp.f32 %v2693_v9 }
 0xa2b   :  { %v4160_v15 = vpop.eup %4159 }
 0xa2c   :  { %v2697_v6 = vmul.f32 %v4160_v15, %v4156_v5  ;;  %v7275_v5 = vld [vmem:[#allocation31_spill] sm:$0xff] }
 0xa2d   :  { %v4162_v14 = vpop.eup %4161  ;;  %v2170_v42 = vadd.f32 %v7275_v5, %v7274_v7 }
 0xa2e   :  { %v2696_v46 = vmul.f32 %v4162_v14, %v6045_v45  ;;  %v7266_v45 = vld [vmem:[#allocation62_spill] sm:$0xff] }
 0xa2f   :  { %v4164_v40 = vpop.eup %4163 }
 0xa30   :  { %v6123_v10 = vadd.f32 %v2697_v6, %v2696_v46  ;;  %v7276_v6 = vld [vmem:[#allocation33_spill] sm:$0xff] }
 0xa31   :  { %v2172_v14 = vadd.f32 %v7276_v6, %v6022_v26 }
 0xa32   :  { %4165 = vtanh.f32 %v6123_v10 }
 0xa3f   :  { %v4166_v52 = vpop.eup %4165 }
 0xa40   :  { %v2700_v43 = vmul.f32 %v4166_v52, %v4164_v40 }
 0xa42   :  { %2770 = vmatmul.mubr.f32.vlgmr.msra.gmra.mxu0 %v2700_v43  ;;  %2841 = vmatmul.mubr.f32.vlgmr.msra.gmra.mxu1 %v2700_v43 }
 0xa43   :  { %2880 = vmatpush1.msra.mxu0 %v5697_v1  ;;  %2951 = vmatpush1.msra.mxu1 %v5699_v25  ;;  %v7250_v1 = vld [vmem:[#allocation50_spill] sm:$0xff]  ;;  %v7251_v25 = vld [vmem:[#allocation51_spill] sm:$0xff] }
 0xa44   :  { %2881 = vmatprep.subr.mxu0 %v5703_v23  ;;  %2952 = vmatprep.subr.mxu1 %v5705_v56  ;;  %v7252_v23 = vld [vmem:[#allocation49_spill] sm:$0xff]  ;;  %v7253_v56 = vld [vmem:[#allocation52_spill] sm:$0xff] }
 0xa45   :  { %2882 = vmatpush1.msra.mxu0 %v5709_v54  ;;  %2953 = vmatpush1.msra.mxu1 %v5711_v50  ;;  %v7254_v54 = vld [vmem:[#allocation54_spill] sm:$0xff]  ;;  %v7255_v50 = vld [vmem:[#allocation55_spill] sm:$0xff] }
 0xa46   :  { %2883 = vmatprep.subr.mxu0 %v5715_v11  ;;  %2954 = vmatprep.subr.mxu1 %v5717_v2  ;;  %v7256_v11 = vld [vmem:[#allocation53_spill] sm:$0xff] }
 0xa47   :  { %2884 = vmatpush1.msra.mxu0 %v5721_v63  ;;  %2955 = vmatpush1.msra.mxu1 %v5723_v53  ;;  %v7257_v2 = vld [vmem:[#allocation21_spill] sm:$0xff]  ;;  %v7258_v63 = vld [vmem:[#allocation22_spill] sm:$0xff]  ;;  %v7259_v53 = vld [vmem:[#allocation56_spill] sm:$0xff] }
 0xa48   :  { %2885 = vmatprep.subr.mxu0 %v5727_v61  ;;  %2956 = vmatprep.subr.mxu1 %v5729_v55  ;;  %v7260_v61 = vld [vmem:[#allocation58_spill] sm:$0xff]  ;;  %v7261_v55 = vld [vmem:[#allocation59_spill] sm:$0xff] }
 0xa49   :  { %2886 = vmatpush1.msra.mxu0 %v5733_v20  ;;  %2957 = vmatpush1.msra.mxu1 %v5735_v3  ;;  %v7262_v20 = vld [vmem:[#allocation57_spill] sm:$0xff]  ;;  %v7263_v3 = vld [vmem:[#allocation24_spill] sm:$0xff] }
 0xa4a   :  { %2887 = vmatprep.subr.mxu0 %v5739_v60  ;;  %2958 = vmatprep.subr.mxu1 %v5741_v59  ;;  %v7264_v60 = vld [vmem:[#allocation25_spill] sm:$0xff]  ;;  %v7265_v59 = vld [vmem:[#allocation60_spill] sm:$0xff] }
 0xa4b   :  { %2888 = vmatpush1.msra.mxu0 %v5745_v0  ;;  %2959 = vmatpush1.msra.mxu1 %v5747_v4 }
 0xa4c   :  { %2889 = vmatprep.subr.mxu0 %v5751_v29  ;;  %2960 = vmatprep.subr.mxu1 %v5753_v47 }
 0xa4d   :  { %2890 = vmatpush1.msra.mxu0 %v5757_v51  ;;  %2961 = vmatpush1.msra.mxu1 %v5759_v58 }
 0xa4e   :  { %2891 = vmatprep.subr.mxu0 %v5763_v57  ;;  %2962 = vmatprep.subr.mxu1 %v5765_v62 }
 0xa4f   :  { %2892 = vmatpush1.msra.mxu0 %v5769_v27  ;;  %2963 = vmatpush1.msra.mxu1 %v5771_v28 }
 0xa50   :  { %2893 = vmatprep.subr.mxu0 %v5775_v30  ;;  %2964 = vmatprep.subr.mxu1 %v5777_v32 }
 0xa51   :  { %2894 = vmatpush1.msra.mxu0 %v5781_v33  ;;  %2965 = vmatpush1.msra.mxu1 %v5783_v17 }
 0xa52   :  { %2895 = vmatprep.subr.mxu0 %v5787_v18  ;;  %2966 = vmatprep.subr.mxu1 %v5789_v19 }
 0xa53   :  { %2896 = vmatpush1.msra.mxu0 %v5793_v21  ;;  %2967 = vmatpush1.msra.mxu1 %v5795_v22 }
 0xa54   :  { %2897 = vmatprep.subr.mxu0 %v5799_v24  ;;  %2968 = vmatprep.subr.mxu1 %v5801_v31 }
 0xa55   :  { %2898 = vmatpush1.msra.mxu0 %v5805_v34  ;;  %2969 = vmatpush1.msra.mxu1 %v5807_v35 }
 0xa56   :  { %2899 = vmatprep.subr.mxu0 %v5811_v36  ;;  %2970 = vmatprep.subr.mxu1 %v5813_v37 }
 0xa57   :  { %2900 = vmatpush1.msra.mxu0 %v5817_v39  ;;  %2971 = vmatpush1.msra.mxu1 %v7250_v1 }
 0xa58   :  { %2901 = vmatprep.subr.mxu0 %v7251_v25  ;;  %2972 = vmatprep.subr.mxu1 %v7252_v23 }
 0xa59   :  { %2902 = vmatpush1.msra.mxu0 %v7253_v56  ;;  %2973 = vmatpush1.msra.mxu1 %v7254_v54 }
 0xa5a   :  { %2903 = vmatprep.subr.mxu0 %v7255_v50  ;;  %2974 = vmatprep.subr.mxu1 %v7256_v11 }
 0xa5b   :  { %2904 = vmatpush1.msra.mxu0 %v7257_v2  ;;  %2975 = vmatpush1.msra.mxu1 %v7258_v63 }
 0xa5c   :  { %2905 = vmatprep.subr.mxu0 %v7259_v53  ;;  %2976 = vmatprep.subr.mxu1 %v7260_v61 }
 0xa5d   :  { %2906 = vmatpush1.msra.mxu0 %v7261_v55  ;;  %2977 = vmatpush1.msra.mxu1 %v7262_v20 }
 0xa5e   :  { %2907 = vmatprep.subr.mxu0 %v7263_v3  ;;  %2978 = vmatprep.subr.mxu1 %v7264_v60 }
 0xa5f   :  { %2908 = vmatpush1.msra.mxu0 %v7265_v59  ;;  %2979 = vmatpush1.msra.mxu1 %v7266_v45 }
 0xa60   :  { %2909 = vmatprep.subr.mxu0 %v7267_v16  ;;  %2980 = vmatprep.subr.mxu1 %v7268_v44  ;;  %v7278_v44 = vld [vmem:[#allocation32_spill] sm:$0xff] }
 0xa61   :  { %2910 = vmatpush1.msra.mxu0 %v7269_v8  ;;  %2943 = vmatprep.mubr.f32.mxu0 %v7270_v49  ;;  %v2283_v5 = vadd.f32 %v7278_v44, %v6039_v13 }
 0xa62   :  { %2981 = vmatpush1.msra.mxu1 %v7271_v38  ;;  %3014 = vmatprep.mubr.f32.mxu1 %v7270_v49 }
 0xa63   :  { %3053 = vmatprep.subr.mxu0 %v7272_v12  ;;  %3124 = vmatprep.subr.mxu1 %v7273_v48  ;;  %v7277_v12 = vld [vmem:[#allocation34_spill] sm:$0xff] }
 0xa64   :  { %v2285_v8 = vadd.f32 %v7277_v12, %v6034_v41  ;;  %v6210_v12 = vld [vmem:[#allocation10 + $0x1c8] sm:$0xff] }
 0xb02   :  { %v2771_v15 = vpop.f32.mrf.mxu0  ;;  %v2842_v43 = vpop.f32.mrf.mxu1 }
 0xb03   :  { %v2847_v9 = vadd.f32 %v2771_v15, %v2170_v42  ;;  %v2849_v7 = vadd.f32 %v2842_v43, %v2283_v5  ;;  %v6207_v43 = vld [vmem:[#allocation10 + $0x1f0] sm:$0xff] }
 0xb04   :  { %v2773_v46 = vpop.f32.mrf.mxu0  ;;  %v2844_v49 = vpop.f32.mrf.mxu1  ;;  %v6219_v5 = vld [vmem:[#allocation10 + $0x1d0] sm:$0xff] }
 0xb05   :  { %v3924_v40 = vmul.f32 -1.442695, %v2847_v9  ;;  %v2848_v52 = vadd.f32 %v2773_v46, %v2172_v14  ;;  %v2850_v48 = vadd.f32 %v2844_v49, %v2285_v8 }
 0xb07   :  { %4167 = vpow2.f32 %v3924_v40  ;;  %v3925_v38 = vmul.f32 -1.442695, %v2848_v52  ;;  %v3926_v16 = vmul.f32 -1.442695, %v2850_v48  ;;  %v6216_v48 = vld [vmem:[#allocation10 + $0x1c0] sm:$0xff] }
 0xb09   :  { %4169 = vpow2.f32 %v3925_v38 }
 0xb0a   :  { %4171 = vtanh.f32 %v2849_v7 }
 0xb0b   :  { %4173 = vpow2.f32 %v3926_v16  ;;  %v6204_v16 = vld [vmem:[#allocation10 + $0x1e0] sm:$0xff] }
 0xb14   :  { %v4168_v45 = vpop.eup %4167 }
 0xb15   :  { %v2854_v6 = vadd.f32 1.0, %v4168_v45 }
 0xb16   :  { %v4170_v42 = vpop.eup %4169 }
 0xb17   :  { %4175 = vrcp.f32 %v2854_v6  ;;  %v2860_v15 = vadd.f32 1.0, %v4170_v42  ;;  %v4172_v14 = vpop.eup %4171  ;;  %v6222_v6 = vld [vmem:[#allocation10 + $0x1a8] sm:$0xff]  ;;  %v6225_v42 = vld [vmem:[#allocation10 + $0x1b8] sm:$0xff] }
 0xb18   :  { %v4174_v38 = vpop.eup %4173 }
 0xb19   :  { %4177 = vrcp.f32 %v2860_v15  ;;  %v2867_v52 = vadd.f32 1.0, %v4174_v38  ;;  %v6228_v15 = vld [vmem:[#allocation10 + $0x1a0] sm:$0xff]  ;;  %v6234_v38 = vld [vmem:[#allocation10 + $0x188] sm:$0xff] }
 0xb1b   :  { %4179 = vrcp.f32 %v2867_v52  ;;  %v6246_v52 = vld [vmem:[#allocation10 + $0x168] sm:$0xff] }
 0xb24   :  { %v4176_v9 = vpop.eup %4175 }
 0xb25   :  { %v2871_v46 = vmul.f32 %v4176_v9, %v4172_v14  ;;  %v6231_v14 = vld [vmem:[#allocation10 + $0x1b0] sm:$0xff]  ;;  %v6237_v9 = vld [vmem:[#allocation10 + $0x198] sm:$0xff] }
 0xb26   :  { %v4178_v40 = vpop.eup %4177 }
 0xb27   :  { %v2870_v8 = vmul.f32 %v4178_v40, %v6123_v10  ;;  %v6213_v10 = vld [vmem:[#allocation10 + $0x1d8] sm:$0xff]  ;;  %v6243_v40 = vld [vmem:[#allocation10 + $0x190] sm:$0xff] }
 0xb28   :  { %v4180_v45 = vpop.eup %4179 }
 0xb29   :  { %v6201_v49 = vadd.f32 %v2871_v46, %v2870_v8  ;;  %v6240_v46 = vld [vmem:[#allocation10 + $0x180] sm:$0xff]  ;;  %v6249_v8 = vld [vmem:[#allocation10 + $0x178] sm:$0xff] }
 0xb2b   :  { %4181 = vtanh.f32 %v6201_v49 }
 0xb38   :  { %v4182_v44 = vpop.eup %4181 }
 0xb39   :  { %v2874_v7 = vmul.f32 %v4182_v44, %v4180_v45 }
 0xb3b   :  { %2944 = vmatmul.mubr.f32.vlgmr.msra.gmra.mxu0 %v2874_v7  ;;  %3015 = vmatmul.mubr.f32.vlgmr.msra.gmra.mxu1 %v2874_v7  ;;  %v6337_v7 = vld [vmem:[#allocation10 + $0x170] sm:$0xff] }
 0xb3c   :  { %3054 = vmatpush1.msra.mxu0 %v6204_v16  ;;  %3125 = vmatpush1.msra.mxu1 %v6207_v43 }
 0xb3d   :  { %3055 = vmatprep.subr.mxu0 %v6210_v12  ;;  %3126 = vmatprep.subr.mxu1 %v6213_v10 }
 0xb3e   :  { %3056 = vmatpush1.msra.mxu0 %v6216_v48  ;;  %3127 = vmatpush1.msra.mxu1 %v6219_v5 }
 0xb3f   :  { %3057 = vmatprep.subr.mxu0 %v6222_v6  ;;  %3128 = vmatprep.subr.mxu1 %v6225_v42 }
 0xb40   :  { %3058 = vmatpush1.msra.mxu0 %v6228_v15  ;;  %3129 = vmatpush1.msra.mxu1 %v6231_v14 }
 0xb41   :  { %3059 = vmatprep.subr.mxu0 %v6234_v38  ;;  %3130 = vmatprep.subr.mxu1 %v6237_v9 }
 0xb42   :  { %3060 = vmatpush1.msra.mxu0 %v6240_v46  ;;  %3131 = vmatpush1.msra.mxu1 %v6243_v40 }
 0xb43   :  { %3061 = vmatprep.subr.mxu0 %v6246_v52  ;;  %3132 = vmatprep.subr.mxu1 %v6249_v8 }
 0xb44   :  { %3062 = vmatpush1.msra.mxu0 %v5745_v0  ;;  %3133 = vmatpush1.msra.mxu1 %v5747_v4  ;;  %v7279_v0 = vld [vmem:[#allocation62_spill] sm:$0xff]  ;;  %v7280_v4 = vld [vmem:[#allocation63_spill] sm:$0xff] }
 0xb45   :  { %3063 = vmatprep.subr.mxu0 %v5751_v29  ;;  %3134 = vmatprep.subr.mxu1 %v5753_v47  ;;  %v7281_v29 = vld [vmem:[#allocation61_spill] sm:$0xff]  ;;  %v7282_v47 = vld [vmem:[#allocation47_spill] sm:$0xff] }
 0xb46   :  { %3064 = vmatpush1.msra.mxu0 %v5757_v51  ;;  %3135 = vmatpush1.msra.mxu1 %v5759_v58  ;;  %v7283_v51 = vmov 0.0   ;;  %v7284_v58 = vld [vmem:[#allocation45_spill] sm:$0xff] }
 0xb47   :  { %3065 = vmatprep.subr.mxu0 %v5763_v57  ;;  %3136 = vmatprep.subr.mxu1 %v5765_v62  ;;  %v6300_v57 = vld [vmem:[#allocation10 + $0x1e8] sm:$0xff]  ;;  %v6303_v62 = vld [vmem:[#allocation10 + $0x1f8] sm:$0xff] }
 0xb48   :  { %3066 = vmatpush1.msra.mxu0 %v5769_v27  ;;  %3137 = vmatpush1.msra.mxu1 %v5771_v28  ;;  %7285 = vst [vmem:[#allocation27_spill] sm:$0xff] %v6300_v57  ;;  %7286 = vst [vmem:[#allocation29_spill] sm:$0xff] %v6303_v62  ;;  %v7287_v27 = vld [vmem:[#allocation42_spill] sm:$0xff]  ;;  %v7288_v28 = vld [vmem:[#allocation35_spill] sm:$0xff] }
 0xb49   :  { %3067 = vmatprep.subr.mxu0 %v5775_v30  ;;  %3138 = vmatprep.subr.mxu1 %v5777_v32  ;;  %v2176_v30 = vadd.f32 %v7288_v28, %v7287_v27  ;;  %v6355_v28 = vld [vmem:[#allocation10 + $0x138] sm:$0xff] }
 0xb4a   :  { %3068 = vmatpush1.msra.mxu0 %v5781_v33  ;;  %3139 = vmatpush1.msra.mxu1 %v5783_v17  ;;  %v7289_v33 = vld [vmem:[#allocation37_spill] sm:$0xff] }
 0xb4b   :  { %3069 = vmatprep.subr.mxu0 %v5787_v18  ;;  %3140 = vmatprep.subr.mxu1 %v5789_v19  ;;  %v2178_v17 = vadd.f32 %v7289_v33, %v6022_v26  ;;  %v6364_v33 = vld [vmem:[#allocation10 + $0x108] sm:$0xff] }
 0xb4c   :  { %3070 = vmatpush1.msra.mxu0 %v5793_v21  ;;  %3141 = vmatpush1.msra.mxu1 %v5795_v22 }
 0xb4d   :  { %3071 = vmatprep.subr.mxu0 %v5799_v24  ;;  %3142 = vmatprep.subr.mxu1 %v5801_v31 }
 0xb4e   :  { %3072 = vmatpush1.msra.mxu0 %v5805_v34  ;;  %3143 = vmatpush1.msra.mxu1 %v5807_v35  ;;  %v7290_v35 = vld [vmem:[#allocation38_spill] sm:$0xff] }
 0xb4f   :  { %3073 = vmatprep.subr.mxu0 %v5811_v36  ;;  %3144 = vmatprep.subr.mxu1 %v5813_v37  ;;  %v2291_v36 = vadd.f32 %v7290_v35, %v6034_v41  ;;  %v6391_v35 = vld [vmem:[#allocation10 + $0xd8] sm:$0xff] }
 0xb50   :  { %3074 = vmatpush1.msra.mxu0 %v5817_v39  ;;  %3145 = vmatpush1.msra.mxu1 %v7250_v1  ;;  %v7291_v39 = vld [vmem:[#allocation36_spill] sm:$0xff] }
 0xb51   :  { %3075 = vmatprep.subr.mxu0 %v7251_v25  ;;  %3146 = vmatprep.subr.mxu1 %v7252_v23  ;;  %v2289_v1 = vadd.f32 %v7291_v39, %v6039_v13  ;;  %v6400_v39 = vld [vmem:[#allocation10 + $0xa8] sm:$0xff] }
 0xb52   :  { %3076 = vmatpush1.msra.mxu0 %v7253_v56  ;;  %3147 = vmatpush1.msra.mxu1 %v7254_v54 }
 0xb53   :  { %3077 = vmatprep.subr.mxu0 %v7255_v50  ;;  %3148 = vmatprep.subr.mxu1 %v7256_v11 }
 0xb54   :  { %3078 = vmatpush1.msra.mxu0 %v7257_v2  ;;  %3149 = vmatpush1.msra.mxu1 %v7258_v63 }
 0xb55   :  { %3079 = vmatprep.subr.mxu0 %v7259_v53  ;;  %3150 = vmatprep.subr.mxu1 %v7260_v61 }
 0xb56   :  { %3080 = vmatpush1.msra.mxu0 %v7261_v55  ;;  %3151 = vmatpush1.msra.mxu1 %v7262_v20 }
 0xb57   :  { %3081 = vmatprep.subr.mxu0 %v7263_v3  ;;  %3152 = vmatprep.subr.mxu1 %v7264_v60 }
 0xb58   :  { %3082 = vmatpush1.msra.mxu0 %v7265_v59  ;;  %3153 = vmatpush1.msra.mxu1 %v7279_v0  ;;  %v6340_v0 = vld [vmem:[#allocation10 + $0x148] sm:$0xff] }
 0xb59   :  { %3083 = vmatprep.subr.mxu0 %v7280_v4  ;;  %3154 = vmatprep.subr.mxu1 %v7281_v29  ;;  %v6343_v4 = vld [vmem:[#allocation10 + $0x158] sm:$0xff]  ;;  %v6346_v29 = vld [vmem:[#allocation10 + $0x140] sm:$0xff] }
 0xb5a   :  { %3084 = vmatpush1.msra.mxu0 %v7282_v47  ;;  %3117 = vmatprep.mubr.f32.mxu0 %v7283_v51  ;;  %v6349_v47 = vld [vmem:[#allocation10 + $0x150] sm:$0xff] }
 0xb5b   :  { %3155 = vmatpush1.msra.mxu1 %v7284_v58  ;;  %3188 = vmatprep.mubr.f32.mxu1 %v7283_v51  ;;  %v6352_v58 = vld [vmem:[#allocation10 + $0x128] sm:$0xff] }
 0xb5c   :  { %3227 = vmatprep.subr.mxu0 %v6300_v57  ;;  %3298 = vmatprep.subr.mxu1 %v6303_v62 }
 0xbfb   :  { %v2945_v32 = vpop.f32.mrf.mxu0  ;;  %v3016_v24 = vpop.f32.mrf.mxu1 }
 0xbfc   :  { %v3021_v18 = vadd.f32 %v2945_v32, %v2176_v30  ;;  %v3023_v25 = vadd.f32 %v3016_v24, %v2289_v1  ;;  %v6358_v30 = vld [vmem:[#allocation10 + $0x120] sm:$0xff]  ;;  %v6361_v32 = vld [vmem:[#allocation10 + $0x130] sm:$0xff]  ;;  %v6403_v1 = vld [vmem:[#allocation10 + $0xb8] sm:$0xff] }
 0xbfd   :  { %v2947_v19 = vpop.f32.mrf.mxu0  ;;  %v3018_v34 = vpop.f32.mrf.mxu1  ;;  %v6382_v24 = vld [vmem:[#allocation10 + $0xe0] sm:$0xff] }
 0xbfe   :  { %v3927_v21 = vmul.f32 -1.442695, %v3021_v18  ;;  %v3022_v22 = vadd.f32 %v2947_v19, %v2178_v17  ;;  %v3024_v37 = vadd.f32 %v3018_v34, %v2291_v36  ;;  %v6367_v17 = vld [vmem:[#allocation10 + $0x118] sm:$0xff]  ;;  %v6370_v18 = vld [vmem:[#allocation10 + $0x100] sm:$0xff]  ;;  %v6373_v19 = vld [vmem:[#allocation10 + $0x110] sm:$0xff] }
 0xbff   :  { %v6388_v34 = vld [vmem:[#allocation10 + $0xc8] sm:$0xff]  ;;  %v6394_v36 = vld [vmem:[#allocation10 + $0xc0] sm:$0xff] }
 0xc00   :  { %4183 = vpow2.f32 %v3927_v21  ;;  %v3928_v31 = vmul.f32 -1.442695, %v3022_v22  ;;  %v3929_v23 = vmul.f32 -1.442695, %v3024_v37  ;;  %v6376_v21 = vld [vmem:[#allocation10 + $0xe8] sm:$0xff]  ;;  %v6379_v22 = vld [vmem:[#allocation10 + $0xf8] sm:$0xff] }
 0xc01   :  { %v6397_v37 = vld [vmem:[#allocation10 + $0xd0] sm:$0xff] }
 0xc02   :  { %4185 = vpow2.f32 %v3928_v31  ;;  %v6385_v31 = vld [vmem:[#allocation10 + $0xf0] sm:$0xff] }
 0xc03   :  { %4187 = vtanh.f32 %v3023_v25  ;;  %v6406_v25 = vld [vmem:[#allocation10 + $0xa0] sm:$0xff] }
 0xc04   :  { %4189 = vpow2.f32 %v3929_v23  ;;  %v6409_v23 = vld [vmem:[#allocation10 + $0xb0] sm:$0xff] }
 0xc05   :  { %7292 = vst [vmem:[#allocation30_spill] sm:$0xff] %v6409_v23 }
 0xc0d   :  { %v4184_v56 = vpop.eup %4183 }
 0xc0e   :  { %v3028_v54 = vadd.f32 1.0, %v4184_v56  ;;  %v6412_v56 = vld [vmem:[#allocation10 + $0x88] sm:$0xff] }
 0xc0f   :  { %v4186_v50 = vpop.eup %4185  ;;  %7293 = vst [vmem:[#allocation28_spill] sm:$0xff] %v6412_v56 }
 0xc10   :  { %4191 = vrcp.f32 %v3028_v54  ;;  %v3034_v11 = vadd.f32 1.0, %v4186_v50  ;;  %v4188_v2 = vpop.eup %4187  ;;  %v6415_v54 = vld [vmem:[#allocation10 + $0x98] sm:$0xff]  ;;  %v6418_v50 = vld [vmem:[#allocation10 + $0x80] sm:$0xff] }
 0xc11   :  { %v4190_v63 = vpop.eup %4189  ;;  %7294 = vst [vmem:[#allocation50_spill] sm:$0xff] %v6415_v54  ;;  %7295 = vst [vmem:[#allocation51_spill] sm:$0xff] %v6418_v50 }
 0xc12   :  { %4193 = vrcp.f32 %v3034_v11  ;;  %v3041_v20 = vadd.f32 1.0, %v4190_v63  ;;  %v6421_v11 = vld [vmem:[#allocation10 + $0x90] sm:$0xff]  ;;  %v6427_v63 = vld [vmem:[#allocation10 + $0x78] sm:$0xff] }
 0xc13   :  { %7296 = vst [vmem:[#allocation49_spill] sm:$0xff] %v6421_v11  ;;  %7298 = vst [vmem:[#allocation54_spill] sm:$0xff] %v6427_v63 }
 0xc14   :  { %4195 = vrcp.f32 %v3041_v20  ;;  %v6439_v20 = vld [vmem:[#allocation10 + $0x58] sm:$0xff] }
 0xc15   :  { %7302 = vst [vmem:[#allocation22_spill] sm:$0xff] %v6439_v20 }
 0xc1d   :  { %v4192_v53 = vpop.eup %4191 }
 0xc1e   :  { %v3045_v61 = vmul.f32 %v4192_v53, %v4188_v2  ;;  %v6424_v2 = vld [vmem:[#allocation10 + $0x68] sm:$0xff]  ;;  %v6430_v53 = vld [vmem:[#allocation10 + $0x60] sm:$0xff] }
 0xc1f   :  { %v4194_v55 = vpop.eup %4193  ;;  %7297 = vst [vmem:[#allocation52_spill] sm:$0xff] %v6424_v2  ;;  %7299 = vst [vmem:[#allocation55_spill] sm:$0xff] %v6430_v53 }
 0xc20   :  { %v3044_v3 = vmul.f32 %v4194_v55, %v6201_v49  ;;  %v6334_v49 = vld [vmem:[#allocation10 + $0x160] sm:$0xff]  ;;  %v6436_v55 = vld [vmem:[#allocation10 + $0x48] sm:$0xff] }
 0xc21   :  { %v4196_v59 = vpop.eup %4195  ;;  %7301 = vst [vmem:[#allocation21_spill] sm:$0xff] %v6436_v55 }
 0xc22   :  { %v6315_v60 = vadd.f32 %v3045_v61, %v3044_v3  ;;  %v6433_v61 = vld [vmem:[#allocation10 + $0x70] sm:$0xff]  ;;  %v6442_v3 = vld [vmem:[#allocation10 + $0x40] sm:$0xff] }
 0xc23   :  { %7300 = vst [vmem:[#allocation53_spill] sm:$0xff] %v6433_v61  ;;  %7303 = vst [vmem:[#allocation56_spill] sm:$0xff] %v6442_v3 }
 0xc24   :  { %4197 = vtanh.f32 %v6315_v60 }
 0xc31   :  { %v4198_v45 = vpop.eup %4197 }
 0xc32   :  { %v3048_v44 = vmul.f32 %v4198_v45, %v4196_v59  ;;  %v6445_v59 = vld [vmem:[#allocation10 + $0x50] sm:$0xff]  ;;  %v6448_v45 = vld [vmem:[#allocation10 + $0x28] sm:$0xff] }
 0xc33   :  { %7304 = vst [vmem:[#allocation58_spill] sm:$0xff] %v6445_v59  ;;  %7305 = vst [vmem:[#allocation59_spill] sm:$0xff] %v6448_v45 }
 0xc34   :  { %3118 = vmatmul.mubr.f32.vlgmr.msra.gmra.mxu0 %v3048_v44  ;;  %3189 = vmatmul.mubr.f32.vlgmr.msra.gmra.mxu1 %v3048_v44  ;;  %v6451_v44 = vld [vmem:[#allocation10 + $0x38] sm:$0xff] }
 0xc35   :  { %3228 = vmatpush1.msra.mxu0 %v6204_v16  ;;  %3299 = vmatpush1.msra.mxu1 %v6207_v43  ;;  %7306 = vst [vmem:[#allocation57_spill] sm:$0xff] %v6451_v44 }
 0xc36   :  { %3229 = vmatprep.subr.mxu0 %v6210_v12  ;;  %3300 = vmatprep.subr.mxu1 %v6213_v10 }
 0xc37   :  { %3230 = vmatpush1.msra.mxu0 %v6216_v48  ;;  %3301 = vmatpush1.msra.mxu1 %v6219_v5 }
 0xc38   :  { %3231 = vmatprep.subr.mxu0 %v6222_v6  ;;  %3302 = vmatprep.subr.mxu1 %v6225_v42 }
 0xc39   :  { %3232 = vmatpush1.msra.mxu0 %v6228_v15  ;;  %3303 = vmatpush1.msra.mxu1 %v6231_v14 }
 0xc3a   :  { %3233 = vmatprep.subr.mxu0 %v6234_v38  ;;  %3304 = vmatprep.subr.mxu1 %v6237_v9 }
 0xc3b   :  { %3234 = vmatpush1.msra.mxu0 %v6240_v46  ;;  %3305 = vmatpush1.msra.mxu1 %v6243_v40 }
 0xc3c   :  { %3235 = vmatprep.subr.mxu0 %v6246_v52  ;;  %3306 = vmatprep.subr.mxu1 %v6249_v8 }
 0xc3d   :  { %3236 = vmatpush1.msra.mxu0 %v6334_v49  ;;  %3307 = vmatpush1.msra.mxu1 %v6337_v7 }
 0xc3e   :  { %3237 = vmatprep.subr.mxu0 %v6340_v0  ;;  %3308 = vmatprep.subr.mxu1 %v6343_v4 }
 0xc3f   :  { %3238 = vmatpush1.msra.mxu0 %v6346_v29  ;;  %3309 = vmatpush1.msra.mxu1 %v6349_v47 }
 0xc40   :  { %3239 = vmatprep.subr.mxu0 %v6352_v58  ;;  %3310 = vmatprep.subr.mxu1 %v6355_v28 }
 0xc41   :  { %3240 = vmatpush1.msra.mxu0 %v6358_v30  ;;  %3311 = vmatpush1.msra.mxu1 %v6361_v32 }
 0xc42   :  { %3241 = vmatprep.subr.mxu0 %v6364_v33  ;;  %3312 = vmatprep.subr.mxu1 %v6367_v17 }
 0xc43   :  { %3242 = vmatpush1.msra.mxu0 %v6370_v18  ;;  %3313 = vmatpush1.msra.mxu1 %v6373_v19 }
 0xc44   :  { %3243 = vmatprep.subr.mxu0 %v6376_v21  ;;  %3314 = vmatprep.subr.mxu1 %v6379_v22 }
 0xc45   :  { %3244 = vmatpush1.msra.mxu0 %v6382_v24  ;;  %3315 = vmatpush1.msra.mxu1 %v6385_v31 }
 0xc46   :  { %3245 = vmatprep.subr.mxu0 %v6388_v34  ;;  %3316 = vmatprep.subr.mxu1 %v6391_v35 }
 0xc47   :  { %3246 = vmatpush1.msra.mxu0 %v6394_v36  ;;  %3317 = vmatpush1.msra.mxu1 %v6397_v37 }
 0xc48   :  { %3247 = vmatprep.subr.mxu0 %v6400_v39  ;;  %3318 = vmatprep.subr.mxu1 %v6403_v1 }
 0xc49   :  { %3248 = vmatpush1.msra.mxu0 %v6406_v25  ;;  %3319 = vmatpush1.msra.mxu1 %v6409_v23 }
 0xc4a   :  { %3249 = vmatprep.subr.mxu0 %v6412_v56  ;;  %3320 = vmatprep.subr.mxu1 %v6415_v54  ;;  %v7316_v54 = vld [vmem:[#allocation40_spill] sm:$0xff] }
 0xc4b   :  { %3250 = vmatpush1.msra.mxu0 %v6418_v50  ;;  %3321 = vmatpush1.msra.mxu1 %v6421_v11 }
 0xc4c   :  { %3251 = vmatprep.subr.mxu0 %v6424_v2  ;;  %3322 = vmatprep.subr.mxu1 %v6427_v63 }
 0xc4d   :  { %3252 = vmatpush1.msra.mxu0 %v6430_v53  ;;  %3323 = vmatpush1.msra.mxu1 %v6433_v61 }
 0xc4e   :  { %3253 = vmatprep.subr.mxu0 %v6436_v55  ;;  %3324 = vmatprep.subr.mxu1 %v6439_v20  ;;  %v6454_v55 = vld [vmem:[#allocation10 + $0x20] sm:$0xff]  ;;  %v6457_v20 = vld [vmem:[#allocation10 + $0x30] sm:$0xff] }
 0xc4f   :  { %3254 = vmatpush1.msra.mxu0 %v6442_v3  ;;  %3325 = vmatpush1.msra.mxu1 %v6445_v59  ;;  %7307 = vst [vmem:[#allocation24_spill] sm:$0xff] %v6454_v55  ;;  %7308 = vst [vmem:[#allocation25_spill] sm:$0xff] %v6457_v20  ;;  %v6460_v3 = vld [vmem:[#allocation10 + $0x8] sm:$0xff]  ;;  %v6463_v59 = vld [vmem:[#allocation10 + $0x18] sm:$0xff] }
 0xc50   :  { %3255 = vmatprep.subr.mxu0 %v6448_v45  ;;  %3326 = vmatprep.subr.mxu1 %v6451_v44  ;;  %7309 = vst [vmem:[#allocation60_spill] sm:$0xff] %v6460_v3  ;;  %7310 = vst [vmem:[#allocation43_spill] sm:$0xff] %v6463_v59  ;;  %v6466_v45 = vld [vmem:[#allocation10] sm:$0xff]  ;;  %v6470_v44 = vld [vmem:[#allocation10 + $0x10] sm:$0xff] }
 0xc51   :  { %3256 = vmatpush1.msra.mxu0 %v6454_v55  ;;  %3327 = vmatpush1.msra.mxu1 %v6457_v20  ;;  %7311 = vst [vmem:[#allocation48_spill] sm:$0xff] %v6466_v45  ;;  %7312 = vst [vmem:[#allocation31_spill] sm:$0xff] %v6470_v44  ;;  %v7314_v55 = vld [vmem:[#allocation41_spill] sm:$0xff] }
 0xc52   :  { %3257 = vmatprep.subr.mxu0 %v6460_v3  ;;  %3328 = vmatprep.subr.mxu1 %v6463_v59  ;;  %v7313_v3 = vld [vmem:[#allocation39_spill] sm:$0xff]  ;;  %v2184_v61 = vadd.f32 %v7314_v55, %v6022_v26 }
 0xc53   :  { %3258 = vmatpush1.msra.mxu0 %v6466_v45  ;;  %3291 = vmatprep.mubr.f32.mxu0 %v7283_v51  ;;  %v2182_v20 = vadd.f32 %v7313_v3, %v7287_v27  ;;  %v2295_v3 = vadd.f32 %v7316_v54, %v6039_v13  ;;  %v7319_v54 = vld [vmem:[#allocation50_spill] sm:$0xff] }
 0xc54   :  { %3329 = vmatpush1.msra.mxu1 %v6470_v44  ;;  %3362 = vmatprep.mubr.f32.mxu1 %v7283_v51 }
 0xc55   :  { %3401 = vmatprep.subr.mxu0 %v6300_v57  ;;  %3472 = vmatprep.subr.mxu1 %v6303_v62  ;;  %v7315_v57 = vld [vmem:[#allocation64_spill] sm:$0xff] }
 0xc56   :  { %v2297_v50 = vadd.f32 %v7315_v57, %v6034_v41 }
 0xcf4   :  { %v3119_v59 = vpop.f32.mrf.mxu0  ;;  %v3190_v11 = vpop.f32.mrf.mxu1 }
 0xcf5   :  { %v3195_v45 = vadd.f32 %v3119_v59, %v2182_v20  ;;  %v3197_v27 = vadd.f32 %v3190_v11, %v2295_v3  ;;  %v7320_v11 = vld [vmem:[#allocation51_spill] sm:$0xff]  ;;  %v7322_v3 = vld [vmem:[#allocation52_spill] sm:$0xff] }
 0xcf6   :  { %v3121_v53 = vpop.f32.mrf.mxu0  ;;  %v3192_v51 = vpop.f32.mrf.mxu1 }
 0xcf7   :  { %v3930_v63 = vmul.f32 -1.442695, %v3195_v45  ;;  %v3196_v2 = vadd.f32 %v3121_v53, %v2184_v61  ;;  %v3198_v62 = vadd.f32 %v3192_v51, %v2297_v50 }
 0xcf9   :  { %4199 = vpow2.f32 %v3930_v63  ;;  %v3931_v44 = vmul.f32 -1.442695, %v3196_v2  ;;  %v3932_v56 = vmul.f32 -1.442695, %v3198_v62 }
 0xcfb   :  { %4201 = vpow2.f32 %v3931_v44  ;;  %v7321_v44 = vld [vmem:[#allocation49_spill] sm:$0xff] }
 0xcfc   :  { %4203 = vtanh.f32 %v3197_v27 }
 0xcfd   :  { %4205 = vpow2.f32 %v3932_v56  ;;  %v7318_v56 = vld [vmem:[#allocation28_spill] sm:$0xff] }
 0xd06   :  { %v4200_v23 = vpop.eup %4199 }
 0xd07   :  { %v3202_v55 = vadd.f32 1.0, %v4200_v23 }
 0xd08   :  { %v4202_v20 = vpop.eup %4201 }
 0xd09   :  { %4207 = vrcp.f32 %v3202_v55  ;;  %v3208_v63 = vadd.f32 1.0, %v4202_v20  ;;  %v4204_v2 = vpop.eup %4203  ;;  %v7323_v55 = vld [vmem:[#allocation54_spill] sm:$0xff]  ;;  %v7324_v20 = vld [vmem:[#allocation55_spill] sm:$0xff] }
 0xd0a   :  { %v4206_v53 = vpop.eup %4205 }
 0xd0b   :  { %4209 = vrcp.f32 %v3208_v63  ;;  %v3215_v57 = vadd.f32 1.0, %v4206_v53  ;;  %v7325_v63 = vld [vmem:[#allocation53_spill] sm:$0xff]  ;;  %v7327_v53 = vld [vmem:[#allocation22_spill] sm:$0xff] }
 0xd0d   :  { %4211 = vrcp.f32 %v3215_v57  ;;  %v7331_v57 = vld [vmem:[#allocation57_spill] sm:$0xff] }
 0xd16   :  { %v4208_v61 = vpop.eup %4207 }
 0xd17   :  { %v3219_v59 = vmul.f32 %v4208_v61, %v4204_v2  ;;  %v7326_v2 = vld [vmem:[#allocation21_spill] sm:$0xff]  ;;  %v7328_v61 = vld [vmem:[#allocation56_spill] sm:$0xff] }
 0xd18   :  { %v4210_v45 = vpop.eup %4209 }
 0xd19   :  { %v3218_v51 = vmul.f32 %v4210_v45, %v6315_v60  ;;  %v7317_v60 = vld [vmem:[#allocation30_spill] sm:$0xff]  ;;  %v7330_v45 = vld [vmem:[#allocation59_spill] sm:$0xff] }
 0xd1a   :  { %v4212_v62 = vpop.eup %4211 }
 0xd1b   :  { %v6485_v50 = vadd.f32 %v3219_v59, %v3218_v51  ;;  %v7329_v59 = vld [vmem:[#allocation58_spill] sm:$0xff]  ;;  %v7332_v51 = vld [vmem:[#allocation24_spill] sm:$0xff] }
 0xd1d   :  { %4213 = vtanh.f32 %v6485_v50 }
 0xd2a   :  { %v4214_v27 = vpop.eup %4213 }
 0xd2b   :  { %v3222_v23 = vmul.f32 %v4214_v27, %v4212_v62  ;;  %v7333_v62 = vld [vmem:[#allocation25_spill] sm:$0xff]  ;;  %v7334_v27 = vld [vmem:[#allocation60_spill] sm:$0xff] }
 0xd2d   :  { %3292 = vmatmul.mubr.f32.vlgmr.msra.gmra.mxu0 %v3222_v23  ;;  %3363 = vmatmul.mubr.f32.vlgmr.msra.gmra.mxu1 %v3222_v23  ;;  %v7335_v23 = vld [vmem:[#allocation43_spill] sm:$0xff] }
 0xd2e   :  { %3402 = vmatpush1.msra.mxu0 %v6204_v16  ;;  %3473 = vmatpush1.msra.mxu1 %v6207_v43 }
 0xd2f   :  { %3403 = vmatprep.subr.mxu0 %v6210_v12  ;;  %3474 = vmatprep.subr.mxu1 %v6213_v10 }
 0xd30   :  { %3404 = vmatpush1.msra.mxu0 %v6216_v48  ;;  %3475 = vmatpush1.msra.mxu1 %v6219_v5 }
 0xd31   :  { %3405 = vmatprep.subr.mxu0 %v6222_v6  ;;  %3476 = vmatprep.subr.mxu1 %v6225_v42 }
 0xd32   :  { %3406 = vmatpush1.msra.mxu0 %v6228_v15  ;;  %3477 = vmatpush1.msra.mxu1 %v6231_v14 }
 0xd33   :  { %3407 = vmatprep.subr.mxu0 %v6234_v38  ;;  %3478 = vmatprep.subr.mxu1 %v6237_v9 }
 0xd34   :  { %3408 = vmatpush1.msra.mxu0 %v6240_v46  ;;  %3479 = vmatpush1.msra.mxu1 %v6243_v40 }
 0xd35   :  { %3409 = vmatprep.subr.mxu0 %v6246_v52  ;;  %3480 = vmatprep.subr.mxu1 %v6249_v8 }
 0xd36   :  { %3410 = vmatpush1.msra.mxu0 %v6334_v49  ;;  %3481 = vmatpush1.msra.mxu1 %v6337_v7 }
 0xd37   :  { %3411 = vmatprep.subr.mxu0 %v6340_v0  ;;  %3482 = vmatprep.subr.mxu1 %v6343_v4 }
 0xd38   :  { %3412 = vmatpush1.msra.mxu0 %v6346_v29  ;;  %3483 = vmatpush1.msra.mxu1 %v6349_v47 }
 0xd39   :  { %3413 = vmatprep.subr.mxu0 %v6352_v58  ;;  %3484 = vmatprep.subr.mxu1 %v6355_v28 }
 0xd3a   :  { %3414 = vmatpush1.msra.mxu0 %v6358_v30  ;;  %3485 = vmatpush1.msra.mxu1 %v6361_v32 }
 0xd3b   :  { %3415 = vmatprep.subr.mxu0 %v6364_v33  ;;  %3486 = vmatprep.subr.mxu1 %v6367_v17 }
 0xd3c   :  { %3416 = vmatpush1.msra.mxu0 %v6370_v18  ;;  %3487 = vmatpush1.msra.mxu1 %v6373_v19 }
 0xd3d   :  { %3417 = vmatprep.subr.mxu0 %v6376_v21  ;;  %3488 = vmatprep.subr.mxu1 %v6379_v22 }
 0xd3e   :  { %3418 = vmatpush1.msra.mxu0 %v6382_v24  ;;  %3489 = vmatpush1.msra.mxu1 %v6385_v31 }
 0xd3f   :  { %3419 = vmatprep.subr.mxu0 %v6388_v34  ;;  %3490 = vmatprep.subr.mxu1 %v6391_v35 }
 0xd40   :  { %3420 = vmatpush1.msra.mxu0 %v6394_v36  ;;  %3491 = vmatpush1.msra.mxu1 %v6397_v37 }
 0xd41   :  { %3421 = vmatprep.subr.mxu0 %v6400_v39  ;;  %3492 = vmatprep.subr.mxu1 %v6403_v1 }
 0xd42   :  { %3422 = vmatpush1.msra.mxu0 %v6406_v25  ;;  %3493 = vmatpush1.msra.mxu1 %v7317_v60 }
 0xd43   :  { %3423 = vmatprep.subr.mxu0 %v7318_v56  ;;  %3494 = vmatprep.subr.mxu1 %v7319_v54  ;;  %v7345_v54 = vld [vmem:[#allocation67_spill] sm:$0xff] }
 0xd44   :  { %3424 = vmatpush1.msra.mxu0 %v7320_v11  ;;  %3495 = vmatpush1.msra.mxu1 %v7321_v44 }
 0xd45   :  { %3425 = vmatprep.subr.mxu0 %v7322_v3  ;;  %3496 = vmatprep.subr.mxu1 %v7323_v55 }
 0xd46   :  { %3426 = vmatpush1.msra.mxu0 %v7324_v20  ;;  %3497 = vmatpush1.msra.mxu1 %v7325_v63  ;;  %v7336_v63 = vld [vmem:[#allocation48_spill] sm:$0xff] }
 0xd47   :  { %3427 = vmatprep.subr.mxu0 %v7326_v2  ;;  %3498 = vmatprep.subr.mxu1 %v7327_v53  ;;  %v7337_v2 = vmov 0.0   ;;  %v7338_v53 = vld [vmem:[#allocation31_spill] sm:$0xff] }
 0xd48   :  { %3428 = vmatpush1.msra.mxu0 %v7328_v61  ;;  %3499 = vmatpush1.msra.mxu1 %v7329_v59  ;;  %v7339_v59 = vld [vmem:[#allocation27_spill] sm:$0xff] }
 0xd49   :  { %3429 = vmatprep.subr.mxu0 %v7330_v45  ;;  %3500 = vmatprep.subr.mxu1 %v7331_v57  ;;  %v7340_v45 = vld [vmem:[#allocation29_spill] sm:$0xff]  ;;  %v7341_v57 = vld [vmem:[#allocation42_spill] sm:$0xff] }
 0xd4a   :  { %3430 = vmatpush1.msra.mxu0 %v7332_v51  ;;  %3501 = vmatpush1.msra.mxu1 %v7333_v62  ;;  %v7342_v51 = vld [vmem:[#allocation66_spill] sm:$0xff] }
 0xd4b   :  { %3431 = vmatprep.subr.mxu0 %v7334_v27  ;;  %3502 = vmatprep.subr.mxu1 %v7335_v23  ;;  %v2188_v61 = vadd.f32 %v7342_v51, %v7341_v57  ;;  %v7343_v27 = vld [vmem:[#allocation65_spill] sm:$0xff]  ;;  %v2301_v51 = vadd.f32 %v7345_v54, %v6039_v13 }
 0xd4c   :  { %3432 = vmatpush1.msra.mxu0 %v7336_v63  ;;  %3465 = vmatprep.mubr.f32.mxu0 %v7337_v2  ;;  %v2190_v20 = vadd.f32 %v7343_v27, %v6022_v26 }
 0xd4d   :  { %3503 = vmatpush1.msra.mxu1 %v7338_v53  ;;  %3536 = vmatprep.mubr.f32.mxu1 %v7337_v2 }
 0xd4e   :  { %3575 = vmatprep.subr.mxu0 %v7339_v59  ;;  %3646 = vmatprep.subr.mxu1 %v7340_v45  ;;  %v7344_v59 = vld [vmem:[#allocation72_spill] sm:$0xff] }
 0xd4f   :  { %v2303_v11 = vadd.f32 %v7344_v59, %v6034_v41 }
 0xded   :  { %v3293_v62 = vpop.f32.mrf.mxu0  ;;  %v3364_v44 = vpop.f32.mrf.mxu1 }
 0xdee   :  { %v3369_v23 = vadd.f32 %v3293_v62, %v2188_v61  ;;  %v3371_v57 = vadd.f32 %v3364_v44, %v2301_v51 }
 0xdef   :  { %v3295_v55 = vpop.f32.mrf.mxu0  ;;  %v3366_v2 = vpop.f32.mrf.mxu1 }
 0xdf0   :  { %v3933_v63 = vmul.f32 -1.442695, %v3369_v23  ;;  %v3370_v3 = vadd.f32 %v3295_v55, %v2190_v20  ;;  %v3372_v45 = vadd.f32 %v3366_v2, %v2303_v11 }
 0xdf2   :  { %4215 = vpow2.f32 %v3933_v63  ;;  %v3934_v53 = vmul.f32 -1.442695, %v3370_v3  ;;  %v3935_v56 = vmul.f32 -1.442695, %v3372_v45 }
 0xdf4   :  { %4217 = vpow2.f32 %v3934_v53 }
 0xdf5   :  { %4219 = vtanh.f32 %v3371_v57 }
 0xdf6   :  { %4221 = vpow2.f32 %v3935_v56 }
 0xdff   :  { %v4216_v60 = vpop.eup %4215 }
 0xe00   :  { %v3376_v27 = vadd.f32 1.0, %v4216_v60 }
 0xe01   :  { %v4218_v61 = vpop.eup %4217 }
 0xe02   :  { %4223 = vrcp.f32 %v3376_v27  ;;  %v3382_v55 = vadd.f32 1.0, %v4218_v61  ;;  %v4220_v3 = vpop.eup %4219 }
 0xe03   :  { %v4222_v20 = vpop.eup %4221 }
 0xe04   :  { %4225 = vrcp.f32 %v3382_v55  ;;  %v3389_v23 = vadd.f32 1.0, %v4222_v20 }
 0xe06   :  { %4227 = vrcp.f32 %v3389_v23 }
 0xe0f   :  { %v4224_v63 = vpop.eup %4223 }
 0xe10   :  { %v3393_v53 = vmul.f32 %v4224_v63, %v4220_v3 }
 0xe11   :  { %v4226_v62 = vpop.eup %4225 }
 0xe12   :  { %v3392_v11 = vmul.f32 %v4226_v62, %v6485_v50 }
 0xe13   :  { %v4228_v60 = vpop.eup %4227 }
 0xe14   :  { %v6563_v2 = vadd.f32 %v3393_v53, %v3392_v11 }
 0xe16   :  { %4229 = vtanh.f32 %v6563_v2 }
 0xe23   :  { %v4230_v54 = vpop.eup %4229 }
 0xe24   :  { %v3396_v44 = vmul.f32 %v4230_v54, %v4228_v60  ;;  %v3764_v60 = vld [vmem:[%s6743_s9 + $0x78] sm:$0xff]  ;;  %v3762_v54 = vld [vmem:[%s6743_s9 + $0x68] sm:$0xff] }
 0xe26   :  { %3466 = vmatmul.mubr.f32.vlgmr.msra.gmra.mxu0 %v3396_v44  ;;  %3537 = vmatmul.mubr.f32.vlgmr.msra.gmra.mxu1 %v3396_v44  ;;  %v3761_v44 = vld [vmem:[%s6743_s9 + $0x60] sm:$0xff] }
 0xe27   :  { %3576 = vmatpush1.msra.mxu0 %v6204_v16  ;;  %3647 = vmatpush1.msra.mxu1 %v6207_v43  ;;  %v7346_v16 = vld [vmem:[#allocation30_spill] sm:$0xff]  ;;  %v7347_v43 = vld [vmem:[#allocation28_spill] sm:$0xff] }
 0xe28   :  { %3577 = vmatprep.subr.mxu0 %v6210_v12  ;;  %3648 = vmatprep.subr.mxu1 %v6213_v10  ;;  %v7348_v12 = vld [vmem:[#allocation50_spill] sm:$0xff]  ;;  %v7349_v10 = vld [vmem:[#allocation51_spill] sm:$0xff] }
 0xe29   :  { %3578 = vmatpush1.msra.mxu0 %v6216_v48  ;;  %3649 = vmatpush1.msra.mxu1 %v6219_v5  ;;  %v7350_v48 = vld [vmem:[#allocation49_spill] sm:$0xff]  ;;  %v7351_v5 = vld [vmem:[#allocation52_spill] sm:$0xff] }
 0xe2a   :  { %3579 = vmatprep.subr.mxu0 %v6222_v6  ;;  %3650 = vmatprep.subr.mxu1 %v6225_v42  ;;  %v7352_v6 = vld [vmem:[#allocation54_spill] sm:$0xff]  ;;  %v7353_v42 = vld [vmem:[#allocation55_spill] sm:$0xff] }
 0xe2b   :  { %3580 = vmatpush1.msra.mxu0 %v6228_v15  ;;  %3651 = vmatpush1.msra.mxu1 %v6231_v14  ;;  %v7354_v15 = vld [vmem:[#allocation53_spill] sm:$0xff] }
 0xe2c   :  { %3581 = vmatprep.subr.mxu0 %v6234_v38  ;;  %3652 = vmatprep.subr.mxu1 %v6237_v9  ;;  %v7355_v14 = vld [vmem:[#allocation21_spill] sm:$0xff]  ;;  %v7356_v38 = vld [vmem:[#allocation22_spill] sm:$0xff]  ;;  %v7357_v9 = vld [vmem:[#allocation56_spill] sm:$0xff] }
 0xe2d   :  { %3582 = vmatpush1.msra.mxu0 %v6240_v46  ;;  %3653 = vmatpush1.msra.mxu1 %v6243_v40  ;;  %v7358_v46 = vld [vmem:[#allocation58_spill] sm:$0xff]  ;;  %v7359_v40 = vld [vmem:[#allocation59_spill] sm:$0xff] }
 0xe2e   :  { %3583 = vmatprep.subr.mxu0 %v6246_v52  ;;  %3654 = vmatprep.subr.mxu1 %v6249_v8  ;;  %v7360_v52 = vld [vmem:[#allocation57_spill] sm:$0xff]  ;;  %v7361_v8 = vld [vmem:[#allocation24_spill] sm:$0xff] }
 0xe2f   :  { %3584 = vmatpush1.msra.mxu0 %v6334_v49  ;;  %3655 = vmatpush1.msra.mxu1 %v6337_v7  ;;  %v7362_v49 = vld [vmem:[#allocation25_spill] sm:$0xff]  ;;  %v7363_v7 = vld [vmem:[#allocation60_spill] sm:$0xff] }
 0xe30   :  { %3585 = vmatprep.subr.mxu0 %v6340_v0  ;;  %3656 = vmatprep.subr.mxu1 %v6343_v4  ;;  %v7364_v0 = vld [vmem:[#allocation43_spill] sm:$0xff]  ;;  %v7365_v4 = vld [vmem:[#allocation48_spill] sm:$0xff] }
 0xe31   :  { %3586 = vmatpush1.msra.mxu0 %v6346_v29  ;;  %3657 = vmatpush1.msra.mxu1 %v6349_v47  ;;  %v7366_v29 = vmov 0.0   ;;  %v7367_v47 = vld [vmem:[#allocation31_spill] sm:$0xff] }
 0xe32   :  { %3587 = vmatprep.subr.mxu0 %v6352_v58  ;;  %3658 = vmatprep.subr.mxu1 %v6355_v28  ;;  %v7368_v58 = vld [vmem:[#allocation42_spill] sm:$0xff]  ;;  %v7369_v28 = vld [vmem:[#allocation23_spill] sm:$0xff] }
 0xe33   :  { %3588 = vmatpush1.msra.mxu0 %v6358_v30  ;;  %3659 = vmatpush1.msra.mxu1 %v6361_v32  ;;  %v2194_v30 = vadd.f32 %v7369_v28, %v7368_v58 }
 0xe34   :  { %3589 = vmatprep.subr.mxu0 %v6364_v33  ;;  %3660 = vmatprep.subr.mxu1 %v6367_v17  ;;  %v7370_v33 = vld [vmem:[#allocation46_spill] sm:$0xff] }
 0xe35   :  { %3590 = vmatpush1.msra.mxu0 %v6370_v18  ;;  %3661 = vmatpush1.msra.mxu1 %v6373_v19  ;;  %v2196_v17 = vadd.f32 %v7370_v33, %v6022_v26  ;;  %v7375_v33 = vld [vmem:[#allocation44_spill] sm:$0xff] }
 0xe36   :  { %3591 = vmatprep.subr.mxu0 %v6376_v21  ;;  %3662 = vmatprep.subr.mxu1 %v6379_v22 }
 0xe37   :  { %3592 = vmatpush1.msra.mxu0 %v6382_v24  ;;  %3663 = vmatpush1.msra.mxu1 %v6385_v31 }
 0xe38   :  { %3593 = vmatprep.subr.mxu0 %v6388_v34  ;;  %3664 = vmatprep.subr.mxu1 %v6391_v35  ;;  %v7371_v35 = vld [vmem:[#allocation68_spill] sm:$0xff] }
 0xe39   :  { %3594 = vmatpush1.msra.mxu0 %v6394_v36  ;;  %3665 = vmatpush1.msra.mxu1 %v6397_v37  ;;  %v2309_v36 = vadd.f32 %v7371_v35, %v6034_v41 }
 0xe3a   :  { %3595 = vmatprep.subr.mxu0 %v6400_v39  ;;  %3666 = vmatprep.subr.mxu1 %v6403_v1  ;;  %v7372_v39 = vld [vmem:[#allocation26_spill] sm:$0xff] }
 0xe3b   :  { %3596 = vmatpush1.msra.mxu0 %v6406_v25  ;;  %3667 = vmatpush1.msra.mxu1 %v7346_v16  ;;  %v2307_v1 = vadd.f32 %v7372_v39, %v6039_v13  ;;  %v3760_v16 = vld [vmem:[%s6743_s9 + $0x58] sm:$0xff] }
 0xe3c   :  { %3597 = vmatprep.subr.mxu0 %v7347_v43  ;;  %3668 = vmatprep.subr.mxu1 %v7348_v12  ;;  %v3759_v43 = vld [vmem:[%s6743_s9 + $0x50] sm:$0xff]  ;;  %v3758_v12 = vld [vmem:[%s6743_s9 + $0x48] sm:$0xff] }
 0xe3d   :  { %3598 = vmatpush1.msra.mxu0 %v7349_v10  ;;  %3669 = vmatpush1.msra.mxu1 %v7350_v48  ;;  %v3757_v10 = vld [vmem:[%s6743_s9 + $0x40] sm:$0xff]  ;;  %v3756_v48 = vld [vmem:[%s6743_s9 + $0x38] sm:$0xff] }
 0xe3e   :  { %3599 = vmatprep.subr.mxu0 %v7351_v5  ;;  %3670 = vmatprep.subr.mxu1 %v7352_v6  ;;  %v3755_v5 = vld [vmem:[%s6743_s9 + $0x30] sm:$0xff]  ;;  %v3754_v6 = vld [vmem:[%s6743_s9 + $0x28] sm:$0xff] }
 0xe3f   :  { %3600 = vmatpush1.msra.mxu0 %v7353_v42  ;;  %3671 = vmatpush1.msra.mxu1 %v7354_v15  ;;  %v3753_v42 = vld [vmem:[%s6743_s9 + $0x20] sm:$0xff]  ;;  %v3752_v15 = vld [vmem:[%s6743_s9 + $0x18] sm:$0xff] }
 0xe40   :  { %3601 = vmatprep.subr.mxu0 %v7355_v14  ;;  %3672 = vmatprep.subr.mxu1 %v7356_v38  ;;  %v3751_v14 = vld [vmem:[%s6743_s9 + $0x10] sm:$0xff]  ;;  %v3750_v38 = vld [vmem:[%s6743_s9 + $0x8] sm:$0xff] }
 0xe41   :  { %3602 = vmatpush1.msra.mxu0 %v7357_v9  ;;  %3673 = vmatpush1.msra.mxu1 %v7358_v46  ;;  %v3749_v9 = vld [vmem:[%s6743_s9] sm:$0xff]  ;;  %v7373_v46 = vld [vmem:[#allocation70_spill] sm:$0xff] }
 0xe42   :  { %3603 = vmatprep.subr.mxu0 %v7359_v40  ;;  %3674 = vmatprep.subr.mxu1 %v7360_v52  ;;  %v2200_v40 = vadd.f32 %v7373_v46, %v7368_v58 }
 0xe43   :  { %3604 = vmatpush1.msra.mxu0 %v7361_v8  ;;  %3675 = vmatpush1.msra.mxu1 %v7362_v49  ;;  %v7374_v8 = vld [vmem:[#allocation69_spill] sm:$0xff] }
 0xe44   :  { %3605 = vmatprep.subr.mxu0 %v7363_v7  ;;  %3676 = vmatprep.subr.mxu1 %v7364_v0  ;;  %v2202_v49 = vadd.f32 %v7374_v8, %v6022_v26 }
 0xe45   :  { %3606 = vmatpush1.msra.mxu0 %v7365_v4  ;;  %3639 = vmatprep.mubr.f32.mxu0 %v7366_v29 }
 0xe46   :  { %3677 = vmatpush1.msra.mxu1 %v7367_v47  ;;  %3710 = vmatprep.mubr.f32.mxu1 %v7366_v29 }
 0xe47   :  { %3960 = vmatprep.subr.mxu0 %v7366_v29 }
 0xee6   :  { %v3467_v32 = vpop.f32.mrf.mxu0  ;;  %v3538_v24 = vpop.f32.mrf.mxu1 }
 0xee7   :  { %v3543_v18 = vadd.f32 %v3467_v32, %v2194_v30  ;;  %v3545_v25 = vadd.f32 %v3538_v24, %v2307_v1 }
 0xee8   :  { %v3469_v19 = vpop.f32.mrf.mxu0  ;;  %v3540_v34 = vpop.f32.mrf.mxu1 }
 0xee9   :  { %v3936_v21 = vmul.f32 -1.442695, %v3543_v18  ;;  %v3544_v22 = vadd.f32 %v3469_v19, %v2196_v17  ;;  %v3546_v37 = vadd.f32 %v3540_v34, %v2309_v36  ;;  %v7376_v18 = vld [vmem:[#allocation71_spill] sm:$0xff] }
 0xeea   :  { %v2313_v58 = vadd.f32 %v7376_v18, %v6039_v13 }
 0xeeb   :  { %4231 = vpow2.f32 %v3936_v21  ;;  %v3937_v31 = vmul.f32 -1.442695, %v3544_v22  ;;  %v3938_v50 = vmul.f32 -1.442695, %v3546_v37 }
 0xeed   :  { %4233 = vpow2.f32 %v3937_v31 }
 0xeee   :  { %4235 = vtanh.f32 %v3545_v25 }
 0xeef   :  { %4237 = vpow2.f32 %v3938_v50 }
 0xef8   :  { %v4232_v56 = vpop.eup %4231 }
 0xef9   :  { %v3550_v57 = vadd.f32 1.0, %v4232_v56 }
 0xefa   :  { %v4234_v59 = vpop.eup %4233 }
 0xefb   :  { %4239 = vrcp.f32 %v3550_v57  ;;  %v3556_v45 = vadd.f32 1.0, %v4234_v59  ;;  %v4236_v51 = vpop.eup %4235 }
 0xefc   :  { %v4238_v27 = vpop.eup %4237 }
 0xefd   :  { %4241 = vrcp.f32 %v3556_v45  ;;  %v3563_v20 = vadd.f32 1.0, %v4238_v27 }
 0xeff   :  { %4243 = vrcp.f32 %v3563_v20 }
 0xf08   :  { %v4240_v61 = vpop.eup %4239 }
 0xf09   :  { %v3567_v55 = vmul.f32 %v4240_v61, %v4236_v51 }
 0xf0a   :  { %v4242_v3 = vpop.eup %4241 }
 0xf0b   :  { %v3566_v63 = vmul.f32 %v4242_v3, %v6563_v2  ;;  %v3763_v2 = vld [vmem:[%s6743_s9 + $0x70] sm:$0xff]  ;;  %s4549_s9 = smov [#allocation13]  }
 0xf0c   :  { %v4244_v62 = vpop.eup %4243  ;;  %s3859_s20 = sshll.u32 %s4549_s9, 4  ;;  %s3860_s20 = int_to_ptr.vmem [resolvable:$true] %s3859_s20 }
 0xf0d   :  { %v6640_v53 = vadd.f32 %v3567_v55, %v3566_v63  ;;  %s4471_s21 = scalar_lea.vmem %s3860_s20, 64  ;;  %p4476_p7 = scmp.lt.s32.totalorder %s3860_s20, %s3860_s20 }
 0xf0e   :  { %p4472_p6 = scmp.ne.s32.totalorder %s3860_s20, %s4471_s21  ;;  %p4477_p8 = scmp.lt.s32.totalorder %s4471_s21, %s4471_s21 }
 0xf0f   :  { %4245 = vtanh.f32 %v6640_v53 }
 0xf10   :  { %p4478_p9 = por %p4477_p8, %p4476_p7 }
 0xf12   :  { %p4479_p10 = pnand %p4478_p9, %p4472_p6 }
 0xf1c   :  { %v4246_v23 = vpop.eup %4245 }
 0xf1d   :  { %v3570_v11 = vmul.f32 %v4246_v23, %v4244_v62 }
 0xf1f   :  { %3640 = vmatmul.mubr.f32.vlgmr.msra.gmra.mxu0 %v3570_v11  ;;  %3711 = vmatmul.mubr.f32.vlgmr.msra.gmra.mxu1 %v3570_v11 }
 0xf20   :  { %3961 = vmatpush3.msra.mxu0 %v3764_v60  ;;  %3992 = vmatprep.mubr.msk.f32.mxu0 %vm4548_vm1, %v7366_v29 }
 0xf21   :  { %3962 = vmatprep.subr.mxu0 %v7366_v29 }
 0xf22   :  { %3963 = vmatpush3.msra.mxu0 %v3763_v2 }
 0xf23   :  { %3964 = vmatprep.subr.mxu0 %v7366_v29 }
 0xf24   :  { %3965 = vmatpush3.msra.mxu0 %v3762_v54 }
 0xf25   :  { %3966 = vmatprep.subr.mxu0 %v7366_v29 }
 0xf26   :  { %3967 = vmatpush3.msra.mxu0 %v3761_v44 }
 0xf27   :  { %3968 = vmatprep.subr.mxu0 %v7366_v29 }
 0xf28   :  { %3969 = vmatpush3.msra.mxu0 %v3760_v16 }
 0xf29   :  { %3970 = vmatprep.subr.mxu0 %v7366_v29 }
 0xf2a   :  { %3971 = vmatpush3.msra.mxu0 %v3759_v43 }
 0xf2b   :  { %3972 = vmatprep.subr.mxu0 %v7366_v29 }
 0xf2c   :  { %3973 = vmatpush3.msra.mxu0 %v3758_v12 }
 0xf2d   :  { %3974 = vmatprep.subr.mxu0 %v7366_v29 }
 0xf2e   :  { %3975 = vmatpush3.msra.mxu0 %v3757_v10 }
 0xf2f   :  { %3976 = vmatprep.subr.mxu0 %v7366_v29 }
 0xf30   :  { %3977 = vmatpush3.msra.mxu0 %v3756_v48 }
 0xf31   :  { %3978 = vmatprep.subr.mxu0 %v7366_v29 }
 0xf32   :  { %3979 = vmatpush3.msra.mxu0 %v3755_v5 }
 0xf33   :  { %3980 = vmatprep.subr.mxu0 %v7366_v29 }
 0xf34   :  { %3981 = vmatpush3.msra.mxu0 %v3754_v6 }
 0xf35   :  { %3982 = vmatprep.subr.mxu0 %v7366_v29 }
 0xf36   :  { %3983 = vmatpush3.msra.mxu0 %v3753_v42 }
 0xf37   :  { %3984 = vmatprep.subr.mxu0 %v7366_v29 }
 0xf38   :  { %3985 = vmatpush3.msra.mxu0 %v3752_v15 }
 0xf39   :  { %3986 = vmatprep.subr.mxu0 %v7366_v29 }
 0xf3a   :  { %3987 = vmatpush3.msra.mxu0 %v3751_v14 }
 0xf3b   :  { %3988 = vmatprep.subr.mxu0 %v7366_v29 }
 0xf3c   :  { %3989 = vmatpush3.msra.mxu0 %v3750_v38 }
 0xf3d   :  { %3990 = vmatprep.subr.mxu0 %v7366_v29  ;;  %v2315_v29 = vadd.f32 %v7375_v33, %v6034_v41 }
 0xf3e   :  { %3991 = vmatpush3.msra.mxu0 %v3749_v9 }
 0xfdf   :  { %v3641_v52 = vpop.f32.mrf.mxu0  ;;  %v3712_v28 = vpop.f32.mrf.mxu1 }
 0xfe0   :  { %v3717_v7 = vadd.f32 %v3641_v52, %v2200_v40  ;;  %v3719_v19 = vadd.f32 %v3712_v28, %v2313_v58 }
 0xfe1   :  { %v3643_v0 = vpop.f32.mrf.mxu0  ;;  %v3714_v32 = vpop.f32.mrf.mxu1 }
 0xfe2   :  { %v3939_v4 = vmul.f32 -1.442695, %v3717_v7  ;;  %v3718_v47 = vadd.f32 %v3643_v0, %v2202_v49  ;;  %v3720_v17 = vadd.f32 %v3714_v32, %v2315_v29 }
 0xfe4   :  { %4247 = vpow2.f32 %v3939_v4  ;;  %v3940_v30 = vmul.f32 -1.442695, %v3718_v47  ;;  %v3941_v21 = vmul.f32 -1.442695, %v3720_v17 }
 0xfe6   :  { %4249 = vpow2.f32 %v3940_v30 }
 0xfe7   :  { %4251 = vtanh.f32 %v3719_v19 }
 0xfe8   :  { %4253 = vpow2.f32 %v3941_v21 }
 0xff1   :  { %v4248_v22 = vpop.eup %4247 }
 0xff2   :  { %v3724_v26 = vadd.f32 1.0, %v4248_v22 }
 0xff3   :  { %v4250_v24 = vpop.eup %4249 }
 0xff4   :  { %4255 = vrcp.f32 %v3724_v26  ;;  %v3730_v31 = vadd.f32 1.0, %v4250_v24  ;;  %v4252_v34 = vpop.eup %4251 }
 0xff5   :  { %v4254_v35 = vpop.eup %4253 }
 0xff6   :  { %4257 = vrcp.f32 %v3730_v31  ;;  %v3737_v41 = vadd.f32 1.0, %v4254_v35 }
 0xff8   :  { %4259 = vrcp.f32 %v3737_v41 }
0x1001   :  { %v4256_v36 = vpop.eup %4255 }
0x1002   :  { %v3741_v37 = vmul.f32 %v4256_v36, %v4252_v34 }
0x1003   :  { %v4258_v39 = vpop.eup %4257 }
0x1004   :  { %v3740_v1 = vmul.f32 %v4258_v39, %v6640_v53 }
0x1005   :  { %v4260_v13 = vpop.eup %4259 }
0x1006   :  { %v3742_v25 = vadd.f32 %v3741_v37, %v3740_v1 }
0x1008   :  { %4261 = vtanh.f32 %v3742_v25  ;;  %3748 = vst.msk [vmem:[#allocation15 + $0x2] sm:$0x3] %vm1930_vm0, %v3742_v25 }
0x1015   :  { %v4262_v50 = vpop.eup %4261 }
0x1016   :  { %v3744_v56 = vmul.f32 %v4262_v50, %v4260_v13 }
0x1018   :  { %3993 = vmatmul.mubr.f32.vlgmr.msra.gmra.mxu0 %v3744_v56  ;;  %3746 = vst.msk [vmem:[#allocation13 + $0x2] sm:$0x3] %vm1930_vm0, %v3744_v56 }
0x1019   :  { %4482 = shalt.err (!%p4479_p10)
}
0x101a   :  { %s4550_s22 = smov 2   ;;  %s4551_s24 = smov [#allocation15]  }
0x101b   :  { %3865 = dma.vmem_to_hbm [thread:$0]  %s3860_s20, 64, %s6746_s12, [#allocation14], %s4544_s14, %s4544_s14, %s4550_s22  }
0x101c   :  { %s3871_s0 = sshll.u32 %s4551_s24, 4  ;;  %s3872_s0 = int_to_ptr.vmem [resolvable:$true] %s3871_s0 }
0x101d   :  { %s4491_s25 = scalar_lea.vmem %s3872_s0, 64  ;;  %p4496_p12 = scmp.lt.s32.totalorder %s3872_s0, %s3872_s0 }
0x101e   :  { %p4492_p11 = scmp.ne.s32.totalorder %s3872_s0, %s4491_s25  ;;  %p4497_p13 = scmp.lt.s32.totalorder %s4491_s25, %s4491_s25 }
0x1020   :  { %p4498_p0 = por %p4497_p13, %p4496_p12 }
0x1022   :  { %p4499_p1 = pnand %p4498_p0, %p4492_p11 }
0x1024   :  { %4502 = shalt.err (!%p4499_p1)
}
0x1025   :  { %3877 = dma.vmem_to_hbm [thread:$0]  %s3872_s0, 64, %s6747_s13, [#allocation14], %s4544_s14, %s4544_s14, %s4550_s22   ;;  %vm3842_vm2 = vcmask 58368  }
0x1026   :  { %v3942_v57 = vld [vmem:[%s6744_s10] ss:$0 sm:$0xff]  ;;  %s4552_s12 = smov [#allocation12]  }
0x1027   :  { %s3850_s6 = sshll.u32 %s4552_s12, 4  ;;  %s3851_s6 = int_to_ptr.vmem [resolvable:$true] %s3850_s6 }
0x1028   :  { %s4511_s7 = scalar_lea.vmem %s3851_s6, 32  ;;  %p4516_p3 = scmp.lt.s32.totalorder %s3851_s6, %s3851_s6 }
0x1029   :  { %p4512_p2 = scmp.ne.s32.totalorder %s3851_s6, %s4511_s7  ;;  %p4517_p4 = scmp.lt.s32.totalorder %s4511_s7, %s4511_s7 }
0x102b   :  { %p4518_p5 = por %p4517_p4, %p4516_p3 }
0x102d   :  { %p4519_p6 = pnand %p4518_p5, %p4512_p2 }
0x10d8   :  { %v3838_v59 = vpop.f32.mrf.mxu0 }
0x10d9   :  { %v3839_v45 = vadd.f32 %v3942_v57, %v3838_v59 }
0x10da   :  { %v3994_v51 = vpop.f32.mrf.mxu0 }
0x10db   :  { %3843 = vst.msk [vmem:[#allocation12] sm:$0x3] %vm3842_vm2, %v3839_v45 }
0x10dc   :  { %4522 = shalt.err (!%p4519_p6)
}
0x10dd   :  { %3853 = dma.vmem_to_hbm [thread:$0]  %s3851_s6, 32, %s6745_s11, [#allocation6]  }
0x10de   :  { %4537 = dma.done.wait [#allocation6], 32  }
0x10df   :  { %4538 = vsyncadd [#allocation6], 4294967264 }
0x10e0   :  { %4539 = dma.done.wait [#allocation14], 128  }
0x10e1   :  { %4540 = vsyncadd [#allocation14], 4294967168 }
0x10e2   :  { %3887 = vsyncpa [#allocation5], 1 }
0x10e3   :  { %3888 = vsyncpa [#allocation8], 1 }
0x10e4   :  { %3889 = vsyncpa [#allocation11], 1 }
0x10e5   :  { %3890 = vsyncpa [#allocation6], 1 }
0x10e6   :  { %3891 = vsyncpa [#allocation14], 1 }

</bundles_post_ra>
